<compile_context>
chip_gen: v7x
topology: tpu7x:2x2x1
jax: 0.10.0
libtpu: 0.0.40
codegen_flags: <defaults>
</compile_context>

<pallas_src>
import functools
import math

import jax
import jax.numpy as jnp
from jax.experimental import pallas as pl
from jax.experimental.pallas import tpu as pltpu

_VMEM_LIMIT = 48 * 1024 * 1024  # safe on v7x (64 MiB physical), ample headroom on v5e/v6e


# ----------------------------- tiling helpers -----------------------------

def _tile(dim, target, align):
    """Largest block size <= target that is a multiple of `align` and divides `dim`;
    falls back to the full dim (full-extent blocks are always legal).
    TODO(synk): for awkward dims with no aligned divisor this returns the full dim, which can
    blow VMEM at extreme sizes; pad-and-mask would be the robust fix."""
    if dim <= target:
        return dim
    t = (target // align) * align
    while t >= align:
        if dim % t == 0:
            return t
        t -= align
    return dim


def _tile_rows(m, target=512):
    """Row tile; if it would give a single grid step, split so the leading 'parallel'
    axis has extent >= 2 (keeps both TensorCores busy on v7x)."""
    tm = _tile(m, target, 8)
    if m // tm < 2 and m >= 16:
        tm = _tile(m, max(8, m // 2), 8)
    return tm


# ------------------------- Pallas kernels -------------------------

def _gn_stats_kernel(x_ref, mean_ref, rstd_ref, s_sc, ss_sc, *, eps, inv_count):
    # One-pass GroupNorm statistics: accumulate per-lane sums of x and x^2 across N tiles,
    # finalize mean / rstd on the last tile.  Outputs are tiny (one value per (b, group)).
    ni = pl.program_id(2)

    @pl.when(ni == 0)
    def _():
        s_sc[...] = jnp.zeros_like(s_sc)
        ss_sc[...] = jnp.zeros_like(ss_sc)

    x = x_ref[0, 0]                                      # (Cg, tn) f32
    s_sc[...] += jnp.sum(x, axis=0, keepdims=True)       # (1, tn)
    ss_sc[...] += jnp.sum(x * x, axis=0, keepdims=True)  # (1, tn)

    @pl.when(ni == pl.num_programs(2) - 1)
    def _():
        mu = jnp.sum(s_sc[...], axis=-1, keepdims=True) * inv_count   # (1, 1)
        m2 = jnp.sum(ss_sc[...], axis=-1, keepdims=True) * inv_count  # (1, 1)
        rstd = jax.lax.rsqrt(m2 - mu * mu + eps)                      # biased var (PyTorch GN)
        mean_ref[0, 0] = jnp.broadcast_to(mu, (1, 128))
        rstd_ref[0, 0] = jnp.broadcast_to(rstd, (1, 128))


def _gn_proj_in_kernel(x_ref, sc_ref, sh_ref, w_ref, b_ref, o_ref):
    # Fused GroupNorm-apply + proj_in (1x1x1 conv).  x stays in its native (b, c, N) layout;
    # per-channel scale/shift applied in-kernel, then the channel axis is contracted directly
    # (lhs-transposed matmul) so the output lands token-major with zero relayout.
    xh = (x_ref[0] * sc_ref[0] + sh_ref[0]).astype(jnp.bfloat16)      # (C, tn)
    o_ref[...] = jax.lax.dot_general(
        xh, w_ref[...].astype(jnp.bfloat16),
        dimension_numbers=(((0,), (0,)), ((), ())),
        preferred_element_type=jnp.float32) + b_ref[...]              # (tn, inner)


def _ln_matmul_kernel(x_ref, g_ref, b_ref, w_ref, o_ref, xn_sc, *, eps):
    # Fused LayerNorm + projection.  LN (one-pass f32 stats) is computed once per row tile
    # (j == 0) into a bf16 VMEM scratch and reused across all N tiles.
    @pl.when(pl.program_id(1) == 0)
    def _():
        x = x_ref[...]                                   # (tm, K) f32
        m1 = jnp.mean(x, axis=-1, keepdims=True)
        m2 = jnp.mean(x * x, axis=-1, keepdims=True)
        xn = (x - m1) * jax.lax.rsqrt(m2 - m1 * m1 + eps) * g_ref[...] + b_ref[...]
        xn_sc[...] = xn.astype(jnp.bfloat16)

    o_ref[...] = jnp.dot(xn_sc[...], w_ref[...].astype(jnp.bfloat16),
                         preferred_element_type=jnp.float32).astype(o_ref.dtype)


def _ln_geglu_kernel(x_ref, g_ref, b_ref, wa_ref, ba_ref, wg_ref, bg_ref, o_ref, xn_sc, *, eps):
    # Fused LayerNorm + GEGLU: (ln(x)@Wa + ba) * gelu(ln(x)@Wg + bg), exact erf gelu.
    @pl.when(pl.program_id(1) == 0)
    def _():
        x = x_ref[...]
        m1 = jnp.mean(x, axis=-1, keepdims=True)
        m2 = jnp.mean(x * x, axis=-1, keepdims=True)
        xn = (x - m1) * jax.lax.rsqrt(m2 - m1 * m1 + eps) * g_ref[...] + b_ref[...]
        xn_sc[...] = xn.astype(jnp.bfloat16)

    xn = xn_sc[...]
    a = jnp.dot(xn, wa_ref[...].astype(jnp.bfloat16),
                preferred_element_type=jnp.float32) + ba_ref[...]
    g = jnp.dot(xn, wg_ref[...].astype(jnp.bfloat16),
                preferred_element_type=jnp.float32) + bg_ref[...]
    gelu_g = 0.5 * g * (1.0 + jax.lax.erf(g * (1.0 / math.sqrt(2.0))))
    o_ref[...] = (a * gelu_g).astype(o_ref.dtype)


def _linear_kernel(x_ref, w_ref, b_ref, *rest, has_res):
    # Tiled (M, N, K) matmul with f32 accumulator; bias (+ optional residual) fused into the
    # final K step.  Inputs may arrive already in bf16 (attention / GEGLU outputs).
    if has_res:
        r_ref, o_ref, acc_ref = rest
    else:
        o_ref, acc_ref = rest

    @pl.when(pl.program_id(2) == 0)
    def _():
        acc_ref[...] = jnp.zeros_like(acc_ref)

    acc_ref[...] += jnp.dot(x_ref[...].astype(jnp.bfloat16),
                            w_ref[...].astype(jnp.bfloat16),
                            preferred_element_type=jnp.float32)

    @pl.when(pl.program_id(2) == pl.num_programs(2) - 1)
    def _():
        out = acc_ref[...] + b_ref[...]
        if has_res:
            out = out + r_ref[...]
        o_ref[...] = out


def _flash_attn_kernel(q_ref, kv_ref, o_ref, m_sc, l_sc, acc_sc, *,
                       scale, heads, dim_head, inner):
    # Online-softmax attention reading q/k/v straight out of the fused QKV row blocks.
    # q_ref / kv_ref blocks: (tq, 3*inner) / (tk, 3*inner) bf16; heads looped in-kernel
    # (reusing the resident tiles); output written lane-dense as (tq, inner) bf16.
    ki = pl.program_id(2)

    @pl.when(ki == 0)
    def _():
        m_sc[...] = jnp.full_like(m_sc, -jnp.inf)
        l_sc[...] = jnp.zeros_like(l_sc)
        acc_sc[...] = jnp.zeros_like(acc_sc)

    for h in range(heads):
        q = q_ref[:, h * dim_head:(h + 1) * dim_head] * scale          # (tq, Dh) bf16
        k = kv_ref[:, inner + h * dim_head: inner + (h + 1) * dim_head]
        v = kv_ref[:, 2 * inner + h * dim_head: 2 * inner + (h + 1) * dim_head]
        s = jax.lax.dot_general(q, k, (((1,), (1,)), ((), ())),
                                preferred_element_type=jnp.float32)    # (tq, tk) f32
        m_prev = m_sc[h]
        m_new = jnp.maximum(m_prev, jnp.max(s, axis=-1, keepdims=True))
        alpha = jnp.exp(m_prev - m_new)
        p = jnp.exp(s - m_new)
        l_sc[h] = alpha * l_sc[h] + jnp.sum(p, axis=-1, keepdims=True)
        acc_sc[h] = alpha * acc_sc[h] + jnp.dot(p.astype(jnp.bfloat16), v,
                                                preferred_element_type=jnp.float32)
        m_sc[h] = m_new

    @pl.when(ki == pl.num_programs(2) - 1)
    def _():
        outs = []
        for h in range(heads):
            inv = pl.reciprocal(l_sc[h], approx=True)
            outs.append((acc_sc[h] * inv).astype(o_ref.dtype))
        o_ref[...] = jnp.concatenate(outs, axis=-1)                    # lane-dense (tq, inner)


# ------------------------- pallas_call wrappers -------------------------

def pallas_groupnorm_stats(x_bcn, num_groups, eps=1e-6, tn_target=2048):
    B, C, N = x_bcn.shape
    Cg = C // num_groups
    xg = x_bcn.reshape(B, num_groups, Cg, N)
    tn = _tile(N, tn_target, 128)
    nb = N // tn
    inv_count = 1.0 / float(Cg * N)
    mean4, rstd4 = pl.pallas_call(
        functools.partial(_gn_stats_kernel, eps=eps, inv_count=inv_count),
        grid=(B, num_groups, nb),
        in_specs=[pl.BlockSpec((1, 1, Cg, tn), lambda bi, gi, ni: (bi, gi, 0, ni))],
        out_specs=[pl.BlockSpec((1, 1, 1, 128), lambda bi, gi, ni: (bi, gi, 0, 0)),
                   pl.BlockSpec((1, 1, 1, 128), lambda bi, gi, ni: (bi, gi, 0, 0))],
        out_shape=[jax.ShapeDtypeStruct((B, num_groups, 1, 128), jnp.float32),
                   jax.ShapeDtypeStruct((B, num_groups, 1, 128), jnp.float32)],
        scratch_shapes=[pltpu.VMEM((1, tn), jnp.float32),
                        pltpu.VMEM((1, tn), jnp.float32)],
        compiler_params=pltpu.CompilerParams(
            dimension_semantics=("parallel", "parallel", "arbitrary"),
            vmem_limit_bytes=_VMEM_LIMIT),
    )(xg)
    return mean4[:, :, 0, 0], rstd4[:, :, 0, 0]        # (B, G) each


def pallas_gn_proj_in(x_bcn, scale_bc, shift_bc, w, bias, tn_target=1024):
    B, C, N = x_bcn.shape
    _, inner = w.shape
    tn = _tile(N, tn_target, 128)
    nb = N // tn
    return pl.pallas_call(
        _gn_proj_in_kernel,
        grid=(B, nb),
        in_specs=[
            pl.BlockSpec((1, C, tn), lambda bi, ni: (bi, 0, ni)),
            pl.BlockSpec((1, C, 1), lambda bi, ni: (bi, 0, 0)),
            pl.BlockSpec((1, C, 1), lambda bi, ni: (bi, 0, 0)),
            pl.BlockSpec((C, inner), lambda bi, ni: (0, 0)),
            pl.BlockSpec((1, inner), lambda bi, ni: (0, 0)),
        ],
        out_specs=pl.BlockSpec((tn, inner), lambda bi, ni: (bi * nb + ni, 0)),
        out_shape=jax.ShapeDtypeStruct((B * N, inner), jnp.float32),
        compiler_params=pltpu.CompilerParams(
            dimension_semantics=("parallel", "parallel"),
            vmem_limit_bytes=_VMEM_LIMIT),
    )(x_bcn, scale_bc.reshape(B, C, 1), shift_bc.reshape(B, C, 1), w, bias.reshape(1, inner))


def pallas_ln_matmul(x, gamma, beta, w, eps=1e-5, out_dtype=jnp.bfloat16,
                     tm_target=512, tn_target=512):
    M, K = x.shape
    _, N = w.shape
    tm = _tile_rows(M, tm_target)
    tn = _tile(N, tn_target, 128)
    cost = pl.CostEstimate(flops=2 * M * N * K + 8 * M * K, transcendentals=0,
                           bytes_accessed=4 * (M * K + K * N + 2 * K) + 2 * M * N)
    return pl.pallas_call(
        functools.partial(_ln_matmul_kernel, eps=eps),
        grid=(M // tm, N // tn),
        in_specs=[
            pl.BlockSpec((tm, K), lambda i, j: (i, 0)),
            pl.BlockSpec((1, K), lambda i, j: (0, 0)),
            pl.BlockSpec((1, K), lambda i, j: (0, 0)),
            pl.BlockSpec((K, tn), lambda i, j: (0, j)),
        ],
        out_specs=pl.BlockSpec((tm, tn), lambda i, j: (i, j)),
        out_shape=jax.ShapeDtypeStruct((M, N), out_dtype),
        scratch_shapes=[pltpu.VMEM((tm, K), jnp.bfloat16)],
        compiler_params=pltpu.CompilerParams(
            dimension_semantics=("parallel", "arbitrary"),   # LN cached across the j axis
            vmem_limit_bytes=_VMEM_LIMIT),
        cost_estimate=cost,
    )(x, gamma.reshape(1, K), beta.reshape(1, K), w)


def pallas_ln_geglu(x, gamma, beta, wa, ba, wg, bg, eps=1e-5, out_dtype=jnp.bfloat16,
                    tm_target=512, tn_target=512):
    M, K = x.shape
    _, N = wa.shape
    tm = _tile_rows(M, tm_target)
    tn = _tile(N, tn_target, 128)
    cost = pl.CostEstimate(flops=4 * M * N * K, transcendentals=M * N,
                           bytes_accessed=4 * (M * K + 2 * K * N + 2 * N) + 2 * M * N)
    return pl.pallas_call(
        functools.partial(_ln_geglu_kernel, eps=eps),
        grid=(M // tm, N // tn),
        in_specs=[
            pl.BlockSpec((tm, K), lambda i, j: (i, 0)),
            pl.BlockSpec((1, K), lambda i, j: (0, 0)),
            pl.BlockSpec((1, K), lambda i, j: (0, 0)),
            pl.BlockSpec((K, tn), lambda i, j: (0, j)),
            pl.BlockSpec((1, tn), lambda i, j: (0, j)),
            pl.BlockSpec((K, tn), lambda i, j: (0, j)),
            pl.BlockSpec((1, tn), lambda i, j: (0, j)),
        ],
        out_specs=pl.BlockSpec((tm, tn), lambda i, j: (i, j)),
        out_shape=jax.ShapeDtypeStruct((M, N), out_dtype),
        scratch_shapes=[pltpu.VMEM((tm, K), jnp.bfloat16)],
        compiler_params=pltpu.CompilerParams(
            dimension_semantics=("parallel", "arbitrary"),
            vmem_limit_bytes=_VMEM_LIMIT),
        cost_estimate=cost,
    )(x, gamma.reshape(1, K), beta.reshape(1, K), wa, ba.reshape(1, N), wg, bg.reshape(1, N))


def pallas_linear(x, w, b, res=None, tm_target=512, tn_target=512, tk_target=1024):
    M, K = x.shape
    _, N = w.shape
    tm = _tile_rows(M, tm_target)
    tn = _tile(N, tn_target, 128)
    tk = _tile(K, tk_target, 128)
    has_res = res is not None
    in_specs = [
        pl.BlockSpec((tm, tk), lambda i, j, k: (i, k)),
        pl.BlockSpec((tk, tn), lambda i, j, k: (k, j)),
        pl.BlockSpec((1, tn), lambda i, j, k: (0, j)),
    ]
    inputs = [x, w, b.reshape(1, N)]
    if has_res:
        in_specs.append(pl.BlockSpec((tm, tn), lambda i, j, k: (i, j)))
        inputs.append(res)
    cost = pl.CostEstimate(
        flops=2 * M * N * K, transcendentals=0,
        bytes_accessed=x.dtype.itemsize * M * K + 4 * (K * N + (2 if has_res else 1) * M * N + N))
    return pl.pallas_call(
        functools.partial(_linear_kernel, has_res=has_res),
        grid=(M // tm, N // tn, K // tk),
        in_specs=in_specs,
        out_specs=pl.BlockSpec((tm, tn), lambda i, j, k: (i, j)),
        out_shape=jax.ShapeDtypeStruct((M, N), jnp.float32),
        scratch_shapes=[pltpu.VMEM((tm, tn), jnp.float32)],
        compiler_params=pltpu.CompilerParams(
            dimension_semantics=("parallel", "parallel", "arbitrary"),
            vmem_limit_bytes=_VMEM_LIMIT),
        cost_estimate=cost,
    )(*inputs)


def pallas_flash_attention(qkv, B, N, heads, dim_head, scale, tq_target=512, tk_target=512):
    inner = heads * dim_head
    tq = _tile(N, tq_target, 8)
    tk = _tile(N, tk_target, 8)
    nq, nk = N // tq, N // tk
    cost = pl.CostEstimate(flops=4 * B * heads * N * N * dim_head,
                           transcendentals=B * heads * N * N,
                           bytes_accessed=2 * (2 * B * N * 3 * inner + B * N * inner))
    return pl.pallas_call(
        functools.partial(_flash_attn_kernel, scale=scale, heads=heads,
                          dim_head=dim_head, inner=inner),
        grid=(B, nq, nk),
        in_specs=[
            # same QKV array passed twice: q-rows view and kv-rows view
            pl.BlockSpec((tq, 3 * inner), lambda b, qi, ki: (b * nq + qi, 0)),
            pl.BlockSpec((tk, 3 * inner), lambda b, qi, ki: (b * nk + ki, 0)),
        ],
        out_specs=pl.BlockSpec((tq, inner), lambda b, qi, ki: (b * nq + qi, 0)),
        out_shape=jax.ShapeDtypeStruct((B * N, inner), jnp.bfloat16),
        scratch_shapes=[pltpu.VMEM((heads, tq, 1), jnp.float32),
                        pltpu.VMEM((heads, tq, 1), jnp.float32),
                        pltpu.VMEM((heads, tq, dim_head), jnp.float32)],
        compiler_params=pltpu.CompilerParams(
            dimension_semantics=("parallel", "parallel", "arbitrary"),
            vmem_limit_bytes=_VMEM_LIMIT),
        cost_estimate=cost,
    )(qkv, qkv)


# ------------------------- module forward (JAX glue + Pallas hot path) -------------------------

def cross_attention(x_flat, p, B, N, heads, dim_head, ln_g, ln_b, context=None):
    # Fused LayerNorm -> QKV projection -> flash attention -> output proj (+ fused residual).
    if context is not None:
        # TODO(synk): external cross-attention context (context_dim != query_dim) is not wired;
        # the module's default path (context=None -> self-attention) is what the demo exercises.
        raise NotImplementedError("external context not supported in this Pallas port")
    qkv = pallas_ln_matmul(x_flat, ln_g, ln_b, p['wqkv'])                 # (B*N, 3*inner) bf16
    o = pallas_flash_attention(qkv, B, N, heads, dim_head, dim_head ** -0.5)  # (B*N, inner) bf16
    # to_out linear (bias) with the residual add fused into the same kernel.
    # TODO(synk): dropout (p=0.0) and the optional mask branch are identity/unused here.
    return pallas_linear(o, p['wo'], p['bo'], res=x_flat)                 # (B*N, inner) f32


def transformer_block(xf, p, B, N, heads, dim_head, context=None):
    xf = cross_attention(xf, p['attn1'], B, N, heads, dim_head, p['ln1_g'], p['ln1_b'])
    xf = cross_attention(xf, p['attn2'], B, N, heads, dim_head, p['ln2_g'], p['ln2_b'],
                         context=context)
    hid = pallas_ln_geglu(xf, p['ln3_g'], p['ln3_b'],
                          p['ff_w1a'], p['ff_b1a'], p['ff_w1g'], p['ff_b1g'])  # bf16
    xf = pallas_linear(hid, p['ff_w2'], p['ff_b2'], res=xf)                    # residual fused
    return xf


def spatial_transformer(x, params, n_heads, d_head, num_groups, context=None):
    b, c, h, w, d = x.shape
    N = h * w * d
    inner = n_heads * d_head
    x_in = x
    x_bcn = x.reshape(b, c, N)

    # GroupNorm(eps=1e-6, affine) statistics, then fold gamma/beta into per-channel scale/shift
    # (tiny (b, c) arrays; negligible XLA work) consumed by the fused GN + proj_in kernel.
    mean, rstd = pallas_groupnorm_stats(x_bcn, num_groups, eps=1e-6)       # (b, G) each
    Cg = c // num_groups
    mean_c = jnp.repeat(mean, Cg, axis=1)                                  # (b, c)
    rstd_c = jnp.repeat(rstd, Cg, axis=1)
    gamma = params['gn_g'][None, :]
    beta = params['gn_b'][None, :]
    scale_bc = rstd_c * gamma
    shift_bc = beta - mean_c * rstd_c * gamma

    # proj_in: Conv3d kernel_size=1 == per-voxel linear; 'b c h w d -> b (h w d) c' is produced
    # directly by the kernel (no channels-last transpose materialized in HBM).
    xf = pallas_gn_proj_in(x_bcn, scale_bc, shift_bc,
                           params['proj_in_w'], params['proj_in_b'])       # (b*N, inner) f32

    for blk in params['blocks']:
        xf = transformer_block(xf, blk, b, N, n_heads, d_head, context=context)

    # proj_out (zero-initialized) then 'b (h w d) c -> b c h w d', residual on top.
    xo = pallas_linear(xf, params['proj_out_w'], params['proj_out_b'])     # (b*N, c) f32
    xo = xo.reshape(b, h, w, d, c).transpose(0, 4, 1, 2, 3)
    return xo + x_in


# ------------------------- deterministic parameter init -------------------------

def init_params(key, in_channels, n_heads, d_head, depth):
    inner = n_heads * d_head
    ff_inner = inner * 4
    keys = iter(jax.random.split(key, 128))

    def w(shape, scale=0.02):
        return (scale * jax.random.normal(next(keys), shape)).astype(jnp.float32)

    params = {
        'gn_g': jnp.ones((in_channels,), jnp.float32),
        'gn_b': jnp.zeros((in_channels,), jnp.float32),
        # weights stored as (in_features, out_features)
        'proj_in_w': w((in_channels, inner)),
        'proj_in_b': w((inner,)),
        # zero_module(proj_out): weights and bias zeroed, as in the PyTorch __init__
        'proj_out_w': jnp.zeros((inner, in_channels), jnp.float32),
        'proj_out_b': jnp.zeros((in_channels,), jnp.float32),
        'blocks': [],
    }
    for _ in range(depth):
        blk = {
            'ln1_g': jnp.ones((inner,), jnp.float32), 'ln1_b': jnp.zeros((inner,), jnp.float32),
            'ln2_g': jnp.ones((inner,), jnp.float32), 'ln2_b': jnp.zeros((inner,), jnp.float32),
            'ln3_g': jnp.ones((inner,), jnp.float32), 'ln3_b': jnp.zeros((inner,), jnp.float32),
            # Wq/Wk/Wv fused into one (dim, 3*inner) weight (to_q/k/v have no bias)
            'attn1': {'wqkv': w((inner, 3 * inner)),
                      'wo': w((inner, inner)), 'bo': w((inner,))},
            'attn2': {'wqkv': w((inner, 3 * inner)),
                      'wo': w((inner, inner)), 'bo': w((inner,))},
            # GEGLU proj split into the "value" and "gate" halves
            'ff_w1a': w((inner, ff_inner)), 'ff_b1a': w((ff_inner,)),
            'ff_w1g': w((inner, ff_inner)), 'ff_b1g': w((ff_inner,)),
            'ff_w2': w((ff_inner, inner)), 'ff_b2': w((inner,)),
        }
        params['blocks'].append(blk)
    return params


# ------------------------- main -------------------------

if __name__ == "__main__":
    in_channels, n_heads, d_head, num_groups, depth = 4, 2, 16, 2, 1
    b, h, w_, d_ = 2, 4, 4, 4

    key = jax.random.PRNGKey(0)
    pkey, xkey = jax.random.split(key)
    params = init_params(pkey, in_channels, n_heads, d_head, depth)
    x = jax.random.normal(xkey, (b, in_channels, h, w_, d_), jnp.float32)

    fwd = jax.jit(functools.partial(spatial_transformer, n_heads=n_heads,
                                    d_head=d_head, num_groups=num_groups))
    out = fwd(x, params)
    out = jax.block_until_ready(out)
    assert out.shape == x.shape
    assert bool(jnp.all(jnp.isfinite(out)))
    print("KERNEL_OK")
</pallas_src>

<mosaic_0001>
module attributes {stable_mosaic.version = 11 : i64} {
  func.func @_gn_stats_kernel(%arg0: i32, %arg1: i32, %arg2: i32, %arg3: memref<1x1x2x64xf32, #tpu.memory_space<vmem>>, %arg4: memref<1x1x1x128xf32, #tpu.memory_space<vmem>>, %arg5: memref<1x1x1x128xf32, #tpu.memory_space<vmem>>, %arg6: memref<1x64xf32, #tpu.memory_space<vmem>>, %arg7: memref<1x64xf32, #tpu.memory_space<vmem>>) attributes {dimension_semantics = [#tpu.dimension_semantics<parallel>, #tpu.dimension_semantics<parallel>, #tpu.dimension_semantics<arbitrary>], iteration_bounds = array<i64: 2, 2, 1>, scalar_prefetch = 0 : i64, scratch_operands = 2 : i64, tpu.core_type = #tpu.core_type<tc>, window_params = [{transform_indices = @transform_0, window_bounds = array<i64: 1, 1, 2, 64>}, {transform_indices = @transform_1, window_bounds = array<i64: 1, 1, 1, 128>}, {transform_indices = @transform_2, window_bounds = array<i64: 1, 1, 1, 128>}]} {
    %c0_i32 = arith.constant 0 : i32
    %0 = arith.cmpi eq, %arg2, %c0_i32 : i32
    %1 = arith.extui %0 : i1 to i32
    %c0_i32_0 = arith.constant 0 : i32
    %2 = arith.cmpi ne, %1, %c0_i32_0 : i32
    scf.if %2 {
      %cst_15 = arith.constant 0.000000e+00 : f32
      %19 = vector.broadcast %cst_15 : f32 to vector<1x64xf32>
      %c0_16 = arith.constant 0 : index
      %c0_17 = arith.constant 0 : index
      %20 = vector.load %arg6[%c0_16, %c0_17] : memref<1x64xf32, #tpu.memory_space<vmem>>, vector<1x64xf32>
      tpu.vector_store %arg6[%c0_16, %c0_17], %19 {strides = array<i32>} : memref<1x64xf32, #tpu.memory_space<vmem>>, vector<1x64xf32>,
      %cst_18 = arith.constant 0.000000e+00 : f32
      %21 = vector.broadcast %cst_18 : f32 to vector<1x64xf32>
      %c0_19 = arith.constant 0 : index
      %c0_20 = arith.constant 0 : index
      %22 = vector.load %arg7[%c0_19, %c0_20] : memref<1x64xf32, #tpu.memory_space<vmem>>, vector<1x64xf32>
      tpu.vector_store %arg7[%c0_19, %c0_20], %21 {strides = array<i32>} : memref<1x64xf32, #tpu.memory_space<vmem>>, vector<1x64xf32>,
    } else {
    }
    %c0 = arith.constant 0 : index
    %c0_1 = arith.constant 0 : index
    %c0_2 = arith.constant 0 : index
    %c0_3 = arith.constant 0 : index
    %3 = vector.load %arg3[%c0, %c0_1, %c0_2, %c0_3] : memref<1x1x2x64xf32, #tpu.memory_space<vmem>>, vector<1x1x2x64xf32>
    %4 = vector.shape_cast %3 : vector<1x1x2x64xf32> to vector<2x64xf32>
    %c0_4 = arith.constant 0 : index
    %c0_5 = arith.constant 0 : index
    %5 = vector.load %arg6[%c0_4, %c0_5] : memref<1x64xf32, #tpu.memory_space<vmem>>, vector<1x64xf32>
    %cst = arith.constant dense<0.000000e+00> : vector<64xf32>
    %6 = vector.multi_reduction <add>, %4, %cst [0] : vector<2x64xf32> to vector<64xf32>
    %7 = vector.shape_cast %6 : vector<64xf32> to vector<1x64xf32>
    %8 = arith.addf %5, %7 : vector<1x64xf32>
    %c0_6 = arith.constant 0 : index
    %c0_7 = arith.constant 0 : index
    %9 = vector.load %arg6[%c0_6, %c0_7] : memref<1x64xf32, #tpu.memory_space<vmem>>, vector<1x64xf32>
    tpu.vector_store %arg6[%c0_6, %c0_7], %8 {strides = array<i32>} : memref<1x64xf32, #tpu.memory_space<vmem>>, vector<1x64xf32>,
    %c0_8 = arith.constant 0 : index
    %c0_9 = arith.constant 0 : index
    %10 = vector.load %arg7[%c0_8, %c0_9] : memref<1x64xf32, #tpu.memory_space<vmem>>, vector<1x64xf32>
    %11 = arith.mulf %4, %4 : vector<2x64xf32>
    %cst_10 = arith.constant dense<0.000000e+00> : vector<64xf32>
    %12 = vector.multi_reduction <add>, %11, %cst_10 [0] : vector<2x64xf32> to vector<64xf32>
    %13 = vector.shape_cast %12 : vector<64xf32> to vector<1x64xf32>
    %14 = arith.addf %10, %13 : vector<1x64xf32>
    %c0_11 = arith.constant 0 : index
    %c0_12 = arith.constant 0 : index
    %15 = vector.load %arg7[%c0_11, %c0_12] : memref<1x64xf32, #tpu.memory_space<vmem>>, vector<1x64xf32>
    tpu.vector_store %arg7[%c0_11, %c0_12], %14 {strides = array<i32>} : memref<1x64xf32, #tpu.memory_space<vmem>>, vector<1x64xf32>,
    %c0_i32_13 = arith.constant 0 : i32
    %16 = arith.cmpi eq, %arg2, %c0_i32_13 : i32
    %17 = arith.extui %16 : i1 to i32
    %c0_i32_14 = arith.constant 0 : i32
    %18 = arith.cmpi ne, %17, %c0_i32_14 : i32
    scf.if %18 {
      %c0_15 = arith.constant 0 : index
      %c0_16 = arith.constant 0 : index
      %19 = vector.load %arg6[%c0_15, %c0_16] : memref<1x64xf32, #tpu.memory_space<vmem>>, vector<1x64xf32>
      %cst_17 = arith.constant dense<0.000000e+00> : vector<1xf32>
      %20 = vector.multi_reduction <add>, %19, %cst_17 [1] : vector<1x64xf32> to vector<1xf32>
      %21 = vector.shape_cast %20 : vector<1xf32> to vector<1x1xf32>
      %cst_18 = arith.constant 7.812500e-03 : f32
      %22 = vector.broadcast %cst_18 : f32 to vector<1x1xf32>
      %23 = arith.mulf %21, %22 : vector<1x1xf32>
      %c0_19 = arith.constant 0 : index
      %c0_20 = arith.constant 0 : index
      %24 = vector.load %arg7[%c0_19, %c0_20] : memref<1x64xf32, #tpu.memory_space<vmem>>, vector<1x64xf32>
      %cst_21 = arith.constant dense<0.000000e+00> : vector<1xf32>
      %25 = vector.multi_reduction <add>, %24, %cst_21 [1] : vector<1x64xf32> to vector<1xf32>
      %26 = vector.shape_cast %25 : vector<1xf32> to vector<1x1xf32>
      %cst_22 = arith.constant 7.812500e-03 : f32
      %27 = vector.broadcast %cst_22 : f32 to vector<1x1xf32>
      %28 = arith.mulf %26, %27 : vector<1x1xf32>
      %29 = arith.mulf %23, %23 : vector<1x1xf32>
      %30 = arith.subf %28, %29 : vector<1x1xf32>
      %cst_23 = arith.constant 9.99999997E-7 : f32
      %31 = vector.broadcast %cst_23 : f32 to vector<1x1xf32>
      %32 = arith.addf %30, %31 : vector<1x1xf32>
      %33 = math.rsqrt %32 : vector<1x1xf32>
      %34 = vector.shape_cast %23 : vector<1x1xf32> to vector<1x1xf32>
      %35 = vector.broadcast %34 : vector<1x1xf32> to vector<1x128xf32>
      %c0_24 = arith.constant 0 : index
      %c0_25 = arith.constant 0 : index
      %c0_26 = arith.constant 0 : index
      %c0_27 = arith.constant 0 : index
      %36 = vector.load %arg4[%c0_24, %c0_25, %c0_26, %c0_27] : memref<1x1x1x128xf32, #tpu.memory_space<vmem>>, vector<1x1x1x128xf32>
      %37 = vector.shape_cast %36 : vector<1x1x1x128xf32> to vector<1x128xf32>
      %38 = vector.shape_cast %35 : vector<1x128xf32> to vector<1x1x1x128xf32>
      tpu.vector_store %arg4[%c0_24, %c0_25, %c0_26, %c0_27], %38 {strides = array<i32>} : memref<1x1x1x128xf32, #tpu.memory_space<vmem>>, vector<1x1x1x128xf32>,
      %39 = vector.shape_cast %33 : vector<1x1xf32> to vector<1x1xf32>
      %40 = vector.broadcast %39 : vector<1x1xf32> to vector<1x128xf32>
      %c0_28 = arith.constant 0 : index
      %c0_29 = arith.constant 0 : index
      %c0_30 = arith.constant 0 : index
      %c0_31 = arith.constant 0 : index
      %41 = vector.load %arg5[%c0_28, %c0_29, %c0_30, %c0_31] : memref<1x1x1x128xf32, #tpu.memory_space<vmem>>, vector<1x1x1x128xf32>
      %42 = vector.shape_cast %41 : vector<1x1x1x128xf32> to vector<1x128xf32>
      %43 = vector.shape_cast %40 : vector<1x128xf32> to vector<1x1x1x128xf32>
      tpu.vector_store %arg5[%c0_28, %c0_29, %c0_30, %c0_31], %43 {strides = array<i32>} : memref<1x1x1x128xf32, #tpu.memory_space<vmem>>, vector<1x1x1x128xf32>,
    } else {
    }
    return
  }
  func.func @transform_0(%arg0: i32, %arg1: i32, %arg2: i32) -> (i32, i32, i32, i32) {
    %c0_i32 = arith.constant 0 : i32
    %c0_i32_0 = arith.constant 0 : i32
    return %arg0, %arg1, %c0_i32, %arg2 : i32, i32, i32, i32
  }
  func.func @transform_1(%arg0: i32, %arg1: i32, %arg2: i32) -> (i32, i32, i32, i32) {
    %c0_i32 = arith.constant 0 : i32
    %c0_i32_0 = arith.constant 0 : i32
    %c0_i32_1 = arith.constant 0 : i32
    return %arg0, %arg1, %c0_i32, %c0_i32_0 : i32, i32, i32, i32
  }
  func.func @transform_2(%arg0: i32, %arg1: i32, %arg2: i32) -> (i32, i32, i32, i32) {
    %c0_i32 = arith.constant 0 : i32
    %c0_i32_0 = arith.constant 0 : i32
    %c0_i32_1 = arith.constant 0 : i32
    return %arg0, %arg1, %c0_i32, %c0_i32_0 : i32, i32, i32, i32
  }
}

module attributes {stable_mosaic.version = 11 : i64} {
  func.func @_gn_proj_in_kernel(%arg0: i32, %arg1: i32, %arg2: memref<1x4x64xf32, #tpu.memory_space<vmem>>, %arg3: memref<1x4x1xf32, #tpu.memory_space<vmem>>, %arg4: memref<1x4x1xf32, #tpu.memory_space<vmem>>, %arg5: memref<4x32xf32, #tpu.memory_space<vmem>>, %arg6: memref<1x32xf32, #tpu.memory_space<vmem>>, %arg7: memref<64x32xf32, #tpu.memory_space<vmem>>) attributes {dimension_semantics = [#tpu.dimension_semantics<parallel>, #tpu.dimension_semantics<parallel>], iteration_bounds = array<i64: 2, 1>, scalar_prefetch = 0 : i64, scratch_operands = 0 : i64, tpu.core_type = #tpu.core_type<tc>, window_params = [{transform_indices = @transform_0, window_bounds = array<i64: 1, 4, 64>}, {transform_indices = @transform_1, window_bounds = array<i64: 1, 4, 1>}, {transform_indices = @transform_2, window_bounds = array<i64: 1, 4, 1>}, {pipeline_mode = #tpu.pipeline_mode<synchronous>, transform_indices = @transform_3, window_bounds = array<i64: 4, 32>}, {pipeline_mode = #tpu.pipeline_mode<synchronous>, transform_indices = @transform_4, window_bounds = array<i64: 1, 32>}, {transform_indices = @transform_5, window_bounds = array<i64: 64, 32>}]} {
    %c0 = arith.constant 0 : index
    %c0_0 = arith.constant 0 : index
    %c0_1 = arith.constant 0 : index
    %0 = vector.load %arg2[%c0, %c0_0, %c0_1] : memref<1x4x64xf32, #tpu.memory_space<vmem>>, vector<1x4x64xf32>
    %1 = vector.shape_cast %0 : vector<1x4x64xf32> to vector<4x64xf32>
    %c0_2 = arith.constant 0 : index
    %c0_3 = arith.constant 0 : index
    %c0_4 = arith.constant 0 : index
    %2 = vector.load %arg3[%c0_2, %c0_3, %c0_4] : memref<1x4x1xf32, #tpu.memory_space<vmem>>, vector<1x4x1xf32>
    %3 = vector.shape_cast %2 : vector<1x4x1xf32> to vector<4x1xf32>
    %4 = vector.broadcast %3 : vector<4x1xf32> to vector<4x64xf32>
    %5 = arith.mulf %1, %4 : vector<4x64xf32>
    %c0_5 = arith.constant 0 : index
    %c0_6 = arith.constant 0 : index
    %c0_7 = arith.constant 0 : index
    %6 = vector.load %arg4[%c0_5, %c0_6, %c0_7] : memref<1x4x1xf32, #tpu.memory_space<vmem>>, vector<1x4x1xf32>
    %7 = vector.shape_cast %6 : vector<1x4x1xf32> to vector<4x1xf32>
    %8 = vector.broadcast %7 : vector<4x1xf32> to vector<4x64xf32>
    %9 = arith.addf %5, %8 : vector<4x64xf32>
    %10 = arith.truncf %9 : vector<4x64xf32> to vector<4x64xbf16>
    %c0_8 = arith.constant 0 : index
    %c0_9 = arith.constant 0 : index
    %11 = vector.load %arg5[%c0_8, %c0_9] : memref<4x32xf32, #tpu.memory_space<vmem>>, vector<4x32xf32>
    %12 = arith.truncf %11 : vector<4x32xf32> to vector<4x32xbf16>
    %cst = arith.constant dense<0.000000e+00> : vector<64x32xf32>
    %13 = tpu.matmul %10, %12, %cst {dimension_numbers = #tpu.dot_dimension_numbers<[0], [0], [1], [1], [0, 1, 1, 1], [], []>} : vector<4x64xbf16>, vector<4x32xbf16>, vector<64x32xf32> -> vector<64x32xf32>
    %c0_10 = arith.constant 0 : index
    %c0_11 = arith.constant 0 : index
    %14 = vector.load %arg6[%c0_10, %c0_11] : memref<1x32xf32, #tpu.memory_space<vmem>>, vector<1x32xf32>
    %15 = vector.broadcast %14 : vector<1x32xf32> to vector<64x32xf32>
    %16 = arith.addf %13, %15 : vector<64x32xf32>
    %c0_12 = arith.constant 0 : index
    %c0_13 = arith.constant 0 : index
    %17 = vector.load %arg7[%c0_12, %c0_13] : memref<64x32xf32, #tpu.memory_space<vmem>>, vector<64x32xf32>
    tpu.vector_store %arg7[%c0_12, %c0_13], %16 {strides = array<i32>} : memref<64x32xf32, #tpu.memory_space<vmem>>, vector<64x32xf32>,
    return
  }
  func.func @transform_0(%arg0: i32, %arg1: i32) -> (i32, i32, i32) {
    %c0_i32 = arith.constant 0 : i32
    %c0_i32_0 = arith.constant 0 : i32
    return %arg0, %c0_i32, %arg1 : i32, i32, i32
  }
  func.func @transform_1(%arg0: i32, %arg1: i32) -> (i32, i32, i32) {
    %c0_i32 = arith.constant 0 : i32
    %c0_i32_0 = arith.constant 0 : i32
    %c0_i32_1 = arith.constant 0 : i32
    return %arg0, %c0_i32, %c0_i32_0 : i32, i32, i32
  }
  func.func @transform_2(%arg0: i32, %arg1: i32) -> (i32, i32, i32) {
    %c0_i32 = arith.constant 0 : i32
    %c0_i32_0 = arith.constant 0 : i32
    %c0_i32_1 = arith.constant 0 : i32
    return %arg0, %c0_i32, %c0_i32_0 : i32, i32, i32
  }
  func.func @transform_3(%arg0: i32, %arg1: i32) -> (i32, i32) {
    %c0_i32 = arith.constant 0 : i32
    %c0_i32_0 = arith.constant 0 : i32
    %c0_i32_1 = arith.constant 0 : i32
    return %c0_i32, %c0_i32_0 : i32, i32
  }
  func.func @transform_4(%arg0: i32, %arg1: i32) -> (i32, i32) {
    %c0_i32 = arith.constant 0 : i32
    %c0_i32_0 = arith.constant 0 : i32
    %c0_i32_1 = arith.constant 0 : i32
    return %c0_i32, %c0_i32_0 : i32, i32
  }
  func.func @transform_5(%arg0: i32, %arg1: i32) -> (i32, i32) {
    %c1_i32 = arith.constant 1 : i32
    %0 = arith.muli %arg0, %c1_i32 : i32
    %1 = arith.addi %0, %arg1 : i32
    %c0_i32 = arith.constant 0 : i32
    %c0_i32_0 = arith.constant 0 : i32
    return %1, %c0_i32 : i32, i32
  }
}

module attributes {stable_mosaic.version = 11 : i64} {
  func.func @_ln_matmul_kernel(%arg0: i32, %arg1: i32, %arg2: memref<64x32xf32, #tpu.memory_space<vmem>>, %arg3: memref<1x32xf32, #tpu.memory_space<vmem>>, %arg4: memref<1x32xf32, #tpu.memory_space<vmem>>, %arg5: memref<32x96xf32, #tpu.memory_space<vmem>>, %arg6: memref<64x96xbf16, #tpu.memory_space<vmem>>, %arg7: memref<64x32xbf16, #tpu.memory_space<vmem>>) attributes {dimension_semantics = [#tpu.dimension_semantics<parallel>, #tpu.dimension_semantics<arbitrary>], iteration_bounds = array<i64: 2, 1>, scalar_prefetch = 0 : i64, scratch_operands = 1 : i64, tpu.core_type = #tpu.core_type<tc>, window_params = [{transform_indices = @transform_0, window_bounds = array<i64: 64, 32>}, {pipeline_mode = #tpu.pipeline_mode<synchronous>, transform_indices = @transform_1, window_bounds = array<i64: 1, 32>}, {pipeline_mode = #tpu.pipeline_mode<synchronous>, transform_indices = @transform_2, window_bounds = array<i64: 1, 32>}, {transform_indices = @transform_3, window_bounds = array<i64: 32, 96>}, {transform_indices = @transform_4, window_bounds = array<i64: 64, 96>}]} {
    %c0_i32 = arith.constant 0 : i32
    %0 = arith.cmpi eq, %arg1, %c0_i32 : i32
    %1 = arith.extui %0 : i1 to i32
    %c0_i32_0 = arith.constant 0 : i32
    %2 = arith.cmpi ne, %1, %c0_i32_0 : i32
    scf.if %2 {
      %c0_6 = arith.constant 0 : index
      %c0_7 = arith.constant 0 : index
      %9 = vector.load %arg2[%c0_6, %c0_7] : memref<64x32xf32, #tpu.memory_space<vmem>>, vector<64x32xf32>
      %cst_8 = arith.constant dense<0.000000e+00> : vector<64xf32>
      %10 = vector.multi_reduction <add>, %9, %cst_8 [1] : vector<64x32xf32> to vector<64xf32>
      %11 = vector.shape_cast %10 : vector<64xf32> to vector<64x1xf32>
      %cst_9 = arith.constant 3.200000e+01 : f32
      %12 = vector.broadcast %cst_9 : f32 to vector<64x1xf32>
      %13 = arith.divf %11, %12 : vector<64x1xf32>
      %14 = arith.mulf %9, %9 : vector<64x32xf32>
      %cst_10 = arith.constant dense<0.000000e+00> : vector<64xf32>
      %15 = vector.multi_reduction <add>, %14, %cst_10 [1] : vector<64x32xf32> to vector<64xf32>
      %16 = vector.shape_cast %15 : vector<64xf32> to vector<64x1xf32>
      %cst_11 = arith.constant 3.200000e+01 : f32
      %17 = vector.broadcast %cst_11 : f32 to vector<64x1xf32>
      %18 = arith.divf %16, %17 : vector<64x1xf32>
      %19 = vector.broadcast %13 : vector<64x1xf32> to vector<64x32xf32>
      %20 = arith.subf %9, %19 : vector<64x32xf32>
      %21 = arith.mulf %13, %13 : vector<64x1xf32>
      %22 = arith.subf %18, %21 : vector<64x1xf32>
      %cst_12 = arith.constant 9.99999974E-6 : f32
      %23 = vector.broadcast %cst_12 : f32 to vector<64x1xf32>
      %24 = arith.addf %22, %23 : vector<64x1xf32>
      %25 = math.rsqrt %24 : vector<64x1xf32>
      %26 = vector.broadcast %25 : vector<64x1xf32> to vector<64x32xf32>
      %27 = arith.mulf %20, %26 : vector<64x32xf32>
      %c0_13 = arith.constant 0 : index
      %c0_14 = arith.constant 0 : index
      %28 = vector.load %arg3[%c0_13, %c0_14] : memref<1x32xf32, #tpu.memory_space<vmem>>, vector<1x32xf32>
      %29 = vector.broadcast %28 : vector<1x32xf32> to vector<64x32xf32>
      %30 = arith.mulf %27, %29 : vector<64x32xf32>
      %c0_15 = arith.constant 0 : index
      %c0_16 = arith.constant 0 : index
      %31 = vector.load %arg4[%c0_15, %c0_16] : memref<1x32xf32, #tpu.memory_space<vmem>>, vector<1x32xf32>
      %32 = vector.broadcast %31 : vector<1x32xf32> to vector<64x32xf32>
      %33 = arith.addf %30, %32 : vector<64x32xf32>
      %34 = arith.truncf %33 : vector<64x32xf32> to vector<64x32xbf16>
      %c0_17 = arith.constant 0 : index
      %c0_18 = arith.constant 0 : index
      %35 = vector.load %arg7[%c0_17, %c0_18] : memref<64x32xbf16, #tpu.memory_space<vmem>>, vector<64x32xbf16>
      tpu.vector_store %arg7[%c0_17, %c0_18], %34 {strides = array<i32>} : memref<64x32xbf16, #tpu.memory_space<vmem>>, vector<64x32xbf16>,
    } else {
    }
    %c0 = arith.constant 0 : index
    %c0_1 = arith.constant 0 : index
    %3 = vector.load %arg7[%c0, %c0_1] : memref<64x32xbf16, #tpu.memory_space<vmem>>, vector<64x32xbf16>
    %c0_2 = arith.constant 0 : index
    %c0_3 = arith.constant 0 : index
    %4 = vector.load %arg5[%c0_2, %c0_3] : memref<32x96xf32, #tpu.memory_space<vmem>>, vector<32x96xf32>
    %5 = arith.truncf %4 : vector<32x96xf32> to vector<32x96xbf16>
    %cst = arith.constant dense<0.000000e+00> : vector<64x96xf32>
    %6 = tpu.matmul %3, %5, %cst {dimension_numbers = #tpu.dot_dimension_numbers<[1], [0], [0], [1], [0, 0, 1, 1], [], []>} : vector<64x32xbf16>, vector<32x96xbf16>, vector<64x96xf32> -> vector<64x96xf32>
    %7 = arith.truncf %6 : vector<64x96xf32> to vector<64x96xbf16>
    %c0_4 = arith.constant 0 : index
    %c0_5 = arith.constant 0 : index
    %8 = vector.load %arg6[%c0_4, %c0_5] : memref<64x96xbf16, #tpu.memory_space<vmem>>, vector<64x96xbf16>
    tpu.vector_store %arg6[%c0_4, %c0_5], %7 {strides = array<i32>} : memref<64x96xbf16, #tpu.memory_space<vmem>>, vector<64x96xbf16>,
    return
  }
  func.func @transform_0(%arg0: i32, %arg1: i32) -> (i32, i32) {
    %c0_i32 = arith.constant 0 : i32
    %c0_i32_0 = arith.constant 0 : i32
    return %arg0, %c0_i32 : i32, i32
  }
  func.func @transform_1(%arg0: i32, %arg1: i32) -> (i32, i32) {
    %c0_i32 = arith.constant 0 : i32
    %c0_i32_0 = arith.constant 0 : i32
    %c0_i32_1 = arith.constant 0 : i32
    return %c0_i32, %c0_i32_0 : i32, i32
  }
  func.func @transform_2(%arg0: i32, %arg1: i32) -> (i32, i32) {
    %c0_i32 = arith.constant 0 : i32
    %c0_i32_0 = arith.constant 0 : i32
    %c0_i32_1 = arith.constant 0 : i32
    return %c0_i32, %c0_i32_0 : i32, i32
  }
  func.func @transform_3(%arg0: i32, %arg1: i32) -> (i32, i32) {
    %c0_i32 = arith.constant 0 : i32
    %c0_i32_0 = arith.constant 0 : i32
    return %c0_i32, %arg1 : i32, i32
  }
  func.func @transform_4(%arg0: i32, %arg1: i32) -> (i32, i32) {
    %c0_i32 = arith.constant 0 : i32
    return %arg0, %arg1 : i32, i32
  }
}

module attributes {stable_mosaic.version = 11 : i64} {
  func.func @_flash_attn_kernel(%arg0: i32, %arg1: i32, %arg2: i32, %arg3: memref<64x96xbf16, #tpu.memory_space<vmem>>, %arg4: memref<64x96xbf16, #tpu.memory_space<vmem>>, %arg5: memref<64x32xbf16, #tpu.memory_space<vmem>>, %arg6: memref<2x64x1xf32, #tpu.memory_space<vmem>>, %arg7: memref<2x64x1xf32, #tpu.memory_space<vmem>>, %arg8: memref<2x64x16xf32, #tpu.memory_space<vmem>>) attributes {dimension_semantics = [#tpu.dimension_semantics<parallel>, #tpu.dimension_semantics<parallel>, #tpu.dimension_semantics<arbitrary>], iteration_bounds = array<i64: 2, 1, 1>, scalar_prefetch = 0 : i64, scratch_operands = 3 : i64, tpu.core_type = #tpu.core_type<tc>, window_params = [{transform_indices = @transform_0, window_bounds = array<i64: 64, 96>}, {transform_indices = @transform_1, window_bounds = array<i64: 64, 96>}, {transform_indices = @transform_2, window_bounds = array<i64: 64, 32>}]} {
    %c0_i32 = arith.constant 0 : i32
    %0 = arith.cmpi eq, %arg2, %c0_i32 : i32
    %1 = arith.extui %0 : i1 to i32
    %c0_i32_0 = arith.constant 0 : i32
    %2 = arith.cmpi ne, %1, %c0_i32_0 : i32
    scf.if %2 {
      %cst_53 = arith.constant 0xFF800000 : f32
      %82 = vector.broadcast %cst_53 : f32 to vector<2x64x1xf32>
      %c0_54 = arith.constant 0 : index
      %c0_55 = arith.constant 0 : index
      %c0_56 = arith.constant 0 : index
      %83 = vector.load %arg6[%c0_54, %c0_55, %c0_56] : memref<2x64x1xf32, #tpu.memory_space<vmem>>, vector<2x64x1xf32>
      tpu.vector_store %arg6[%c0_54, %c0_55, %c0_56], %82 {strides = array<i32>} : memref<2x64x1xf32, #tpu.memory_space<vmem>>, vector<2x64x1xf32>,
      %cst_57 = arith.constant 0.000000e+00 : f32
      %84 = vector.broadcast %cst_57 : f32 to vector<2x64x1xf32>
      %c0_58 = arith.constant 0 : index
      %c0_59 = arith.constant 0 : index
      %c0_60 = arith.constant 0 : index
      %85 = vector.load %arg7[%c0_58, %c0_59, %c0_60] : memref<2x64x1xf32, #tpu.memory_space<vmem>>, vector<2x64x1xf32>
      tpu.vector_store %arg7[%c0_58, %c0_59, %c0_60], %84 {strides = array<i32>} : memref<2x64x1xf32, #tpu.memory_space<vmem>>, vector<2x64x1xf32>,
      %cst_61 = arith.constant 0.000000e+00 : f32
      %86 = vector.broadcast %cst_61 : f32 to vector<2x64x16xf32>
      %c0_62 = arith.constant 0 : index
      %c0_63 = arith.constant 0 : index
      %c0_64 = arith.constant 0 : index
      %87 = vector.load %arg8[%c0_62, %c0_63, %c0_64] : memref<2x64x16xf32, #tpu.memory_space<vmem>>, vector<2x64x16xf32>
      tpu.vector_store %arg8[%c0_62, %c0_63, %c0_64], %86 {strides = array<i32>} : memref<2x64x16xf32, #tpu.memory_space<vmem>>, vector<2x64x16xf32>,
    } else {
    }
    %c0 = arith.constant 0 : index
    %c0_1 = arith.constant 0 : index
    %3 = vector.load %arg3[%c0, %c0_1] : memref<64x96xbf16, #tpu.memory_space<vmem>>, vector<64x16xbf16>
    %cst = arith.constant 2.500000e-01 : bf16
    %4 = vector.broadcast %cst : bf16 to vector<64x16xbf16>
    %5 = arith.mulf %3, %4 : vector<64x16xbf16>
    %c0_2 = arith.constant 0 : index
    %c32 = arith.constant 32 : index
    %6 = vector.load %arg4[%c0_2, %c32] : memref<64x96xbf16, #tpu.memory_space<vmem>>, vector<64x16xbf16>
    %c0_3 = arith.constant 0 : index
    %c64 = arith.constant 64 : index
    %7 = vector.load %arg4[%c0_3, %c64] : memref<64x96xbf16, #tpu.memory_space<vmem>>, vector<64x16xbf16>
    %cst_4 = arith.constant dense<0.000000e+00> : vector<64x64xf32>
    %8 = tpu.matmul %5, %6, %cst_4 {dimension_numbers = #tpu.dot_dimension_numbers<[1], [1], [0], [0], [0, 0, 1, 0], [], []>} : vector<64x16xbf16>, vector<64x16xbf16>, vector<64x64xf32> -> vector<64x64xf32>
    %c0_5 = arith.constant 0 : index
    %c0_6 = arith.constant 0 : index
    %c0_7 = arith.constant 0 : index
    %9 = vector.load %arg6[%c0_5, %c0_6, %c0_7] : memref<2x64x1xf32, #tpu.memory_space<vmem>>, vector<1x64x1xf32>
    %10 = vector.shape_cast %9 : vector<1x64x1xf32> to vector<64x1xf32>
    %cst_8 = arith.constant dense<0xFF800000> : vector<64xf32>
    %11 = vector.multi_reduction <maximumf>, %8, %cst_8 [1] : vector<64x64xf32> to vector<64xf32>
    %12 = vector.shape_cast %11 : vector<64xf32> to vector<64x1xf32>
    %13 = arith.maximumf %10, %12 : vector<64x1xf32>
    %14 = arith.subf %10, %13 : vector<64x1xf32>
    %15 = math.exp %14 : vector<64x1xf32>
    %16 = vector.broadcast %13 : vector<64x1xf32> to vector<64x64xf32>
    %17 = arith.subf %8, %16 : vector<64x64xf32>
    %18 = math.exp %17 : vector<64x64xf32>
    %c0_9 = arith.constant 0 : index
    %c0_10 = arith.constant 0 : index
    %c0_11 = arith.constant 0 : index
    %19 = vector.load %arg7[%c0_9, %c0_10, %c0_11] : memref<2x64x1xf32, #tpu.memory_space<vmem>>, vector<1x64x1xf32>
    %20 = vector.shape_cast %19 : vector<1x64x1xf32> to vector<64x1xf32>
    %21 = arith.mulf %15, %20 : vector<64x1xf32>
    %cst_12 = arith.constant dense<0.000000e+00> : vector<64xf32>
    %22 = vector.multi_reduction <add>, %18, %cst_12 [1] : vector<64x64xf32> to vector<64xf32>
    %23 = vector.shape_cast %22 : vector<64xf32> to vector<64x1xf32>
    %24 = arith.addf %21, %23 : vector<64x1xf32>
    %c0_13 = arith.constant 0 : index
    %c0_14 = arith.constant 0 : index
    %c0_15 = arith.constant 0 : index
    %25 = vector.load %arg7[%c0_13, %c0_14, %c0_15] : memref<2x64x1xf32, #tpu.memory_space<vmem>>, vector<1x64x1xf32>
    %26 = vector.shape_cast %25 : vector<1x64x1xf32> to vector<64x1xf32>
    %27 = vector.shape_cast %24 : vector<64x1xf32> to vector<1x64x1xf32>
    tpu.vector_store %arg7[%c0_13, %c0_14, %c0_15], %27 {strides = array<i32>} : memref<2x64x1xf32, #tpu.memory_space<vmem>>, vector<1x64x1xf32>,
    %c0_16 = arith.constant 0 : index
    %c0_17 = arith.constant 0 : index
    %c0_18 = arith.constant 0 : index
    %28 = vector.load %arg8[%c0_16, %c0_17, %c0_18] : memref<2x64x16xf32, #tpu.memory_space<vmem>>, vector<1x64x16xf32>
    %29 = vector.shape_cast %28 : vector<1x64x16xf32> to vector<64x16xf32>
    %30 = vector.broadcast %15 : vector<64x1xf32> to vector<64x16xf32>
    %31 = arith.mulf %30, %29 : vector<64x16xf32>
    %32 = arith.truncf %18 : vector<64x64xf32> to vector<64x64xbf16>
    %cst_19 = arith.constant dense<0.000000e+00> : vector<64x16xf32>
    %33 = tpu.matmul %32, %7, %cst_19 {dimension_numbers = #tpu.dot_dimension_numbers<[1], [0], [0], [1], [0, 0, 1, 1], [], []>} : vector<64x64xbf16>, vector<64x16xbf16>, vector<64x16xf32> -> vector<64x16xf32>
    %34 = arith.addf %31, %33 : vector<64x16xf32>
    %c0_20 = arith.constant 0 : index
    %c0_21 = arith.constant 0 : index
    %c0_22 = arith.constant 0 : index
    %35 = vector.load %arg8[%c0_20, %c0_21, %c0_22] : memref<2x64x16xf32, #tpu.memory_space<vmem>>, vector<1x64x16xf32>
    %36 = vector.shape_cast %35 : vector<1x64x16xf32> to vector<64x16xf32>
    %37 = vector.shape_cast %34 : vector<64x16xf32> to vector<1x64x16xf32>
    tpu.vector_store %arg8[%c0_20, %c0_21, %c0_22], %37 {strides = array<i32>} : memref<2x64x16xf32, #tpu.memory_space<vmem>>, vector<1x64x16xf32>,
    %c0_23 = arith.constant 0 : index
    %c0_24 = arith.constant 0 : index
    %c0_25 = arith.constant 0 : index
    %38 = vector.load %arg6[%c0_23, %c0_24, %c0_25] : memref<2x64x1xf32, #tpu.memory_space<vmem>>, vector<1x64x1xf32>
    %39 = vector.shape_cast %38 : vector<1x64x1xf32> to vector<64x1xf32>
    %40 = vector.shape_cast %13 : vector<64x1xf32> to vector<1x64x1xf32>
    tpu.vector_store %arg6[%c0_23, %c0_24, %c0_25], %40 {strides = array<i32>} : memref<2x64x1xf32, #tpu.memory_space<vmem>>, vector<1x64x1xf32>,
    %c0_26 = arith.constant 0 : index
    %c16 = arith.constant 16 : index
    %41 = vector.load %arg3[%c0_26, %c16] : memref<64x96xbf16, #tpu.memory_space<vmem>>, vector<64x16xbf16>
    %cst_27 = arith.constant 2.500000e-01 : bf16
    %42 = vector.broadcast %cst_27 : bf16 to vector<64x16xbf16>
    %43 = arith.mulf %41, %42 : vector<64x16xbf16>
    %c0_28 = arith.constant 0 : index
    %c48 = arith.constant 48 : index
    %44 = vector.load %arg4[%c0_28, %c48] : memref<64x96xbf16, #tpu.memory_space<vmem>>, vector<64x16xbf16>
    %c0_29 = arith.constant 0 : index
    %c80 = arith.constant 80 : index
    %45 = vector.load %arg4[%c0_29, %c80] : memref<64x96xbf16, #tpu.memory_space<vmem>>, vector<64x16xbf16>
    %cst_30 = arith.constant dense<0.000000e+00> : vector<64x64xf32>
    %46 = tpu.matmul %43, %44, %cst_30 {dimension_numbers = #tpu.dot_dimension_numbers<[1], [1], [0], [0], [0, 0, 1, 0], [], []>} : vector<64x16xbf16>, vector<64x16xbf16>, vector<64x64xf32> -> vector<64x64xf32>
    %c1 = arith.constant 1 : index
    %c0_31 = arith.constant 0 : index
    %c0_32 = arith.constant 0 : index
    %47 = vector.load %arg6[%c1, %c0_31, %c0_32] : memref<2x64x1xf32, #tpu.memory_space<vmem>>, vector<1x64x1xf32>
    %48 = vector.shape_cast %47 : vector<1x64x1xf32> to vector<64x1xf32>
    %cst_33 = arith.constant dense<0xFF800000> : vector<64xf32>
    %49 = vector.multi_reduction <maximumf>, %46, %cst_33 [1] : vector<64x64xf32> to vector<64xf32>
    %50 = vector.shape_cast %49 : vector<64xf32> to vector<64x1xf32>
    %51 = arith.maximumf %48, %50 : vector<64x1xf32>
    %52 = arith.subf %48, %51 : vector<64x1xf32>
    %53 = math.exp %52 : vector<64x1xf32>
    %54 = vector.broadcast %51 : vector<64x1xf32> to vector<64x64xf32>
    %55 = arith.subf %46, %54 : vector<64x64xf32>
    %56 = math.exp %55 : vector<64x64xf32>
    %c1_34 = arith.constant 1 : index
    %c0_35 = arith.constant 0 : index
    %c0_36 = arith.constant 0 : index
    %57 = vector.load %arg7[%c1_34, %c0_35, %c0_36] : memref<2x64x1xf32, #tpu.memory_space<vmem>>, vector<1x64x1xf32>
    %58 = vector.shape_cast %57 : vector<1x64x1xf32> to vector<64x1xf32>
    %59 = arith.mulf %53, %58 : vector<64x1xf32>
    %cst_37 = arith.constant dense<0.000000e+00> : vector<64xf32>
    %60 = vector.multi_reduction <add>, %56, %cst_37 [1] : vector<64x64xf32> to vector<64xf32>
    %61 = vector.shape_cast %60 : vector<64xf32> to vector<64x1xf32>
    %62 = arith.addf %59, %61 : vector<64x1xf32>
    %c1_38 = arith.constant 1 : index
    %c0_39 = arith.constant 0 : index
    %c0_40 = arith.constant 0 : index
    %63 = vector.load %arg7[%c1_38, %c0_39, %c0_40] : memref<2x64x1xf32, #tpu.memory_space<vmem>>, vector<1x64x1xf32>
    %64 = vector.shape_cast %63 : vector<1x64x1xf32> to vector<64x1xf32>
    %65 = vector.shape_cast %62 : vector<64x1xf32> to vector<1x64x1xf32>
    tpu.vector_store %arg7[%c1_38, %c0_39, %c0_40], %65 {strides = array<i32>} : memref<2x64x1xf32, #tpu.memory_space<vmem>>, vector<1x64x1xf32>,
    %c1_41 = arith.constant 1 : index
    %c0_42 = arith.constant 0 : index
    %c0_43 = arith.constant 0 : index
    %66 = vector.load %arg8[%c1_41, %c0_42, %c0_43] : memref<2x64x16xf32, #tpu.memory_space<vmem>>, vector<1x64x16xf32>
    %67 = vector.shape_cast %66 : vector<1x64x16xf32> to vector<64x16xf32>
    %68 = vector.broadcast %53 : vector<64x1xf32> to vector<64x16xf32>
    %69 = arith.mulf %68, %67 : vector<64x16xf32>
    %70 = arith.truncf %56 : vector<64x64xf32> to vector<64x64xbf16>
    %cst_44 = arith.constant dense<0.000000e+00> : vector<64x16xf32>
    %71 = tpu.matmul %70, %45, %cst_44 {dimension_numbers = #tpu.dot_dimension_numbers<[1], [0], [0], [1], [0, 0, 1, 1], [], []>} : vector<64x64xbf16>, vector<64x16xbf16>, vector<64x16xf32> -> vector<64x16xf32>
    %72 = arith.addf %69, %71 : vector<64x16xf32>
    %c1_45 = arith.constant 1 : index
    %c0_46 = arith.constant 0 : index
    %c0_47 = arith.constant 0 : index
    %73 = vector.load %arg8[%c1_45, %c0_46, %c0_47] : memref<2x64x16xf32, #tpu.memory_space<vmem>>, vector<1x64x16xf32>
    %74 = vector.shape_cast %73 : vector<1x64x16xf32> to vector<64x16xf32>
    %75 = vector.shape_cast %72 : vector<64x16xf32> to vector<1x64x16xf32>
    tpu.vector_store %arg8[%c1_45, %c0_46, %c0_47], %75 {strides = array<i32>} : memref<2x64x16xf32, #tpu.memory_space<vmem>>, vector<1x64x16xf32>,
    %c1_48 = arith.constant 1 : index
    %c0_49 = arith.constant 0 : index
    %c0_50 = arith.constant 0 : index
    %76 = vector.load %arg6[%c1_48, %c0_49, %c0_50] : memref<2x64x1xf32, #tpu.memory_space<vmem>>, vector<1x64x1xf32>
    %77 = vector.shape_cast %76 : vector<1x64x1xf32> to vector<64x1xf32>
    %78 = vector.shape_cast %51 : vector<64x1xf32> to vector<1x64x1xf32>
    tpu.vector_store %arg6[%c1_48, %c0_49, %c0_50], %78 {strides = array<i32>} : memref<2x64x1xf32, #tpu.memory_space<vmem>>, vector<1x64x1xf32>,
    %c0_i32_51 = arith.constant 0 : i32
    %79 = arith.cmpi eq, %arg2, %c0_i32_51 : i32
    %80 = arith.extui %79 : i1 to i32
    %c0_i32_52 = arith.constant 0 : i32
    %81 = arith.cmpi ne, %80, %c0_i32_52 : i32
    scf.if %81 {
      %c0_53 = arith.constant 0 : index
      %c0_54 = arith.constant 0 : index
      %c0_55 = arith.constant 0 : index
      %82 = vector.load %arg7[%c0_53, %c0_54, %c0_55] : memref<2x64x1xf32, #tpu.memory_space<vmem>>, vector<1x64x1xf32>
      %83 = vector.shape_cast %82 : vector<1x64x1xf32> to vector<64x1xf32>
      %84 = tpu.reciprocal %83 {approx = true} : vector<64x1xf32> -> vector<64x1xf32>
      %c0_56 = arith.constant 0 : index
      %c0_57 = arith.constant 0 : index
      %c0_58 = arith.constant 0 : index
      %85 = vector.load %arg8[%c0_56, %c0_57, %c0_58] : memref<2x64x16xf32, #tpu.memory_space<vmem>>, vector<1x64x16xf32>
      %86 = vector.shape_cast %85 : vector<1x64x16xf32> to vector<64x16xf32>
      %87 = vector.broadcast %84 : vector<64x1xf32> to vector<64x16xf32>
      %88 = arith.mulf %86, %87 : vector<64x16xf32>
      %89 = arith.truncf %88 : vector<64x16xf32> to vector<64x16xbf16>
      %c1_59 = arith.constant 1 : index
      %c0_60 = arith.constant 0 : index
      %c0_61 = arith.constant 0 : index
      %90 = vector.load %arg7[%c1_59, %c0_60, %c0_61] : memref<2x64x1xf32, #tpu.memory_space<vmem>>, vector<1x64x1xf32>
      %91 = vector.shape_cast %90 : vector<1x64x1xf32> to vector<64x1xf32>
      %92 = tpu.reciprocal %91 {approx = true} : vector<64x1xf32> -> vector<64x1xf32>
      %c1_62 = arith.constant 1 : index
      %c0_63 = arith.constant 0 : index
      %c0_64 = arith.constant 0 : index
      %93 = vector.load %arg8[%c1_62, %c0_63, %c0_64] : memref<2x64x16xf32, #tpu.memory_space<vmem>>, vector<1x64x16xf32>
      %94 = vector.shape_cast %93 : vector<1x64x16xf32> to vector<64x16xf32>
      %95 = vector.broadcast %92 : vector<64x1xf32> to vector<64x16xf32>
      %96 = arith.mulf %94, %95 : vector<64x16xf32>
      %97 = arith.truncf %96 : vector<64x16xf32> to vector<64x16xbf16>
      %98 = tpu.concatenate %89, %97 in 1 : vector<64x16xbf16>, vector<64x16xbf16> -> vector<64x32xbf16>
      %c0_65 = arith.constant 0 : index
      %c0_66 = arith.constant 0 : index
      %99 = vector.load %arg5[%c0_65, %c0_66] : memref<64x32xbf16, #tpu.memory_space<vmem>>, vector<64x32xbf16>
      tpu.vector_store %arg5[%c0_65, %c0_66], %98 {strides = array<i32>} : memref<64x32xbf16, #tpu.memory_space<vmem>>, vector<64x32xbf16>,
    } else {
    }
    return
  }
  func.func @transform_0(%arg0: i32, %arg1: i32, %arg2: i32) -> (i32, i32) {
    %c1_i32 = arith.constant 1 : i32
    %0 = arith.muli %arg0, %c1_i32 : i32
    %1 = arith.addi %0, %arg1 : i32
    %c0_i32 = arith.constant 0 : i32
    %c0_i32_0 = arith.constant 0 : i32
    return %1, %c0_i32 : i32, i32
  }
  func.func @transform_1(%arg0: i32, %arg1: i32, %arg2: i32) -> (i32, i32) {
    %c1_i32 = arith.constant 1 : i32
    %0 = arith.muli %arg0, %c1_i32 : i32
    %1 = arith.addi %0, %arg2 : i32
    %c0_i32 = arith.constant 0 : i32
    %c0_i32_0 = arith.constant 0 : i32
    return %1, %c0_i32 : i32, i32
  }
  func.func @transform_2(%arg0: i32, %arg1: i32, %arg2: i32) -> (i32, i32) {
    %c1_i32 = arith.constant 1 : i32
    %0 = arith.muli %arg0, %c1_i32 : i32
    %1 = arith.addi %0, %arg1 : i32
    %c0_i32 = arith.constant 0 : i32
    %c0_i32_0 = arith.constant 0 : i32
    return %1, %c0_i32 : i32, i32
  }
}

module attributes {stable_mosaic.version = 11 : i64} {
  func.func @_linear_kernel(%arg0: i32, %arg1: i32, %arg2: i32, %arg3: memref<64x32xbf16, #tpu.memory_space<vmem>>, %arg4: memref<32x32xf32, #tpu.memory_space<vmem>>, %arg5: memref<1x32xf32, #tpu.memory_space<vmem>>, %arg6: memref<64x32xf32, #tpu.memory_space<vmem>>, %arg7: memref<64x32xf32, #tpu.memory_space<vmem>>, %arg8: memref<64x32xf32, #tpu.memory_space<vmem>>) attributes {dimension_semantics = [#tpu.dimension_semantics<parallel>, #tpu.dimension_semantics<parallel>, #tpu.dimension_semantics<arbitrary>], iteration_bounds = array<i64: 2, 1, 1>, scalar_prefetch = 0 : i64, scratch_operands = 1 : i64, tpu.core_type = #tpu.core_type<tc>, window_params = [{transform_indices = @transform_0, window_bounds = array<i64: 64, 32>}, {transform_indices = @transform_1, window_bounds = array<i64: 32, 32>}, {transform_indices = @transform_2, window_bounds = array<i64: 1, 32>}, {transform_indices = @transform_3, window_bounds = array<i64: 64, 32>}, {transform_indices = @transform_4, window_bounds = array<i64: 64, 32>}]} {
    %c0_i32 = arith.constant 0 : i32
    %0 = arith.cmpi eq, %arg2, %c0_i32 : i32
    %1 = arith.extui %0 : i1 to i32
    %c0_i32_0 = arith.constant 0 : i32
    %2 = arith.cmpi ne, %1, %c0_i32_0 : i32
    scf.if %2 {
      %cst_10 = arith.constant 0.000000e+00 : f32
      %13 = vector.broadcast %cst_10 : f32 to vector<64x32xf32>
      %c0_11 = arith.constant 0 : index
      %c0_12 = arith.constant 0 : index
      %14 = vector.load %arg8[%c0_11, %c0_12] : memref<64x32xf32, #tpu.memory_space<vmem>>, vector<64x32xf32>
      tpu.vector_store %arg8[%c0_11, %c0_12], %13 {strides = array<i32>} : memref<64x32xf32, #tpu.memory_space<vmem>>, vector<64x32xf32>,
    } else {
    }
    %c0 = arith.constant 0 : index
    %c0_1 = arith.constant 0 : index
    %3 = vector.load %arg8[%c0, %c0_1] : memref<64x32xf32, #tpu.memory_space<vmem>>, vector<64x32xf32>
    %c0_2 = arith.constant 0 : index
    %c0_3 = arith.constant 0 : index
    %4 = vector.load %arg3[%c0_2, %c0_3] : memref<64x32xbf16, #tpu.memory_space<vmem>>, vector<64x32xbf16>
    %c0_4 = arith.constant 0 : index
    %c0_5 = arith.constant 0 : index
    %5 = vector.load %arg4[%c0_4, %c0_5] : memref<32x32xf32, #tpu.memory_space<vmem>>, vector<32x32xf32>
    %6 = arith.truncf %5 : vector<32x32xf32> to vector<32x32xbf16>
    %cst = arith.constant dense<0.000000e+00> : vector<64x32xf32>
    %7 = tpu.matmul %4, %6, %cst {dimension_numbers = #tpu.dot_dimension_numbers<[1], [0], [0], [1], [0, 0, 1, 1], [], []>} : vector<64x32xbf16>, vector<32x32xbf16>, vector<64x32xf32> -> vector<64x32xf32>
    %8 = arith.addf %3, %7 : vector<64x32xf32>
    %c0_6 = arith.constant 0 : index
    %c0_7 = arith.constant 0 : index
    %9 = vector.load %arg8[%c0_6, %c0_7] : memref<64x32xf32, #tpu.memory_space<vmem>>, vector<64x32xf32>
    tpu.vector_store %arg8[%c0_6, %c0_7], %8 {strides = array<i32>} : memref<64x32xf32, #tpu.memory_space<vmem>>, vector<64x32xf32>,
    %c0_i32_8 = arith.constant 0 : i32
    %10 = arith.cmpi eq, %arg2, %c0_i32_8 : i32
    %11 = arith.extui %10 : i1 to i32
    %c0_i32_9 = arith.constant 0 : i32
    %12 = arith.cmpi ne, %11, %c0_i32_9 : i32
    scf.if %12 {
      %c0_10 = arith.constant 0 : index
      %c0_11 = arith.constant 0 : index
      %13 = vector.load %arg8[%c0_10, %c0_11] : memref<64x32xf32, #tpu.memory_space<vmem>>, vector<64x32xf32>
      %c0_12 = arith.constant 0 : index
      %c0_13 = arith.constant 0 : index
      %14 = vector.load %arg5[%c0_12, %c0_13] : memref<1x32xf32, #tpu.memory_space<vmem>>, vector<1x32xf32>
      %15 = vector.broadcast %14 : vector<1x32xf32> to vector<64x32xf32>
      %16 = arith.addf %13, %15 : vector<64x32xf32>
      %c0_14 = arith.constant 0 : index
      %c0_15 = arith.constant 0 : index
      %17 = vector.load %arg6[%c0_14, %c0_15] : memref<64x32xf32, #tpu.memory_space<vmem>>, vector<64x32xf32>
      %18 = arith.addf %16, %17 : vector<64x32xf32>
      %c0_16 = arith.constant 0 : index
      %c0_17 = arith.constant 0 : index
      %19 = vector.load %arg7[%c0_16, %c0_17] : memref<64x32xf32, #tpu.memory_space<vmem>>, vector<64x32xf32>
      tpu.vector_store %arg7[%c0_16, %c0_17], %18 {strides = array<i32>} : memref<64x32xf32, #tpu.memory_space<vmem>>, vector<64x32xf32>,
    } else {
    }
    return
  }
  func.func @transform_0(%arg0: i32, %arg1: i32, %arg2: i32) -> (i32, i32) {
    %c0_i32 = arith.constant 0 : i32
    return %arg0, %arg2 : i32, i32
  }
  func.func @transform_1(%arg0: i32, %arg1: i32, %arg2: i32) -> (i32, i32) {
    %c0_i32 = arith.constant 0 : i32
    return %arg2, %arg1 : i32, i32
  }
  func.func @transform_2(%arg0: i32, %arg1: i32, %arg2: i32) -> (i32, i32) {
    %c0_i32 = arith.constant 0 : i32
    %c0_i32_0 = arith.constant 0 : i32
    return %c0_i32, %arg1 : i32, i32
  }
  func.func @transform_3(%arg0: i32, %arg1: i32, %arg2: i32) -> (i32, i32) {
    %c0_i32 = arith.constant 0 : i32
    return %arg0, %arg1 : i32, i32
  }
  func.func @transform_4(%arg0: i32, %arg1: i32, %arg2: i32) -> (i32, i32) {
    %c0_i32 = arith.constant 0 : i32
    return %arg0, %arg1 : i32, i32
  }
}

module attributes {stable_mosaic.version = 11 : i64} {
  func.func @_ln_geglu_kernel(%arg0: i32, %arg1: i32, %arg2: memref<64x32xf32, #tpu.memory_space<vmem>>, %arg3: memref<1x32xf32, #tpu.memory_space<vmem>>, %arg4: memref<1x32xf32, #tpu.memory_space<vmem>>, %arg5: memref<32x128xf32, #tpu.memory_space<vmem>>, %arg6: memref<1x128xf32, #tpu.memory_space<vmem>>, %arg7: memref<32x128xf32, #tpu.memory_space<vmem>>, %arg8: memref<1x128xf32, #tpu.memory_space<vmem>>, %arg9: memref<64x128xbf16, #tpu.memory_space<vmem>>, %arg10: memref<64x32xbf16, #tpu.memory_space<vmem>>) attributes {dimension_semantics = [#tpu.dimension_semantics<parallel>, #tpu.dimension_semantics<arbitrary>], iteration_bounds = array<i64: 2, 1>, scalar_prefetch = 0 : i64, scratch_operands = 1 : i64, tpu.core_type = #tpu.core_type<tc>, window_params = [{transform_indices = @transform_0, window_bounds = array<i64: 64, 32>}, {pipeline_mode = #tpu.pipeline_mode<synchronous>, transform_indices = @transform_1, window_bounds = array<i64: 1, 32>}, {pipeline_mode = #tpu.pipeline_mode<synchronous>, transform_indices = @transform_2, window_bounds = array<i64: 1, 32>}, {transform_indices = @transform_3, window_bounds = array<i64: 32, 128>}, {transform_indices = @transform_4, window_bounds = array<i64: 1, 128>}, {transform_indices = @transform_5, window_bounds = array<i64: 32, 128>}, {transform_indices = @transform_6, window_bounds = array<i64: 1, 128>}, {transform_indices = @transform_7, window_bounds = array<i64: 64, 128>}]} {
    %c0_i32 = arith.constant 0 : i32
    %0 = arith.cmpi eq, %arg1, %c0_i32 : i32
    %1 = arith.extui %0 : i1 to i32
    %c0_i32_0 = arith.constant 0 : i32
    %2 = arith.cmpi ne, %1, %c0_i32_0 : i32
    scf.if %2 {
      %c0_16 = arith.constant 0 : index
      %c0_17 = arith.constant 0 : index
      %27 = vector.load %arg2[%c0_16, %c0_17] : memref<64x32xf32, #tpu.memory_space<vmem>>, vector<64x32xf32>
      %cst_18 = arith.constant dense<0.000000e+00> : vector<64xf32>
      %28 = vector.multi_reduction <add>, %27, %cst_18 [1] : vector<64x32xf32> to vector<64xf32>
      %29 = vector.shape_cast %28 : vector<64xf32> to vector<64x1xf32>
      %cst_19 = arith.constant 3.200000e+01 : f32
      %30 = vector.broadcast %cst_19 : f32 to vector<64x1xf32>
      %31 = arith.divf %29, %30 : vector<64x1xf32>
      %32 = arith.mulf %27, %27 : vector<64x32xf32>
      %cst_20 = arith.constant dense<0.000000e+00> : vector<64xf32>
      %33 = vector.multi_reduction <add>, %32, %cst_20 [1] : vector<64x32xf32> to vector<64xf32>
      %34 = vector.shape_cast %33 : vector<64xf32> to vector<64x1xf32>
      %cst_21 = arith.constant 3.200000e+01 : f32
      %35 = vector.broadcast %cst_21 : f32 to vector<64x1xf32>
      %36 = arith.divf %34, %35 : vector<64x1xf32>
      %37 = vector.broadcast %31 : vector<64x1xf32> to vector<64x32xf32>
      %38 = arith.subf %27, %37 : vector<64x32xf32>
      %39 = arith.mulf %31, %31 : vector<64x1xf32>
      %40 = arith.subf %36, %39 : vector<64x1xf32>
      %cst_22 = arith.constant 9.99999974E-6 : f32
      %41 = vector.broadcast %cst_22 : f32 to vector<64x1xf32>
      %42 = arith.addf %40, %41 : vector<64x1xf32>
      %43 = math.rsqrt %42 : vector<64x1xf32>
      %44 = vector.broadcast %43 : vector<64x1xf32> to vector<64x32xf32>
      %45 = arith.mulf %38, %44 : vector<64x32xf32>
      %c0_23 = arith.constant 0 : index
      %c0_24 = arith.constant 0 : index
      %46 = vector.load %arg3[%c0_23, %c0_24] : memref<1x32xf32, #tpu.memory_space<vmem>>, vector<1x32xf32>
      %47 = vector.broadcast %46 : vector<1x32xf32> to vector<64x32xf32>
      %48 = arith.mulf %45, %47 : vector<64x32xf32>
      %c0_25 = arith.constant 0 : index
      %c0_26 = arith.constant 0 : index
      %49 = vector.load %arg4[%c0_25, %c0_26] : memref<1x32xf32, #tpu.memory_space<vmem>>, vector<1x32xf32>
      %50 = vector.broadcast %49 : vector<1x32xf32> to vector<64x32xf32>
      %51 = arith.addf %48, %50 : vector<64x32xf32>
      %52 = arith.truncf %51 : vector<64x32xf32> to vector<64x32xbf16>
      %c0_27 = arith.constant 0 : index
      %c0_28 = arith.constant 0 : index
      %53 = vector.load %arg10[%c0_27, %c0_28] : memref<64x32xbf16, #tpu.memory_space<vmem>>, vector<64x32xbf16>
      tpu.vector_store %arg10[%c0_27, %c0_28], %52 {strides = array<i32>} : memref<64x32xbf16, #tpu.memory_space<vmem>>, vector<64x32xbf16>,
    } else {
    }
    %c0 = arith.constant 0 : index
    %c0_1 = arith.constant 0 : index
    %3 = vector.load %arg10[%c0, %c0_1] : memref<64x32xbf16, #tpu.memory_space<vmem>>, vector<64x32xbf16>
    %c0_2 = arith.constant 0 : index
    %c0_3 = arith.constant 0 : index
    %4 = vector.load %arg5[%c0_2, %c0_3] : memref<32x128xf32, #tpu.memory_space<vmem>>, vector<32x128xf32>
    %5 = arith.truncf %4 : vector<32x128xf32> to vector<32x128xbf16>
    %cst = arith.constant dense<0.000000e+00> : vector<64x128xf32>
    %6 = tpu.matmul %3, %5, %cst {dimension_numbers = #tpu.dot_dimension_numbers<[1], [0], [0], [1], [0, 0, 1, 1], [], []>} : vector<64x32xbf16>, vector<32x128xbf16>, vector<64x128xf32> -> vector<64x128xf32>
    %c0_4 = arith.constant 0 : index
    %c0_5 = arith.constant 0 : index
    %7 = vector.load %arg6[%c0_4, %c0_5] : memref<1x128xf32, #tpu.memory_space<vmem>>, vector<1x128xf32>
    %8 = vector.broadcast %7 : vector<1x128xf32> to vector<64x128xf32>
    %9 = arith.addf %6, %8 : vector<64x128xf32>
    %c0_6 = arith.constant 0 : index
    %c0_7 = arith.constant 0 : index
    %10 = vector.load %arg7[%c0_6, %c0_7] : memref<32x128xf32, #tpu.memory_space<vmem>>, vector<32x128xf32>
    %11 = arith.truncf %10 : vector<32x128xf32> to vector<32x128xbf16>
    %cst_8 = arith.constant dense<0.000000e+00> : vector<64x128xf32>
    %12 = tpu.matmul %3, %11, %cst_8 {dimension_numbers = #tpu.dot_dimension_numbers<[1], [0], [0], [1], [0, 0, 1, 1], [], []>} : vector<64x32xbf16>, vector<32x128xbf16>, vector<64x128xf32> -> vector<64x128xf32>
    %c0_9 = arith.constant 0 : index
    %c0_10 = arith.constant 0 : index
    %13 = vector.load %arg8[%c0_9, %c0_10] : memref<1x128xf32, #tpu.memory_space<vmem>>, vector<1x128xf32>
    %14 = vector.broadcast %13 : vector<1x128xf32> to vector<64x128xf32>
    %15 = arith.addf %12, %14 : vector<64x128xf32>
    %cst_11 = arith.constant 5.000000e-01 : f32
    %16 = vector.broadcast %cst_11 : f32 to vector<64x128xf32>
    %17 = arith.mulf %16, %15 : vector<64x128xf32>
    %cst_12 = arith.constant 0.707106769 : f32
    %18 = vector.broadcast %cst_12 : f32 to vector<64x128xf32>
    %19 = arith.mulf %15, %18 : vector<64x128xf32>
    %20 = math.erf %19 : vector<64x128xf32>
    %cst_13 = arith.constant 1.000000e+00 : f32
    %21 = vector.broadcast %cst_13 : f32 to vector<64x128xf32>
    %22 = arith.addf %21, %20 : vector<64x128xf32>
    %23 = arith.mulf %17, %22 : vector<64x128xf32>
    %24 = arith.mulf %9, %23 : vector<64x128xf32>
    %25 = arith.truncf %24 : vector<64x128xf32> to vector<64x128xbf16>
    %c0_14 = arith.constant 0 : index
    %c0_15 = arith.constant 0 : index
    %26 = vector.load %arg9[%c0_14, %c0_15] : memref<64x128xbf16, #tpu.memory_space<vmem>>, vector<64x128xbf16>
    tpu.vector_store %arg9[%c0_14, %c0_15], %25 {strides = array<i32>} : memref<64x128xbf16, #tpu.memory_space<vmem>>, vector<64x128xbf16>,
    return
  }
  func.func @transform_0(%arg0: i32, %arg1: i32) -> (i32, i32) {
    %c0_i32 = arith.constant 0 : i32
    %c0_i32_0 = arith.constant 0 : i32
    return %arg0, %c0_i32 : i32, i32
  }
  func.func @transform_1(%arg0: i32, %arg1: i32) -> (i32, i32) {
    %c0_i32 = arith.constant 0 : i32
    %c0_i32_0 = arith.constant 0 : i32
    %c0_i32_1 = arith.constant 0 : i32
    return %c0_i32, %c0_i32_0 : i32, i32
  }
  func.func @transform_2(%arg0: i32, %arg1: i32) -> (i32, i32) {
    %c0_i32 = arith.constant 0 : i32
    %c0_i32_0 = arith.constant 0 : i32
    %c0_i32_1 = arith.constant 0 : i32
    return %c0_i32, %c0_i32_0 : i32, i32
  }
  func.func @transform_3(%arg0: i32, %arg1: i32) -> (i32, i32) {
    %c0_i32 = arith.constant 0 : i32
    %c0_i32_0 = arith.constant 0 : i32
    return %c0_i32, %arg1 : i32, i32
  }
  func.func @transform_4(%arg0: i32, %arg1: i32) -> (i32, i32) {
    %c0_i32 = arith.constant 0 : i32
    %c0_i32_0 = arith.constant 0 : i32
    return %c0_i32, %arg1 : i32, i32
  }
  func.func @transform_5(%arg0: i32, %arg1: i32) -> (i32, i32) {
    %c0_i32 = arith.constant 0 : i32
    %c0_i32_0 = arith.constant 0 : i32
    return %c0_i32, %arg1 : i32, i32
  }
  func.func @transform_6(%arg0: i32, %arg1: i32) -> (i32, i32) {
    %c0_i32 = arith.constant 0 : i32
    %c0_i32_0 = arith.constant 0 : i32
    return %c0_i32, %arg1 : i32, i32
  }
  func.func @transform_7(%arg0: i32, %arg1: i32) -> (i32, i32) {
    %c0_i32 = arith.constant 0 : i32
    return %arg0, %arg1 : i32, i32
  }
}

module attributes {stable_mosaic.version = 11 : i64} {
  func.func @_linear_kernel(%arg0: i32, %arg1: i32, %arg2: i32, %arg3: memref<64x128xbf16, #tpu.memory_space<vmem>>, %arg4: memref<128x32xf32, #tpu.memory_space<vmem>>, %arg5: memref<1x32xf32, #tpu.memory_space<vmem>>, %arg6: memref<64x32xf32, #tpu.memory_space<vmem>>, %arg7: memref<64x32xf32, #tpu.memory_space<vmem>>, %arg8: memref<64x32xf32, #tpu.memory_space<vmem>>) attributes {dimension_semantics = [#tpu.dimension_semantics<parallel>, #tpu.dimension_semantics<parallel>, #tpu.dimension_semantics<arbitrary>], iteration_bounds = array<i64: 2, 1, 1>, scalar_prefetch = 0 : i64, scratch_operands = 1 : i64, tpu.core_type = #tpu.core_type<tc>, window_params = [{transform_indices = @transform_0, window_bounds = array<i64: 64, 128>}, {transform_indices = @transform_1, window_bounds = array<i64: 128, 32>}, {transform_indices = @transform_2, window_bounds = array<i64: 1, 32>}, {transform_indices = @transform_3, window_bounds = array<i64: 64, 32>}, {transform_indices = @transform_4, window_bounds = array<i64: 64, 32>}]} {
    %c0_i32 = arith.constant 0 : i32
    %0 = arith.cmpi eq, %arg2, %c0_i32 : i32
    %1 = arith.extui %0 : i1 to i32
    %c0_i32_0 = arith.constant 0 : i32
    %2 = arith.cmpi ne, %1, %c0_i32_0 : i32
    scf.if %2 {
      %cst_10 = arith.constant 0.000000e+00 : f32
      %13 = vector.broadcast %cst_10 : f32 to vector<64x32xf32>
      %c0_11 = arith.constant 0 : index
      %c0_12 = arith.constant 0 : index
      %14 = vector.load %arg8[%c0_11, %c0_12] : memref<64x32xf32, #tpu.memory_space<vmem>>, vector<64x32xf32>
      tpu.vector_store %arg8[%c0_11, %c0_12], %13 {strides = array<i32>} : memref<64x32xf32, #tpu.memory_space<vmem>>, vector<64x32xf32>,
    } else {
    }
    %c0 = arith.constant 0 : index
    %c0_1 = arith.constant 0 : index
    %3 = vector.load %arg8[%c0, %c0_1] : memref<64x32xf32, #tpu.memory_space<vmem>>, vector<64x32xf32>
    %c0_2 = arith.constant 0 : index
    %c0_3 = arith.constant 0 : index
    %4 = vector.load %arg3[%c0_2, %c0_3] : memref<64x128xbf16, #tpu.memory_space<vmem>>, vector<64x128xbf16>
    %c0_4 = arith.constant 0 : index
    %c0_5 = arith.constant 0 : index
    %5 = vector.load %arg4[%c0_4, %c0_5] : memref<128x32xf32, #tpu.memory_space<vmem>>, vector<128x32xf32>
    %6 = arith.truncf %5 : vector<128x32xf32> to vector<128x32xbf16>
    %cst = arith.constant dense<0.000000e+00> : vector<64x32xf32>
    %7 = tpu.matmul %4, %6, %cst {dimension_numbers = #tpu.dot_dimension_numbers<[1], [0], [0], [1], [0, 0, 1, 1], [], []>} : vector<64x128xbf16>, vector<128x32xbf16>, vector<64x32xf32> -> vector<64x32xf32>
    %8 = arith.addf %3, %7 : vector<64x32xf32>
    %c0_6 = arith.constant 0 : index
    %c0_7 = arith.constant 0 : index
    %9 = vector.load %arg8[%c0_6, %c0_7] : memref<64x32xf32, #tpu.memory_space<vmem>>, vector<64x32xf32>
    tpu.vector_store %arg8[%c0_6, %c0_7], %8 {strides = array<i32>} : memref<64x32xf32, #tpu.memory_space<vmem>>, vector<64x32xf32>,
    %c0_i32_8 = arith.constant 0 : i32
    %10 = arith.cmpi eq, %arg2, %c0_i32_8 : i32
    %11 = arith.extui %10 : i1 to i32
    %c0_i32_9 = arith.constant 0 : i32
    %12 = arith.cmpi ne, %11, %c0_i32_9 : i32
    scf.if %12 {
      %c0_10 = arith.constant 0 : index
      %c0_11 = arith.constant 0 : index
      %13 = vector.load %arg8[%c0_10, %c0_11] : memref<64x32xf32, #tpu.memory_space<vmem>>, vector<64x32xf32>
      %c0_12 = arith.constant 0 : index
      %c0_13 = arith.constant 0 : index
      %14 = vector.load %arg5[%c0_12, %c0_13] : memref<1x32xf32, #tpu.memory_space<vmem>>, vector<1x32xf32>
      %15 = vector.broadcast %14 : vector<1x32xf32> to vector<64x32xf32>
      %16 = arith.addf %13, %15 : vector<64x32xf32>
      %c0_14 = arith.constant 0 : index
      %c0_15 = arith.constant 0 : index
      %17 = vector.load %arg6[%c0_14, %c0_15] : memref<64x32xf32, #tpu.memory_space<vmem>>, vector<64x32xf32>
      %18 = arith.addf %16, %17 : vector<64x32xf32>
      %c0_16 = arith.constant 0 : index
      %c0_17 = arith.constant 0 : index
      %19 = vector.load %arg7[%c0_16, %c0_17] : memref<64x32xf32, #tpu.memory_space<vmem>>, vector<64x32xf32>
      tpu.vector_store %arg7[%c0_16, %c0_17], %18 {strides = array<i32>} : memref<64x32xf32, #tpu.memory_space<vmem>>, vector<64x32xf32>,
    } else {
    }
    return
  }
  func.func @transform_0(%arg0: i32, %arg1: i32, %arg2: i32) -> (i32, i32) {
    %c0_i32 = arith.constant 0 : i32
    return %arg0, %arg2 : i32, i32
  }
  func.func @transform_1(%arg0: i32, %arg1: i32, %arg2: i32) -> (i32, i32) {
    %c0_i32 = arith.constant 0 : i32
    return %arg2, %arg1 : i32, i32
  }
  func.func @transform_2(%arg0: i32, %arg1: i32, %arg2: i32) -> (i32, i32) {
    %c0_i32 = arith.constant 0 : i32
    %c0_i32_0 = arith.constant 0 : i32
    return %c0_i32, %arg1 : i32, i32
  }
  func.func @transform_3(%arg0: i32, %arg1: i32, %arg2: i32) -> (i32, i32) {
    %c0_i32 = arith.constant 0 : i32
    return %arg0, %arg1 : i32, i32
  }
  func.func @transform_4(%arg0: i32, %arg1: i32, %arg2: i32) -> (i32, i32) {
    %c0_i32 = arith.constant 0 : i32
    return %arg0, %arg1 : i32, i32
  }
}

module attributes {stable_mosaic.version = 11 : i64} {
  func.func @_linear_kernel(%arg0: i32, %arg1: i32, %arg2: i32, %arg3: memref<64x32xf32, #tpu.memory_space<vmem>>, %arg4: memref<32x4xf32, #tpu.memory_space<vmem>>, %arg5: memref<1x4xf32, #tpu.memory_space<vmem>>, %arg6: memref<64x4xf32, #tpu.memory_space<vmem>>, %arg7: memref<64x4xf32, #tpu.memory_space<vmem>>) attributes {dimension_semantics = [#tpu.dimension_semantics<parallel>, #tpu.dimension_semantics<parallel>, #tpu.dimension_semantics<arbitrary>], iteration_bounds = array<i64: 2, 1, 1>, scalar_prefetch = 0 : i64, scratch_operands = 1 : i64, tpu.core_type = #tpu.core_type<tc>, window_params = [{transform_indices = @transform_0, window_bounds = array<i64: 64, 32>}, {transform_indices = @transform_1, window_bounds = array<i64: 32, 4>}, {transform_indices = @transform_2, window_bounds = array<i64: 1, 4>}, {transform_indices = @transform_3, window_bounds = array<i64: 64, 4>}]} {
    %c0_i32 = arith.constant 0 : i32
    %0 = arith.cmpi eq, %arg2, %c0_i32 : i32
    %1 = arith.extui %0 : i1 to i32
    %c0_i32_0 = arith.constant 0 : i32
    %2 = arith.cmpi ne, %1, %c0_i32_0 : i32
    scf.if %2 {
      %cst_10 = arith.constant 0.000000e+00 : f32
      %14 = vector.broadcast %cst_10 : f32 to vector<64x4xf32>
      %c0_11 = arith.constant 0 : index
      %c0_12 = arith.constant 0 : index
      %15 = vector.load %arg7[%c0_11, %c0_12] : memref<64x4xf32, #tpu.memory_space<vmem>>, vector<64x4xf32>
      tpu.vector_store %arg7[%c0_11, %c0_12], %14 {strides = array<i32>} : memref<64x4xf32, #tpu.memory_space<vmem>>, vector<64x4xf32>,
    } else {
    }
    %c0 = arith.constant 0 : index
    %c0_1 = arith.constant 0 : index
    %3 = vector.load %arg7[%c0, %c0_1] : memref<64x4xf32, #tpu.memory_space<vmem>>, vector<64x4xf32>
    %c0_2 = arith.constant 0 : index
    %c0_3 = arith.constant 0 : index
    %4 = vector.load %arg3[%c0_2, %c0_3] : memref<64x32xf32, #tpu.memory_space<vmem>>, vector<64x32xf32>
    %5 = arith.truncf %4 : vector<64x32xf32> to vector<64x32xbf16>
    %c0_4 = arith.constant 0 : index
    %c0_5 = arith.constant 0 : index
    %6 = vector.load %arg4[%c0_4, %c0_5] : memref<32x4xf32, #tpu.memory_space<vmem>>, vector<32x4xf32>
    %7 = arith.truncf %6 : vector<32x4xf32> to vector<32x4xbf16>
    %cst = arith.constant dense<0.000000e+00> : vector<64x4xf32>
    %8 = tpu.matmul %5, %7, %cst {dimension_numbers = #tpu.dot_dimension_numbers<[1], [0], [0], [1], [0, 0, 1, 1], [], []>} : vector<64x32xbf16>, vector<32x4xbf16>, vector<64x4xf32> -> vector<64x4xf32>
    %9 = arith.addf %3, %8 : vector<64x4xf32>
    %c0_6 = arith.constant 0 : index
    %c0_7 = arith.constant 0 : index
    %10 = vector.load %arg7[%c0_6, %c0_7] : memref<64x4xf32, #tpu.memory_space<vmem>>, vector<64x4xf32>
    tpu.vector_store %arg7[%c0_6, %c0_7], %9 {strides = array<i32>} : memref<64x4xf32, #tpu.memory_space<vmem>>, vector<64x4xf32>,
    %c0_i32_8 = arith.constant 0 : i32
    %11 = arith.cmpi eq, %arg2, %c0_i32_8 : i32
    %12 = arith.extui %11 : i1 to i32
    %c0_i32_9 = arith.constant 0 : i32
    %13 = arith.cmpi ne, %12, %c0_i32_9 : i32
    scf.if %13 {
      %c0_10 = arith.constant 0 : index
      %c0_11 = arith.constant 0 : index
      %14 = vector.load %arg7[%c0_10, %c0_11] : memref<64x4xf32, #tpu.memory_space<vmem>>, vector<64x4xf32>
      %c0_12 = arith.constant 0 : index
      %c0_13 = arith.constant 0 : index
      %15 = vector.load %arg5[%c0_12, %c0_13] : memref<1x4xf32, #tpu.memory_space<vmem>>, vector<1x4xf32>
      %16 = vector.broadcast %15 : vector<1x4xf32> to vector<64x4xf32>
      %17 = arith.addf %14, %16 : vector<64x4xf32>
      %c0_14 = arith.constant 0 : index
      %c0_15 = arith.constant 0 : index
      %18 = vector.load %arg6[%c0_14, %c0_15] : memref<64x4xf32, #tpu.memory_space<vmem>>, vector<64x4xf32>
      tpu.vector_store %arg6[%c0_14, %c0_15], %17 {strides = array<i32>} : memref<64x4xf32, #tpu.memory_space<vmem>>, vector<64x4xf32>,
    } else {
    }
    return
  }
  func.func @transform_0(%arg0: i32, %arg1: i32, %arg2: i32) -> (i32, i32) {
    %c0_i32 = arith.constant 0 : i32
    return %arg0, %arg2 : i32, i32
  }
  func.func @transform_1(%arg0: i32, %arg1: i32, %arg2: i32) -> (i32, i32) {
    %c0_i32 = arith.constant 0 : i32
    return %arg2, %arg1 : i32, i32
  }
  func.func @transform_2(%arg0: i32, %arg1: i32, %arg2: i32) -> (i32, i32) {
    %c0_i32 = arith.constant 0 : i32
    %c0_i32_0 = arith.constant 0 : i32
    return %c0_i32, %arg1 : i32, i32
  }
  func.func @transform_3(%arg0: i32, %arg1: i32, %arg2: i32) -> (i32, i32) {
    %c0_i32 = arith.constant 0 : i32
    return %arg0, %arg1 : i32, i32
  }
}

</mosaic_0001>

<bundles_post_ra>
// kernel: spatial_transformer.11
= control target key start
LH: loop header
LB: loop body
LE: loop exit
PB: predicated region body
PF: predicated region fallthrough
CT: control target
= control target key end

     0   :  { %s497_s9 = smov 0   ;;  %s499_s10 = smov 0   ;;  %s562_s0 = inlined_call_operand.vmem [shape: f32[2,2,2,64], index: 0, kind: input, shape index: {}]   ;;  %s563_s1 = inlined_call_operand.vmem [shape: f32[2,2,1,128], index: 1, kind: output, shape index: {0}]   ;;  %s564_s2 = inlined_call_operand.vmem [shape: f32[2,2,1,128], index: 2, kind: output, shape index: {1}]  }
   0x1   :  { %s501_s11 = smov 0   ;;  %s503_s12 = smov 0  }
   0x2   :  { %s505_s13 = smov 0  }
   0x3 LB: > { %s28_s14 = sadd.s32 1, %s471_s11  ;;  %s32_s15 = sadd.s32 1, %s475_s12  ;;  %s479_s13 = sphi %s505_s13, %s13_s13   ;;  %s475_s12 = sphi %s503_s12, %s568_s12   ;;  %s471_s11 = sphi %s501_s11, %s567_s11   ;;  %s467_s10 = sphi %s499_s10, %s566_s10   ;;  %s463_s9 = sphi %s497_s9, %s565_s9  }
   0x4   : > { %p30_p0 = scmp.ge.s32.totalorder %s28_s14, 2  ;;  %p391_p1 = scmp.ge.s32.totalorder %s479_s13, 1 }
   0x5   : > { %p148_p2 = scmp.lt.s32.totalorder %s479_s13, 5 }
   0x6   : > { %s570_s14 = smov (%p30_p0, %s28_s14), 0  ;;  %s572_s15 = smov (!%p30_p0, %s32_s15), %s475_s12 }
   0x7   : > { %p149_p3 = pnand %p391_p1, %p148_p2  ;;  %p34_p4 = scmp.ge.s32.totalorder %s572_s15, 2 }
   0x8   : > { %p185_p5 = scmp.lt.s32.totalorder (!%p149_p3), %s467_s10, 1  ;;  %p187_p6 = scmp.lt.s32.totalorder (!%p149_p3), %s463_s9, 1  ;;  %vm214_vm0 = vcmask (!%p149_p3), 516096   ;;  %v481_v0 = vmov (!%p149_p3), 0.0   ;;  %vm219_vm1 = vcmask (!%p149_p3), 517120  }
   0x9   : > { %s574_s15 = smov (%p34_p4, %s572_s15), 0  ;;  %152 = sbr.rel (%p149_p3) target bundleno = 210 (0xd2), region = 24 }
   0xa   : > { %215 = vst.msk [vmem:[#allocation2] sm:$0x1] (!%p149_p3), %vm214_vm0, %v481_v0  ;;  %216 = vst.msk [vmem:[#allocation3] sm:$0x1] (!%p149_p3), %vm214_vm0, %v481_v0 }
  0x10   : > { %s576_s10 = smov (!%p185_p5, %s467_s10), 1  ;;  %s578_s9 = smov (!%p187_p6, %s463_s9), 1 }
  0x11   : > { %s392_s16 = sshll.u32 %s576_s10, 1  ;;  %v218_v14 = vld [vmem:[#allocation2] sm:$0x1]  ;;  %v230_v17 = vld [vmem:[#allocation3] sm:$0x1] }
  0x12   : > { %s529_s17 = sadd.s32 %s392_s16, %s578_s9 }
  0x13   : > { %s393_s18 = sshll.u32 %s529_s17, 1  ;;  %s202_s24 = scalar_lea.vmem %s563_s1, %s529_s17 }
  0x14   : > { %s195_s21 = scalar_lea.vmem %s562_s0, %s393_s18  ;;  %s209_s27 = scalar_lea.vmem %s564_s2, %s529_s17 }
  0x15   : > { %v217_v1 = vld [vmem:[%s195_s21] sm:$0x3] }
  0x16   : > { %v220_v2 = vsel %vm219_vm1, %v217_v1, 0.0  ;;  %v231_v3 = vmul.f32 %v217_v1, %v217_v1 }
  0x17   : > { %v221_v4 = vrot.slane %v220_v2, 4 }
  0x18   : > { %v232_v5 = vsel %vm219_vm1, %v231_v3, 0.0 }
  0x19   : > { %v222_v6 = vadd.f32 %v221_v4, %v220_v2  ;;  %v233_v7 = vrot.slane %v232_v5, 4 }
  0x1b   : > { %v223_v8 = vrot.slane %v222_v6, 2  ;;  %v234_v9 = vadd.f32 %v233_v7, %v232_v5 }
  0x1d   : > { %v224_v10 = vadd.f32 %v223_v8, %v222_v6  ;;  %v235_v11 = vrot.slane %v234_v9, 2 }
  0x1f   : > { %v225_v12 = vrot.slane %v224_v10, 1  ;;  %v236_v13 = vadd.f32 %v235_v11, %v234_v9 }
  0x21   : > { %v226_v15 = vadd.f32 %v225_v12, %v224_v10  ;;  %v237_v16 = vrot.slane %v236_v13, 1 }
  0x23   : > { %v227_v18 = vadd.f32 %v226_v15, %v218_v14  ;;  %v238_v19 = vadd.f32 %v237_v16, %v236_v13 }
  0x25   : > { %229 = vst.msk [vmem:[#allocation2] sm:$0x1] %vm214_vm0, %v227_v18  ;;  %v239_v20 = vadd.f32 %v238_v19, %v230_v17 }
  0x27   : > { %240 = vst.msk [vmem:[#allocation3] sm:$0x1] %vm214_vm0, %v239_v20 }
  0x2c   : > { %v244_v21 = vld [vmem:[#allocation2] sm:$0x1] }
  0x2d   : > { %v245_v22 = vsel %vm214_vm0, %v244_v21, 0.0 }
  0x2e   : > { %246 = vadd.xlane.f32.xlu0 %v245_v22  ;;  %v249_v23 = vld [vmem:[#allocation3] sm:$0x1] }
  0x2f   : > { %v250_v24 = vsel %vm214_vm0, %v249_v23, 0.0 }
  0x32   : > { %251 = vadd.xlane.f32.xlu0 %v250_v24 }
  0xbb   : > { %v247_v25 = vpop.xlane.xlu0 %246 }
  0xbc   : > { %v248_v26 = vmul.f32 0.0078125, %v247_v25 }
  0xbe   : > { %258 = vst [vmem:[%s202_s24] sm:$0x1] %v248_v26  ;;  %v254_v28 = vmul.f32 %v248_v26, %v248_v26 }
  0xbf   : > { %v252_v27 = vpop.xlane.xlu0 %251 }
  0xc0   : > { %v253_v29 = vmul.f32 0.0078125, %v252_v27 }
  0xc2   : > { %v255_v30 = vsub.f32 %v253_v29, %v254_v28 }
  0xc4   : > { %v256_v31 = vadd.f32 1e-06, %v255_v30 }
  0xc6   : > { %439 = vrsqrt.f32 %v256_v31 }
  0xd0   : > { %v440_v32 = vpop.eup %439 }
  0xd1   : > { %259 = vst [vmem:[%s209_s27] sm:$0x1] %v440_v32 }
  0xd2 PF: > { %s13_s13 = sadd.s32 1, %s479_s13   ;;  %s565_s9 = smov %s471_s11 }
  0xd3   : > { %p10_p7 = scmp.ge.s32.totalorder %s13_s13, 6   ;;  %s566_s10 = smov %s475_s12 }
  0xd4   : > { %s567_s11 = smov %s570_s14  ;;  %s568_s12 = smov %s574_s15 }
  0xd5   :  { %12 = sbr.rel (!%p10_p7) target bundleno = 3 (0x3), region = 74 }

// kernel: spatial_transformer.12
= control target key start
LH: loop header
LB: loop body
LE: loop exit
PB: predicated region body
PF: predicated region fallthrough
CT: control target
= control target key end

     0   :  { %s630_s18 = smov 0   ;;  %s632_s19 = smov 0   ;;  %s688_s0 = inlined_call_operand.vmem [shape: f32[2,4,64], index: 0, kind: input, shape index: {}]   ;;  %s689_s1 = inlined_call_operand.vmem [shape: f32[2,4,1], index: 1, kind: input, shape index: {}]   ;;  %s690_s2 = inlined_call_operand.vmem [shape: f32[2,4,1], index: 2, kind: input, shape index: {}]   ;;  %s691_s3 = inlined_call_operand.vmem [shape: f32[4,32], index: 3, kind: input, shape index: {}]   ;;  %s692_s4 = inlined_call_operand.vmem [shape: f32[1,32], index: 4, kind: input, shape index: {}]   ;;  %s693_s5 = inlined_call_operand.vmem [shape: f32[128,32], index: 5, kind: output, shape index: {}]  }
   0x1   :  { %s634_s20 = smov 0  }
   0x2 LB: > { %s27_s21 = sadd.s32 1, %s593_s19  ;;  %p517_p0 = scmp.ge.s32.totalorder %s597_s20, 1  ;;  %s597_s20 = sphi %s634_s20, %s15_s20   ;;  %s593_s19 = sphi %s632_s19, %s695_s19   ;;  %s589_s18 = sphi %s630_s18, %s694_s18  }
   0x3   : > { %p29_p1 = scmp.ge.s32.totalorder %s27_s21, 2  ;;  %p223_p2 = scmp.lt.s32.totalorder %s597_s20, 3 }
   0x5   : > { %s697_s21 = smov (%p29_p1, %s27_s21), 0  ;;  %p224_p3 = pnand %p517_p0, %p223_p2 }
   0x6   : > { %p262_p4 = scmp.lt.s32.totalorder (!%p224_p3), %s589_s18, 1  ;;  %v599_v0 = vmov (!%p224_p3), 0   ;;  %v302_v3 = vld [vmem:[%s691_s3] sm:$0xf] (!%p224_p3)  ;;  %vm340_vm0 = vcmask (!%p224_p3), 1041408   ;;  %vm327_vm1 = vcmask (!%p224_p3), 31744  }
   0x7   : > { %227 = sbr.rel (%p224_p3) target bundleno = 488 (0x1e8), region = 40  ;;  %574 = vset.pattern.permute.xlu0 (!%p224_p3), %v599_v0  ;;  %v303_v4 = vpack.c.bf16 (!%p224_p3), %v302_v3, %v302_v3  ;;  %s521_s10 = sshll.u32 (!%p224_p3), %s589_s18, 3  ;;  %v523_v16 = vld [vmem:[%s692_s4] ss:$0 sm:$0xff] (!%p224_p3)  ;;  %vm409_vm2 = vcmask (!%p224_p3), 261120  }
   0x8   : > { %p279_p5 = scmp.lt.s32.totalorder (!%p224_p3), %s521_s10, 15 }
   0x9   : > { %547 = vmatprep.subr.msk.bf16.mxu0 (!%p224_p3), %vm340_vm0, %v303_v4  ;;  %v342_v5 = vsel (!%p224_p3), %vm340_vm0, %v303_v4, 0  ;;  %548 = vmatprep.subr.msk.bf16.mxu1 (!%p224_p3), %vm340_vm0, %v303_v4 }
   0xa   : > { %536 = vmatpush3.bf16.msra.mxu0 (!%p224_p3), %v342_v5  ;;  %546 = vmatpush3.bf16.msra.mxu1 (!%p224_p3), %v342_v5 }
   0xe   : > { %s263_s22 = scalar_select %p262_p4, %s589_s18, 1 }
   0xf   : > { %s699_s10 = smov (!%p279_p5, %s521_s10), 15 }
  0x10   : > { %s518_s23 = sshll.u32 %s263_s22, 2  ;;  %s522_s11 = sshll.u32 %s699_s10, 3 }
  0x11   : > { %s272_s26 = scalar_lea.vmem %s689_s1, %s518_s23  ;;  %s276_s29 = scalar_lea.vmem %s690_s2, %s518_s23 }
  0x12   : > { %v287_v1 = vld [vmem:[%s272_s26] sm:$0xf]  ;;  %s268_s9 = scalar_lea.vmem %s688_s0, %s518_s23  ;;  %s282_s16 = scalar_lea.vmem %s693_s5, %s522_s11 }
  0x13   : > { %290 = vperm.xlu0 %574, %v287_v1   ;;  %v294_v2 = vld [vmem:[%s276_s29] sm:$0xf] }
  0x14   : > { %v286_v7 = vld [vmem:[%s268_s9] sm:$0xf] }
  0x17   : > { %297 = vperm.xlu0 %574, %v294_v2  }
  0x92   : > { %v291_v6 = vpop.permute.xlu0 %290 }
  0x93   : > { %v293_v8 = vmul.f32 %v291_v6, %v286_v7 }
  0x96   : > { %v298_v9 = vpop.permute.xlu0 %297 }
  0x97   : > { %v300_v10 = vadd.f32 %v298_v9, %v293_v8 }
  0x99   : > { %v301_v11 = vpack.c.bf16 %v300_v10, %v300_v10 }
  0x9b   : > { %311 = vxpose.xlu1.c.b16.start.end [1/1] (short) (narrow) %v301_v11, 64 }
 0x101   : > { %v319_v12 = vpop.trf.xlu1 }
 0x102   : > { %537 = vmatprep.mubr.msk.bf16.mxu0 %vm327_vm1, %v319_v12 }
 0x105   : > { %v320_v13 = vpop.trf.xlu1 }
 0x106   : > { %538 = vmatmul.mubr.msk.bf16.vlgmr.msra.gmra.mrb[0].mxu0 %vm327_vm1, %v320_v13 }
 0x109   : > { %v321_v14 = vpop.trf.xlu1 }
 0x10a   : > { %541 = vmatprep.mubr.msk.bf16.mxu1 %vm327_vm1, %v321_v14 }
 0x10d   : > { %v322_v15 = vpop.trf.xlu1 }
 0x10e   : > { %542 = vmatmul.mubr.msk.bf16.vlgmr.msra.gmra.mrb[0].mxu1 %vm327_vm1, %v322_v15 }
 0x1d9   : > { %v539_v17 = vpop.f32.mrb[0].mxu0 }
 0x1da   : > { %v387_v18 = vadd.f32 %v539_v17, %v523_v16  ;;  %v378_v19 = vpop.f32.mrb[1].mxu0 }
 0x1db   : > { %v379_v20 = vadd.f32 %v523_v16, %v378_v19  ;;  %v540_v21 = vpop.f32.mrb[2].mxu0 }
 0x1dc   : > { %412 = vst.msk [vmem:[%s282_s16 + $0x10] sm:$0xff] %vm409_vm2, %v387_v18  ;;  %v390_v22 = vadd.f32 %v540_v21, %v523_v16  ;;  %v381_v23 = vpop.f32.mrb[3].mxu0 }
 0x1dd   : > { %410 = vst.msk [vmem:[%s282_s16] sm:$0xff] %vm409_vm2, %v379_v20  ;;  %v382_v24 = vadd.f32 %v523_v16, %v381_v23 }
 0x1de   : > { %413 = vst.msk [vmem:[%s282_s16 + $0x18] sm:$0xff] %vm409_vm2, %v390_v22 }
 0x1df   : > { %411 = vst.msk [vmem:[%s282_s16 + $0x8] sm:$0xff] %vm409_vm2, %v382_v24 }
 0x1e1   : > { %v543_v25 = vpop.f32.mrb[0].mxu1 }
 0x1e2   : > { %v403_v26 = vadd.f32 %v543_v25, %v523_v16  ;;  %v394_v27 = vpop.f32.mrb[1].mxu1 }
 0x1e3   : > { %v395_v28 = vadd.f32 %v523_v16, %v394_v27  ;;  %v544_v29 = vpop.f32.mrb[2].mxu1 }
 0x1e4   : > { %416 = vst.msk [vmem:[%s282_s16 + $0x30] sm:$0xff] %vm409_vm2, %v403_v26  ;;  %v406_v30 = vadd.f32 %v544_v29, %v523_v16  ;;  %v397_v31 = vpop.f32.mrb[3].mxu1 }
 0x1e5   : > { %414 = vst.msk [vmem:[%s282_s16 + $0x20] sm:$0xff] %vm409_vm2, %v395_v28  ;;  %v398_v32 = vadd.f32 %v523_v16, %v397_v31 }
 0x1e6   : > { %417 = vst.msk [vmem:[%s282_s16 + $0x38] sm:$0xff] %vm409_vm2, %v406_v30 }
 0x1e7   : > { %415 = vst.msk [vmem:[%s282_s16 + $0x28] sm:$0xff] %vm409_vm2, %v398_v32 }
 0x1e8 PF: > { %s15_s20 = sadd.s32 1, %s597_s20   ;;  %s694_s18 = smov %s593_s19 }
 0x1e9   : > { %p12_p6 = scmp.ge.s32.totalorder %s15_s20, 4   ;;  %s695_s19 = smov %s697_s21 }
 0x1eb   :  { %14 = sbr.rel (!%p12_p6) target bundleno = 2 (0x2), region = 76 }

// kernel: spatial_transformer.13
= control target key start
LH: loop header
LB: loop body
LE: loop exit
PB: predicated region body
PF: predicated region fallthrough
CT: control target
= control target key end

     0   :  { %s775_s15 = smov 0   ;;  %s777_s16 = smov 0   ;;  %s940_s0 = inlined_call_operand.vmem [shape: f32[128,32], index: 0, kind: input, shape index: {}]   ;;  %s941_s1 = inlined_call_operand.vmem [shape: f32[1,32], index: 1, kind: input, shape index: {}]   ;;  %s942_s2 = inlined_call_operand.vmem [shape: f32[1,32], index: 2, kind: input, shape index: {}]   ;;  %s943_s3 = inlined_call_operand.vmem [shape: f32[32,96], index: 3, kind: input, shape index: {}]   ;;  %s944_s4 = inlined_call_operand.vmem [shape: bf16[128,96], index: 4, kind: output, shape index: {}]  }
   0x1   :  { %s779_s17 = smov 0  }
   0x2 LB: > { %s26_s18 = sadd.s32 1, %s744_s16  ;;  %p635_p0 = scmp.ge.s32.totalorder %s748_s17, 1  ;;  %s748_s17 = sphi %s779_s17, %s14_s17   ;;  %s744_s16 = sphi %s777_s16, %s946_s16   ;;  %s740_s15 = sphi %s775_s15, %s945_s15  }
   0x3   : > { %p28_p1 = scmp.ge.s32.totalorder %s26_s18, 2  ;;  %p186_p2 = scmp.lt.s32.totalorder %s748_s17, 3 }
   0x5   : > { %s948_s18 = smov (%p28_p1, %s26_s18), 0  ;;  %p187_p3 = pnand %p635_p0, %p186_p2 }
   0x6   : > { %s636_s19 = sshll.u32 (!%p187_p3), %s740_s15, 3  ;;  %vm251_vm0 = vcmask (!%p187_p3), 261120   ;;  %v415_v32 = vld [vmem:[%s943_s3] sm:$0xff] (!%p187_p3)  ;;  %v416_v33 = vld [vmem:[%s943_s3 + $0x8] sm:$0xff] (!%p187_p3)  ;;  %v417_v35 = vld [vmem:[%s943_s3 + $0x10] sm:$0xff] (!%p187_p3)  ;;  %vm531_vm1 = vcmask (!%p187_p3), 781312  }
   0x7   : > { %190 = sbr.rel (%p187_p3) target bundleno = 441 (0x1b9), region = 36  ;;  %p220_p4 = scmp.lt.s32.totalorder (!%p187_p3), %s636_s19, 15  ;;  %v419_v34 = vpack.c.bf16 (!%p187_p3), %v416_v33, %v415_v32  ;;  %v418_v36 = vld [vmem:[%s943_s3 + $0x18] sm:$0xff] (!%p187_p3) }
   0x8   : > { %v420_v37 = vpack.c.bf16 (!%p187_p3), %v418_v36, %v417_v35 }
   0x9   : > { %670 = vmatprep.subr.bf16.mxu0 (!%p187_p3), %v419_v34  ;;  %682 = vmatprep.subr.bf16.mxu1 (!%p187_p3), %v419_v34 }
   0xa   : > { %671 = vmatpush3.bf16.msra.mxu0 (!%p187_p3), %v419_v34  ;;  %684 = vmatpush3.bf16.msra.mxu1 (!%p187_p3), %v419_v34 }
   0xb   : > { %672 = vmatprep.subr.bf16.mxu0 (!%p187_p3), %v420_v37  ;;  %683 = vmatprep.subr.bf16.mxu1 (!%p187_p3), %v420_v37 }
   0xe   : > { %s950_s19 = smov (!%p220_p4, %s636_s19), 15  ;;  %673 = vmatpush3.bf16.msra.mxu0 %v420_v37  ;;  %685 = vmatpush3.bf16.msra.mxu1 %v420_v37 }
   0xf   : > { %s637_s20 = sshll.u32 %s950_s19, 3  ;;  %s639_s10 = sshll.u32 %s950_s19, 2 }
  0x10   : > { %s223_s23 = scalar_lea.vmem %s940_s0, %s637_s20  ;;  %s236_s13 = scalar_lea.vmem %s944_s4, %s639_s10 }
  0x11   : > { %v799_v0 = vld [vmem:[%s223_s23 + $0x20] sm:$0xff]  ;;  %v803_v2 = vld [vmem:[%s223_s23 + $0x28] sm:$0xff]  ;;  %v815_v8 = vld [vmem:[%s223_s23 + $0x18] sm:$0xff] }
  0x12   : > { %v801_v1 = vld [vmem:[%s223_s23] sm:$0xff]  ;;  %v264_v3 = vsel %vm251_vm0, %v799_v0, 0.0  ;;  %v809_v5 = vld [vmem:[%s223_s23 + $0x8] sm:$0xff]  ;;  %v267_v6 = vsel %vm251_vm0, %v803_v2, 0.0  ;;  %v817_v9 = vld [vmem:[%s223_s23 + $0x10] sm:$0xff]  ;;  %v261_v10 = vsel %vm251_vm0, %v815_v8, 0.0  ;;  %v290_v20 = vmul.f32 %v803_v2, %v803_v2 }
  0x13   : > { %v252_v4 = vsel %vm251_vm0, %v801_v1, 0.0  ;;  %265 = vadd.xlane.f32.xlu1 %v264_v3  ;;  %v255_v7 = vsel %vm251_vm0, %v809_v5, 0.0  ;;  %v258_v11 = vsel %vm251_vm0, %v817_v9, 0.0  ;;  %v823_v12 = vld [vmem:[%s223_s23 + $0x38] sm:$0xff]  ;;  %v825_v13 = vld [vmem:[%s223_s23 + $0x30] sm:$0xff]  ;;  %v286_v16 = vmul.f32 %v809_v5, %v809_v5 }
  0x14   : > { %253 = vadd.xlane.f32.xlu0 %v252_v4  ;;  %v273_v14 = vsel %vm251_vm0, %v823_v12, 0.0  ;;  %v270_v15 = vsel %vm251_vm0, %v825_v13, 0.0  ;;  %v285_v17 = vmul.f32 %v801_v1, %v801_v1  ;;  %v289_v21 = vmul.f32 %v799_v0, %v799_v0 }
  0x15   : > { %v296_v18 = vsel %vm251_vm0, %v286_v16, 0.0  ;;  %v308_v22 = vsel %vm251_vm0, %v290_v20, 0.0  ;;  %v288_v24 = vmul.f32 %v815_v8, %v815_v8  ;;  %v287_v25 = vmul.f32 %v817_v9, %v817_v9 }
  0x16   : > { %v293_v19 = vsel %vm251_vm0, %v285_v17, 0.0  ;;  %v305_v23 = vsel %vm251_vm0, %v289_v21, 0.0  ;;  %v292_v28 = vmul.f32 %v823_v12, %v823_v12  ;;  %v291_v29 = vmul.f32 %v825_v13, %v825_v13 }
  0x17   : > { %268 = vadd.xlane.f32.xlu1 %v267_v6  ;;  %v302_v26 = vsel %vm251_vm0, %v288_v24, 0.0  ;;  %v299_v27 = vsel %vm251_vm0, %v287_v25, 0.0 }
  0x18   : > { %256 = vadd.xlane.f32.xlu0 %v255_v7  ;;  %v314_v30 = vsel %vm251_vm0, %v292_v28, 0.0  ;;  %v311_v31 = vsel %vm251_vm0, %v291_v29, 0.0 }
  0x1b   : > { %262 = vadd.xlane.f32.xlu1 %v261_v10 }
  0x1c   : > { %259 = vadd.xlane.f32.xlu0 %v258_v11 }
  0x1f   : > { %274 = vadd.xlane.f32.xlu1 %v273_v14 }
  0x20   : > { %271 = vadd.xlane.f32.xlu0 %v270_v15 }
  0x23   : > { %297 = vadd.xlane.f32.xlu1 %v296_v18 }
  0x24   : > { %294 = vadd.xlane.f32.xlu0 %v293_v19 }
  0x27   : > { %309 = vadd.xlane.f32.xlu1 %v308_v22 }
  0x28   : > { %306 = vadd.xlane.f32.xlu0 %v305_v23 }
  0x2b   : > { %303 = vadd.xlane.f32.xlu1 %v302_v26 }
  0x2c   : > { %300 = vadd.xlane.f32.xlu0 %v299_v27 }
  0x2f   : > { %315 = vadd.xlane.f32.xlu1 %v314_v30 }
  0x30   : > { %312 = vadd.xlane.f32.xlu0 %v311_v31 }
  0xa0   : > { %v266_v38 = vpop.xlane.xlu1 %265 }
  0xa1   : > { %v254_v39 = vpop.xlane.xlu0 %253  ;;  %v867_v48 = vmul.f32 0.03125, %v266_v38 }
  0xa2   : > { %v277_v46 = vmul.f32 0.03125, %v254_v39  ;;  %v640_v39 = vld [vmem:[%s941_s1] ss:$0 sm:$0xff] }
  0xa3   : > { %v337_v59 = vmul.f32 %v867_v48, %v867_v48 }
  0xa4   : > { %v269_v40 = vpop.xlane.xlu1 %268  ;;  %v333_v52 = vmul.f32 %v277_v46, %v277_v46  ;;  %v325_v38 = vsub.f32 %v801_v1, %v277_v46  ;;  %v329_v46 = vsub.f32 %v799_v0, %v867_v48 }
  0xa5   : > { %v257_v41 = vpop.xlane.xlu0 %256  ;;  %v869_v49 = vmul.f32 0.03125, %v269_v40 }
  0xa6   : > { %v278_v47 = vmul.f32 0.03125, %v257_v41 }
  0xa7   : > { %v338_v60 = vmul.f32 %v869_v49, %v869_v49 }
  0xa8   : > { %v263_v42 = vpop.xlane.xlu1 %262  ;;  %v334_v53 = vmul.f32 %v278_v47, %v278_v47  ;;  %v326_v36 = vsub.f32 %v809_v5, %v278_v47  ;;  %v330_v5 = vsub.f32 %v803_v2, %v869_v49 }
  0xa9   : > { %v260_v43 = vpop.xlane.xlu0 %259  ;;  %v871_v56 = vmul.f32 0.03125, %v263_v42 }
  0xaa   : > { %v877_v61 = vmul.f32 0.03125, %v260_v43 }
  0xab   : > { %v336_v10 = vmul.f32 %v871_v56, %v871_v56 }
  0xac   : > { %v275_v44 = vpop.xlane.xlu1 %274  ;;  %v335_v15 = vmul.f32 %v877_v61, %v877_v61  ;;  %v327_v2 = vsub.f32 %v817_v9, %v877_v61 }
  0xad   : > { %v272_v45 = vpop.xlane.xlu0 %271  ;;  %v883_v16 = vmul.f32 0.03125, %v275_v44  ;;  %v641_v44 = vld [vmem:[%s942_s2] ss:$0 sm:$0xff] }
  0xae   : > { %v885_v17 = vmul.f32 0.03125, %v272_v45 }
  0xaf   : > { %v340_v26 = vmul.f32 %v883_v16, %v883_v16 }
  0xb0   : > { %v298_v50 = vpop.xlane.xlu1 %297  ;;  %v339_v27 = vmul.f32 %v885_v17, %v885_v17 }
  0xb1   : > { %v295_v51 = vpop.xlane.xlu0 %294  ;;  %v318_v54 = vmul.f32 0.03125, %v298_v50 }
  0xb2   : > { %v317_v55 = vmul.f32 0.03125, %v295_v51 }
  0xb3   : > { %v342_v57 = vsub.f32 %v318_v54, %v334_v53 }
  0xb4   : > { %v341_v58 = vsub.f32 %v317_v55, %v333_v52  ;;  %v310_v62 = vpop.xlane.xlu1 %309 }
  0xb5   : > { %v307_v63 = vpop.xlane.xlu0 %306  ;;  %v350_v3 = vadd.f32 1e-05, %v342_v57  ;;  %v322_v6 = vmul.f32 0.03125, %v310_v62  ;;  %v328_v57 = vsub.f32 %v815_v8, %v871_v56  ;;  %v331_v8 = vsub.f32 %v825_v13, %v885_v17 }
  0xb6   : > { %v349_v4 = vadd.f32 1e-05, %v341_v58  ;;  %v321_v7 = vmul.f32 0.03125, %v307_v63 }
  0xb7   : > { %710 = vrsqrt.f32 %v350_v3  ;;  %v346_v11 = vsub.f32 %v322_v6, %v338_v60 }
  0xb8   : > { %v345_v14 = vsub.f32 %v321_v7, %v337_v59  ;;  %712 = vrsqrt.f32 %v349_v4  ;;  %v304_v18 = vpop.xlane.xlu1 %303  ;;  %v332_v4 = vsub.f32 %v823_v12, %v883_v16 }
  0xb9   : > { %v301_v19 = vpop.xlane.xlu0 %300  ;;  %v354_v20 = vadd.f32 1e-05, %v346_v11  ;;  %v320_v22 = vmul.f32 0.03125, %v304_v18 }
  0xba   : > { %v353_v21 = vadd.f32 1e-05, %v345_v14  ;;  %v319_v23 = vmul.f32 0.03125, %v301_v19 }
  0xbb   : > { %714 = vrsqrt.f32 %v354_v20  ;;  %v344_v24 = vsub.f32 %v320_v22, %v336_v10 }
  0xbc   : > { %v343_v25 = vsub.f32 %v319_v23, %v335_v15  ;;  %716 = vrsqrt.f32 %v353_v21  ;;  %v316_v28 = vpop.xlane.xlu1 %315 }
  0xbd   : > { %v313_v29 = vpop.xlane.xlu0 %312  ;;  %v352_v30 = vadd.f32 1e-05, %v344_v24  ;;  %v324_v32 = vmul.f32 0.03125, %v316_v28 }
  0xbe   : > { %v351_v31 = vadd.f32 1e-05, %v343_v25  ;;  %v323_v33 = vmul.f32 0.03125, %v313_v29 }
  0xbf   : > { %718 = vrsqrt.f32 %v352_v30  ;;  %v348_v34 = vsub.f32 %v324_v32, %v340_v26 }
  0xc0   : > { %v347_v35 = vsub.f32 %v323_v33, %v339_v27  ;;  %720 = vrsqrt.f32 %v351_v31 }
  0xc1   : > { %v711_v37 = vpop.eup %710  ;;  %v356_v40 = vadd.f32 1e-05, %v348_v34 }
  0xc2   : > { %v355_v41 = vadd.f32 1e-05, %v347_v35  ;;  %v713_v42 = vpop.eup %712  ;;  %v366_v43 = vmul.f32 %v711_v37, %v326_v36 }
  0xc3   : > { %v365_v45 = vmul.f32 %v713_v42, %v325_v38  ;;  %722 = vrsqrt.f32 %v356_v40 }
  0xc4   : > { %v381_v47 = vmul.f32 %v640_v39, %v366_v43  ;;  %724 = vrsqrt.f32 %v355_v41 }
  0xc5   : > { %v715_v1 = vpop.eup %714  ;;  %v380_v50 = vmul.f32 %v640_v39, %v365_v45 }
  0xc6   : > { %v717_v51 = vpop.eup %716  ;;  %v396_v52 = vadd.f32 %v641_v44, %v381_v47  ;;  %v370_v53 = vmul.f32 %v715_v1, %v330_v5 }
  0xc7   : > { %v395_v54 = vadd.f32 %v641_v44, %v380_v50  ;;  %v369_v55 = vmul.f32 %v717_v51, %v329_v46 }
  0xc8   : > { %v385_v58 = vmul.f32 %v640_v39, %v370_v53 }
  0xc9   : > { %v719_v59 = vpop.eup %718  ;;  %v403_v49 = vpack.c.bf16 %v396_v52, %v395_v54  ;;  %v384_v60 = vmul.f32 %v640_v39, %v369_v55 }
  0xca   : > { %v721_v62 = vpop.eup %720  ;;  %v400_v63 = vadd.f32 %v641_v44, %v385_v58  ;;  %v368_v3 = vmul.f32 %v719_v59, %v328_v57 }
  0xcb   : > { %407 = vst.msk [vmem:[#allocation2] sm:$0xff] %vm251_vm0, %v403_v49  ;;  %v399_v0 = vadd.f32 %v641_v44, %v384_v60  ;;  %v367_v48 = vmul.f32 %v721_v62, %v327_v2 }
  0xcc   : > { %v383_v6 = vmul.f32 %v640_v39, %v368_v3 }
  0xcd   : > { %v723_v7 = vpop.eup %722  ;;  %v405_v56 = vpack.c.bf16 %v400_v63, %v399_v0  ;;  %v382_v10 = vmul.f32 %v640_v39, %v367_v48 }
  0xce   : > { %v725_v9 = vpop.eup %724  ;;  %v398_v61 = vadd.f32 %v641_v44, %v383_v6  ;;  %v372_v11 = vmul.f32 %v723_v7, %v332_v4 }
  0xcf   : > { %409 = vst.msk [vmem:[#allocation2 + $0x10] sm:$0xff] %vm251_vm0, %v405_v56  ;;  %v397_v14 = vadd.f32 %v641_v44, %v382_v10  ;;  %v371_v15 = vmul.f32 %v725_v9, %v331_v8 }
  0xd0   : > { %v387_v18 = vmul.f32 %v640_v39, %v372_v11 }
  0xd1   : > { %v404_v19 = vpack.c.bf16 %v398_v61, %v397_v14  ;;  %v386_v20 = vmul.f32 %v640_v39, %v371_v15 }
  0xd2   : > { %v402_v21 = vadd.f32 %v641_v44, %v387_v18  ;;  %v411_v12 = vld [vmem:[#allocation2] sm:$0xff] }
  0xd3   : > { %408 = vst.msk [vmem:[#allocation2 + $0x8] sm:$0xff] %vm251_vm0, %v404_v19  ;;  %v401_v16 = vadd.f32 %v641_v44, %v386_v20  ;;  %674 = vmatprep.mubr.msk.bf16.mxu0 %vm251_vm0, %v411_v12 }
  0xd5   : > { %v406_v13 = vpack.c.bf16 %v402_v21, %v401_v16 }
  0xd6   : > { %v413_v17 = vld [vmem:[#allocation2 + $0x10] sm:$0xff] }
  0xd7   : > { %410 = vst.msk [vmem:[#allocation2 + $0x18] sm:$0xff] %vm251_vm0, %v406_v13  ;;  %678 = vmatprep.mubr.msk.bf16.mxu1 %vm251_vm0, %v413_v17 }
  0xda   : > { %v412_v22 = vld [vmem:[#allocation2 + $0x8] sm:$0xff] }
  0xdb   : > { %675 = vmatmul.mubr.msk.bf16.vlgmr.msra.gmra.mrb[0].mxu0 %vm251_vm0, %v412_v22 }
  0xde   : > { %v414_v23 = vld [vmem:[#allocation2 + $0x18] sm:$0xff] }
  0xdf   : > { %679 = vmatmul.mubr.msk.bf16.vlgmr.msra.gmra.mrb[0].mxu1 %vm251_vm0, %v414_v23 }
 0x1ae   : > { %v676_v24 = vpop.f32.mrb[0].mxu0 }
 0x1af   : > { %v658_v25 = vpack.c.bf16 %v676_v24, %v676_v24  ;;  %v468_v26 = vpop.f32.mrb[1].mxu0 }
 0x1b0   : > { %v656_v27 = vpack.c.bf16 %v468_v26, %v468_v26  ;;  %v677_v28 = vpop.f32.mrb[2].mxu0 }
 0x1b1   : > { %534 = vst.msk [vmem:[%s236_s13 + $0x8] sm:$0xf] %vm531_vm1, %v658_v25  ;;  %v659_v29 = vpack.c.bf16 %v677_v28, %v677_v28  ;;  %v471_v30 = vpop.f32.mrb[3].mxu0 }
 0x1b2   : > { %532 = vst.msk [vmem:[%s236_s13] sm:$0xf] %vm531_vm1, %v656_v27  ;;  %v657_v31 = vpack.c.bf16 %v471_v30, %v471_v30  ;;  %v680_v32 = vpop.f32.mrb[0].mxu1 }
 0x1b3   : > { %535 = vst.msk [vmem:[%s236_s13 + $0xc] sm:$0xf] %vm531_vm1, %v659_v29  ;;  %v662_v33 = vpack.c.bf16 %v680_v32, %v680_v32  ;;  %v484_v34 = vpop.f32.mrb[1].mxu1 }
 0x1b4   : > { %533 = vst.msk [vmem:[%s236_s13 + $0x4] sm:$0xf] %vm531_vm1, %v657_v31  ;;  %v660_v35 = vpack.c.bf16 %v484_v34, %v484_v34  ;;  %v681_v36 = vpop.f32.mrb[2].mxu1 }
 0x1b5   : > { %538 = vst.msk [vmem:[%s236_s13 + $0x18] sm:$0xf] %vm531_vm1, %v662_v33  ;;  %v663_v37 = vpack.c.bf16 %v681_v36, %v681_v36  ;;  %v487_v38 = vpop.f32.mrb[3].mxu1 }
 0x1b6   : > { %536 = vst.msk [vmem:[%s236_s13 + $0x10] sm:$0xf] %vm531_vm1, %v660_v35  ;;  %v661_v39 = vpack.c.bf16 %v487_v38, %v487_v38 }
 0x1b7   : > { %539 = vst.msk [vmem:[%s236_s13 + $0x1c] sm:$0xf] %vm531_vm1, %v663_v37 }
 0x1b8   : > { %537 = vst.msk [vmem:[%s236_s13 + $0x14] sm:$0xf] %vm531_vm1, %v661_v39 }
 0x1b9 PF: > { %s14_s17 = sadd.s32 1, %s748_s17   ;;  %s945_s15 = smov %s744_s16 }
 0x1ba   : > { %p11_p5 = scmp.ge.s32.totalorder %s14_s17, 4   ;;  %s946_s16 = smov %s948_s18 }
 0x1bc   :  { %13 = sbr.rel (!%p11_p5) target bundleno = 2 (0x2), region = 73 }

// kernel: spatial_transformer.15
= control target key start
LH: loop header
LB: loop body
LE: loop exit
PB: predicated region body
PF: predicated region fallthrough
CT: control target
= control target key end

     0   :  { %s770_s15 = smov 0   ;;  %s772_s16 = smov 0   ;;  %s866_s0 = inlined_call_operand.vmem [shape: bf16[128,32], index: 0, kind: input, shape index: {}]   ;;  %s867_s1 = inlined_call_operand.vmem [shape: f32[32,32], index: 1, kind: input, shape index: {}]   ;;  %s868_s2 = inlined_call_operand.vmem [shape: f32[1,32], index: 2, kind: input, shape index: {}]   ;;  %s869_s3 = inlined_call_operand.vmem [shape: f32[128,32], index: 3, kind: input, shape index: {}]   ;;  %s870_s4 = inlined_call_operand.vmem [shape: f32[128,32], index: 4, kind: output, shape index: {}]  }
   0x1   :  { %s774_s17 = smov 0  }
   0x2 LB: > { %s33_s18 = sadd.s32 1, %s738_s16  ;;  %p651_p0 = scmp.ge.s32.totalorder %s742_s17, 1  ;;  %s742_s17 = sphi %s774_s17, %s14_s17   ;;  %s738_s16 = sphi %s772_s16, %s872_s16   ;;  %s734_s15 = sphi %s770_s15, %s871_s15  }
   0x3   : > { %p35_p1 = scmp.ge.s32.totalorder %s33_s18, 2  ;;  %p229_p2 = scmp.lt.s32.totalorder %s742_s17, 3 }
   0x5   : > { %s874_s18 = smov (%p35_p1, %s33_s18), 0  ;;  %p230_p3 = pnand %p651_p0, %p229_p2 }
   0x6   : > { %v349_v0 = vld [vmem:[%s867_s1] sm:$0xff] (!%p230_p3)  ;;  %v350_v1 = vld [vmem:[%s867_s1 + $0x8] sm:$0xff] (!%p230_p3)  ;;  %v351_v2 = vld [vmem:[%s867_s1 + $0x10] sm:$0xff] (!%p230_p3)  ;;  %s652_s25 = sshll.u32 (!%p230_p3), %s734_s15, 3  ;;  %vm324_vm0 = vcmask (!%p230_p3), 261120   ;;  %v744_v5 = vmov (!%p230_p3), 0.0  }
   0x7   : > { %233 = sbr.rel (%p230_p3) target bundleno = 250 (0xfa), region = 36  ;;  %v353_v3 = vpack.c.bf16 (!%p230_p3), %v350_v1, %v349_v0  ;;  %v352_v4 = vld [vmem:[%s867_s1 + $0x18] sm:$0xff] (!%p230_p3)  ;;  %p281_p4 = scmp.lt.s32.totalorder (!%p230_p3), %s652_s25, 15  ;;  %327 = vst.msk [vmem:[#allocation2 + $0x10] sm:$0xff] (!%p230_p3), %vm324_vm0, %v744_v5  ;;  %325 = vst.msk [vmem:[#allocation2] sm:$0xff] (!%p230_p3), %vm324_vm0, %v744_v5 }
   0x8   : > { %326 = vst.msk [vmem:[#allocation2 + $0x8] sm:$0xff] (!%p230_p3), %vm324_vm0, %v744_v5  ;;  %328 = vst.msk [vmem:[#allocation2 + $0x18] sm:$0xff] (!%p230_p3), %vm324_vm0, %v744_v5  ;;  %v354_v6 = vpack.c.bf16 (!%p230_p3), %v352_v4, %v351_v2  ;;  %v666_v35 = vld [vmem:[%s868_s2] ss:$0 sm:$0xff] (!%p230_p3) }
   0x9   : > { %329 = vst.msk [vmem:[#allocation2 + $0x20] sm:$0xff] (!%p230_p3), %vm324_vm0, %v744_v5  ;;  %330 = vst.msk [vmem:[#allocation2 + $0x28] sm:$0xff] (!%p230_p3), %vm324_vm0, %v744_v5  ;;  %675 = vmatprep.subr.bf16.mxu0 (!%p230_p3), %v353_v3  ;;  %687 = vmatprep.subr.bf16.mxu1 (!%p230_p3), %v353_v3 }
   0xa   : > { %331 = vst.msk [vmem:[#allocation2 + $0x30] sm:$0xff] (!%p230_p3), %vm324_vm0, %v744_v5  ;;  %332 = vst.msk [vmem:[#allocation2 + $0x38] sm:$0xff] (!%p230_p3), %vm324_vm0, %v744_v5  ;;  %676 = vmatpush3.bf16.msra.mxu0 (!%p230_p3), %v353_v3  ;;  %689 = vmatpush3.bf16.msra.mxu1 (!%p230_p3), %v353_v3 }
   0xb   : > { %677 = vmatprep.subr.bf16.mxu0 (!%p230_p3), %v354_v6  ;;  %688 = vmatprep.subr.bf16.mxu1 (!%p230_p3), %v354_v6 }
   0xe   : > { %s876_s25 = smov (!%p281_p4, %s652_s25), 15  ;;  %678 = vmatpush3.bf16.msra.mxu0 %v354_v6  ;;  %690 = vmatpush3.bf16.msra.mxu1 %v354_v6  ;;  %v335_v11 = vld [vmem:[#allocation2 + $0x10] sm:$0xff]  ;;  %v333_v13 = vld [vmem:[#allocation2] sm:$0xff] }
   0xf   : > { %s653_s28 = sshll.u32 %s876_s25, 2  ;;  %v336_v16 = vld [vmem:[#allocation2 + $0x18] sm:$0xff]  ;;  %v334_v21 = vld [vmem:[#allocation2 + $0x8] sm:$0xff]  ;;  %s655_s6 = sshll.u32 %s876_s25, 3 }
  0x10   : > { %s287_s5 = scalar_lea.vmem %s866_s0, %s653_s28  ;;  %v337_v15 = vld [vmem:[#allocation2 + $0x20] sm:$0xff]  ;;  %v338_v26 = vld [vmem:[#allocation2 + $0x28] sm:$0xff]  ;;  %s308_s9 = scalar_lea.vmem %s869_s3, %s655_s6 }
  0x11   : > { %v716_v7 = vld [vmem:[%s287_s5] sm:$0xff]   ;;  %v717_v8 = vld [vmem:[%s287_s5 + $0x10] sm:$0xff]   ;;  %v718_v9 = vld [vmem:[%s287_s5 + $0x8] sm:$0xff]   ;;  %s839_s14 = scalar_lea.vmem %s870_s4, %s655_s6 }
  0x12   : > { %679 = vmatprep.mubr.msk.bf16.mxu0 %vm324_vm0, %v716_v7  ;;  %683 = vmatprep.mubr.msk.bf16.mxu1 %vm324_vm0, %v717_v8  ;;  %v719_v10 = vld [vmem:[%s287_s5 + $0x18] sm:$0xff]   ;;  %v339_v12 = vld [vmem:[#allocation2 + $0x30] sm:$0xff]  ;;  %v495_v36 = vld [vmem:[%s308_s9] sm:$0xff] }
  0x13   : > { %680 = vmatmul.mubr.msk.bf16.vlgmr.msra.gmra.mrb[0].mxu0 %vm324_vm0, %v718_v9  ;;  %684 = vmatmul.mubr.msk.bf16.vlgmr.msra.gmra.mrb[0].mxu1 %vm324_vm0, %v719_v10  ;;  %v340_v20 = vld [vmem:[#allocation2 + $0x38] sm:$0xff]  ;;  %v497_v37 = vld [vmem:[%s308_s9 + $0x10] sm:$0xff]  ;;  %v496_v40 = vld [vmem:[%s308_s9 + $0x8] sm:$0xff] }
  0x14   : > { %v498_v38 = vld [vmem:[%s308_s9 + $0x18] sm:$0xff]  ;;  %v501_v41 = vld [vmem:[%s308_s9 + $0x30] sm:$0xff]  ;;  %v499_v45 = vld [vmem:[%s308_s9 + $0x20] sm:$0xff] }
  0x15   : > { %v502_v50 = vld [vmem:[%s308_s9 + $0x38] sm:$0xff]  ;;  %v500_v56 = vld [vmem:[%s308_s9 + $0x28] sm:$0xff] }
  0xe6   : > { %v681_v14 = vpop.f32.mrb[0].mxu0  ;;  %v685_v18 = vpop.f32.mrb[0].mxu1 }
  0xe7   : > { %v455_v17 = vadd.f32 %v681_v14, %v335_v11  ;;  %v422_v19 = vpop.f32.mrb[1].mxu0  ;;  %v459_v22 = vadd.f32 %v685_v18, %v339_v12  ;;  %v438_v24 = vpop.f32.mrb[1].mxu1 }
  0xe8   : > { %v453_v23 = vadd.f32 %v422_v19, %v333_v13  ;;  %v682_v25 = vpop.f32.mrb[2].mxu0  ;;  %v457_v27 = vadd.f32 %v438_v24, %v337_v15  ;;  %v686_v29 = vpop.f32.mrb[2].mxu1 }
  0xe9   : > { %463 = vst.msk [vmem:[#allocation2 + $0x10] sm:$0xff] %vm324_vm0, %v455_v17  ;;  %v456_v28 = vadd.f32 %v682_v25, %v336_v16  ;;  %v425_v30 = vpop.f32.mrb[3].mxu0  ;;  %467 = vst.msk [vmem:[#allocation2 + $0x30] sm:$0xff] %vm324_vm0, %v459_v22  ;;  %v460_v31 = vadd.f32 %v686_v29, %v340_v20  ;;  %v441_v33 = vpop.f32.mrb[3].mxu1 }
  0xea   : > { %461 = vst.msk [vmem:[#allocation2] sm:$0xff] %vm324_vm0, %v453_v23  ;;  %v454_v32 = vadd.f32 %v425_v30, %v334_v21  ;;  %465 = vst.msk [vmem:[#allocation2 + $0x20] sm:$0xff] %vm324_vm0, %v457_v27  ;;  %v458_v34 = vadd.f32 %v441_v33, %v338_v26 }
  0xeb   : > { %464 = vst.msk [vmem:[#allocation2 + $0x18] sm:$0xff] %vm324_vm0, %v456_v28  ;;  %468 = vst.msk [vmem:[#allocation2 + $0x38] sm:$0xff] %vm324_vm0, %v460_v31 }
  0xec   : > { %462 = vst.msk [vmem:[#allocation2 + $0x8] sm:$0xff] %vm324_vm0, %v454_v32  ;;  %466 = vst.msk [vmem:[#allocation2 + $0x28] sm:$0xff] %vm324_vm0, %v458_v34 }
  0xf0   : > { %v474_v39 = vld [vmem:[#allocation2 + $0x10] sm:$0xff] }
  0xf1   : > { %v489_v42 = vadd.f32 %v666_v35, %v474_v39  ;;  %v478_v43 = vld [vmem:[#allocation2 + $0x30] sm:$0xff]  ;;  %v472_v44 = vld [vmem:[#allocation2] sm:$0xff] }
  0xf2   : > { %v493_v46 = vadd.f32 %v666_v35, %v478_v43  ;;  %v487_v47 = vadd.f32 %v666_v35, %v472_v44  ;;  %v476_v48 = vld [vmem:[#allocation2 + $0x20] sm:$0xff]  ;;  %v475_v49 = vld [vmem:[#allocation2 + $0x18] sm:$0xff] }
  0xf3   : > { %v505_v51 = vadd.f32 %v497_v37, %v489_v42  ;;  %v491_v52 = vadd.f32 %v666_v35, %v476_v48  ;;  %v490_v53 = vadd.f32 %v666_v35, %v475_v49  ;;  %v479_v54 = vld [vmem:[#allocation2 + $0x38] sm:$0xff]  ;;  %v473_v55 = vld [vmem:[#allocation2 + $0x8] sm:$0xff] }
  0xf4   : > { %v509_v57 = vadd.f32 %v501_v41, %v493_v46  ;;  %v503_v58 = vadd.f32 %v495_v36, %v487_v47  ;;  %v494_v59 = vadd.f32 %v666_v35, %v479_v54  ;;  %v488_v60 = vadd.f32 %v666_v35, %v473_v55  ;;  %v477_v61 = vld [vmem:[#allocation2 + $0x28] sm:$0xff] }
  0xf5   : > { %513 = vst.msk [vmem:[%s839_s14 + $0x10] sm:$0xff] %vm324_vm0, %v505_v51  ;;  %v507_v62 = vadd.f32 %v499_v45, %v491_v52  ;;  %v506_v63 = vadd.f32 %v498_v38, %v490_v53  ;;  %v492_v0 = vadd.f32 %v666_v35, %v477_v61 }
  0xf6   : > { %517 = vst.msk [vmem:[%s839_s14 + $0x30] sm:$0xff] %vm324_vm0, %v509_v57  ;;  %511 = vst.msk [vmem:[%s839_s14] sm:$0xff] %vm324_vm0, %v503_v58  ;;  %v510_v1 = vadd.f32 %v502_v50, %v494_v59  ;;  %v504_v2 = vadd.f32 %v496_v40, %v488_v60 }
  0xf7   : > { %515 = vst.msk [vmem:[%s839_s14 + $0x20] sm:$0xff] %vm324_vm0, %v507_v62  ;;  %514 = vst.msk [vmem:[%s839_s14 + $0x18] sm:$0xff] %vm324_vm0, %v506_v63  ;;  %v508_v3 = vadd.f32 %v500_v56, %v492_v0 }
  0xf8   : > { %518 = vst.msk [vmem:[%s839_s14 + $0x38] sm:$0xff] %vm324_vm0, %v510_v1  ;;  %512 = vst.msk [vmem:[%s839_s14 + $0x8] sm:$0xff] %vm324_vm0, %v504_v2 }
  0xf9   : > { %516 = vst.msk [vmem:[%s839_s14 + $0x28] sm:$0xff] %vm324_vm0, %v508_v3 }
  0xfa PF: > { %s14_s17 = sadd.s32 1, %s742_s17   ;;  %s871_s15 = smov %s738_s16 }
  0xfb   : > { %p11_p5 = scmp.ge.s32.totalorder %s14_s17, 4   ;;  %s872_s16 = smov %s874_s18 }
  0xfd   :  { %13 = sbr.rel (!%p11_p5) target bundleno = 2 (0x2), region = 83 }

// kernel: spatial_transformer.19
= control target key start
LH: loop header
LB: loop body
LE: loop exit
PB: predicated region body
PF: predicated region fallthrough
CT: control target
= control target key end

     0   :  { %s1149_s24 = smov 0   ;;  %s1151_s25 = smov 0   ;;  %s1359_s0 = inlined_call_operand.vmem [shape: f32[128,32], index: 0, kind: input, shape index: {}]   ;;  %s1360_s1 = inlined_call_operand.vmem [shape: f32[1,32], index: 1, kind: input, shape index: {}]   ;;  %s1361_s2 = inlined_call_operand.vmem [shape: f32[1,32], index: 2, kind: input, shape index: {}]   ;;  %s1362_s3 = inlined_call_operand.vmem [shape: f32[32,128], index: 3, kind: input, shape index: {}]   ;;  %s1363_s4 = inlined_call_operand.vmem [shape: f32[1,128], index: 4, kind: input, shape index: {}]   ;;  %s1364_s5 = inlined_call_operand.vmem [shape: f32[32,128], index: 5, kind: input, shape index: {}]   ;;  %s1365_s6 = inlined_call_operand.vmem [shape: f32[1,128], index: 6, kind: input, shape index: {}]   ;;  %s1366_s7 = inlined_call_operand.vmem [shape: bf16[128,128], index: 7, kind: output, shape index: {}]  }
   0x1   :  { %s1153_s26 = smov 0  }
   0x2 LB: > { %s29_s27 = sadd.s32 1, %s1103_s25  ;;  %p935_p0 = scmp.ge.s32.totalorder %s1107_s26, 1  ;;  %s1107_s26 = sphi %s1153_s26, %s17_s26   ;;  %s1103_s25 = sphi %s1151_s25, %s1368_s25   ;;  %s1099_s24 = sphi %s1149_s24, %s1367_s24  }
   0x3   : > { %p31_p1 = scmp.ge.s32.totalorder %s29_s27, 2  ;;  %p286_p2 = scmp.lt.s32.totalorder %s1107_s26, 3 }
   0x5   : > { %s1370_s27 = smov (%p31_p1, %s29_s27), 0  ;;  %p287_p3 = pnand %p935_p0, %p286_p2 }
   0x6   : > { %s936_s28 = sshll.u32 (!%p287_p3), %s1099_s24, 3  ;;  %vm377_vm0 = vcmask (!%p287_p3), 261120   ;;  %v541_v32 = vld [vmem:[%s1362_s3] sm:$0xff] (!%p287_p3)  ;;  %v542_v33 = vld [vmem:[%s1362_s3 + $0x8] sm:$0xff] (!%p287_p3)  ;;  %v543_v38 = vld [vmem:[%s1362_s3 + $0x10] sm:$0xff] (!%p287_p3) }
   0x7   : > { %290 = sbr.rel (%p287_p3) target bundleno = 464 (0x1d0), region = 48  ;;  %p336_p4 = scmp.lt.s32.totalorder (!%p287_p3), %s936_s28, 15  ;;  %v632_v34 = vld [vmem:[%s1364_s5] sm:$0xff] (!%p287_p3)  ;;  %v545_v35 = vpack.c.bf16 (!%p287_p3), %v542_v33, %v541_v32  ;;  %v633_v36 = vld [vmem:[%s1364_s5 + $0x8] sm:$0xff] (!%p287_p3)  ;;  %v544_v39 = vld [vmem:[%s1362_s3 + $0x18] sm:$0xff] (!%p287_p3) }
   0x8   : > { %v636_v37 = vpack.c.bf16 (!%p287_p3), %v633_v36, %v632_v34  ;;  %v634_v40 = vld [vmem:[%s1364_s5 + $0x10] sm:$0xff] (!%p287_p3)  ;;  %v546_v41 = vpack.c.bf16 (!%p287_p3), %v544_v39, %v543_v38  ;;  %v635_v42 = vld [vmem:[%s1364_s5 + $0x18] sm:$0xff] (!%p287_p3) }
   0x9   : > { %1005 = vmatprep.subr.bf16.mxu0 (!%p287_p3), %v545_v35  ;;  %v637_v43 = vpack.c.bf16 (!%p287_p3), %v635_v42, %v634_v40 }
   0xa   : > { %1017 = vmatprep.subr.bf16.mxu1 (!%p287_p3), %v636_v37  ;;  %1006 = vmatpush3.bf16.msra.mxu0 (!%p287_p3), %v545_v35 }
   0xb   : > { %1018 = vmatpush3.bf16.msra.mxu1 (!%p287_p3), %v636_v37  ;;  %1007 = vmatprep.subr.bf16.mxu0 (!%p287_p3), %v546_v41 }
   0xc   : > { %1019 = vmatprep.subr.bf16.mxu1 (!%p287_p3), %v637_v43 }
   0xe   : > { %s1372_s28 = smov (!%p336_p4, %s936_s28), 15  ;;  %1008 = vmatpush3.bf16.msra.mxu0 %v546_v41 }
   0xf   : > { %s937_s29 = sshll.u32 %s1372_s28, 3  ;;  %1020 = vmatpush3.bf16.msra.mxu1 %v637_v43  ;;  %s939_s15 = sshll.u32 %s1372_s28, 2 }
  0x10   : > { %s339_s9 = scalar_lea.vmem %s1359_s0, %s937_s29  ;;  %s1339_s18 = scalar_lea.vmem %s1366_s7, %s939_s15 }
  0x11   : > { %v1173_v0 = vld [vmem:[%s339_s9 + $0x10] sm:$0xff]  ;;  %v1175_v1 = vld [vmem:[%s339_s9] sm:$0xff]  ;;  %v1177_v2 = vld [vmem:[%s339_s9 + $0x18] sm:$0xff] }
  0x12   : > { %v384_v3 = vsel %vm377_vm0, %v1173_v0, 0.0  ;;  %v378_v4 = vsel %vm377_vm0, %v1175_v1, 0.0  ;;  %v1183_v5 = vld [vmem:[%s339_s9 + $0x8] sm:$0xff]  ;;  %v387_v6 = vsel %vm377_vm0, %v1177_v2, 0.0  ;;  %v411_v9 = vmul.f32 %v1175_v1, %v1175_v1  ;;  %v1203_v17 = vld [vmem:[%s339_s9 + $0x20] sm:$0xff]  ;;  %v1209_v20 = vld [vmem:[%s339_s9 + $0x38] sm:$0xff] }
  0x13   : > { %385 = vadd.xlane.f32.xlu1 %v384_v3  ;;  %379 = vadd.xlane.f32.xlu0 %v378_v4  ;;  %v381_v7 = vsel %vm377_vm0, %v1183_v5, 0.0  ;;  %v412_v8 = vmul.f32 %v1183_v5, %v1183_v5  ;;  %v414_v12 = vmul.f32 %v1177_v2, %v1177_v2  ;;  %v413_v13 = vmul.f32 %v1173_v0, %v1173_v0  ;;  %v1201_v16 = vld [vmem:[%s339_s9 + $0x28] sm:$0xff]  ;;  %v1211_v21 = vld [vmem:[%s339_s9 + $0x30] sm:$0xff] }
  0x14   : > { %v419_v11 = vsel %vm377_vm0, %v411_v9, 0.0  ;;  %v393_v18 = vsel %vm377_vm0, %v1201_v16, 0.0  ;;  %v390_v19 = vsel %vm377_vm0, %v1203_v17, 0.0  ;;  %v399_v22 = vsel %vm377_vm0, %v1209_v20, 0.0 }
  0x15   : > { %v422_v10 = vsel %vm377_vm0, %v412_v8, 0.0  ;;  %v428_v14 = vsel %vm377_vm0, %v414_v12, 0.0  ;;  %v425_v15 = vsel %vm377_vm0, %v413_v13, 0.0  ;;  %v396_v23 = vsel %vm377_vm0, %v1211_v21, 0.0 }
  0x16   : > { %v416_v24 = vmul.f32 %v1201_v16, %v1201_v16  ;;  %v415_v25 = vmul.f32 %v1203_v17, %v1203_v17  ;;  %v418_v28 = vmul.f32 %v1209_v20, %v1209_v20  ;;  %v417_v29 = vmul.f32 %v1211_v21, %v1211_v21 }
  0x17   : > { %388 = vadd.xlane.f32.xlu1 %v387_v6  ;;  %382 = vadd.xlane.f32.xlu0 %v381_v7 }
  0x18   : > { %v434_v26 = vsel %vm377_vm0, %v416_v24, 0.0  ;;  %v431_v27 = vsel %vm377_vm0, %v415_v25, 0.0  ;;  %v440_v30 = vsel %vm377_vm0, %v418_v28, 0.0  ;;  %v437_v31 = vsel %vm377_vm0, %v417_v29, 0.0  ;;  %v1268_v28 = vld [vmem:[%s1360_s1] ss:$0 sm:$0xff] }
  0x1b   : > { %423 = vadd.xlane.f32.xlu1 %v422_v10  ;;  %420 = vadd.xlane.f32.xlu0 %v419_v11 }
  0x1f   : > { %429 = vadd.xlane.f32.xlu1 %v428_v14  ;;  %426 = vadd.xlane.f32.xlu0 %v425_v15 }
  0x23   : > { %394 = vadd.xlane.f32.xlu1 %v393_v18  ;;  %391 = vadd.xlane.f32.xlu0 %v390_v19 }
  0x27   : > { %400 = vadd.xlane.f32.xlu1 %v399_v22  ;;  %397 = vadd.xlane.f32.xlu0 %v396_v23 }
  0x2b   : > { %435 = vadd.xlane.f32.xlu1 %v434_v26  ;;  %432 = vadd.xlane.f32.xlu0 %v431_v27 }
  0x2f   : > { %441 = vadd.xlane.f32.xlu1 %v440_v30  ;;  %438 = vadd.xlane.f32.xlu0 %v437_v31 }
  0xa0   : > { %v386_v44 = vpop.xlane.xlu1 %385  ;;  %v380_v45 = vpop.xlane.xlu0 %379 }
  0xa1   : > { %v403_v48 = vmul.f32 0.03125, %v380_v45  ;;  %v1253_v50 = vmul.f32 0.03125, %v386_v44 }
  0xa3   : > { %v459_v54 = vmul.f32 %v403_v48, %v403_v48  ;;  %v461_v60 = vmul.f32 %v1253_v50, %v1253_v50  ;;  %v451_v22 = vsub.f32 %v1175_v1, %v403_v48  ;;  %v1273_v1 = vld [vmem:[%s1361_s2] ss:$0 sm:$0xff]  ;;  %v453_v38 = vsub.f32 %v1173_v0, %v1253_v50 }
  0xa4   : > { %v389_v46 = vpop.xlane.xlu1 %388  ;;  %v383_v47 = vpop.xlane.xlu0 %382 }
  0xa5   : > { %v404_v49 = vmul.f32 0.03125, %v383_v47  ;;  %v1255_v51 = vmul.f32 0.03125, %v389_v46 }
  0xa7   : > { %v460_v55 = vmul.f32 %v404_v49, %v404_v49  ;;  %v462_v61 = vmul.f32 %v1255_v51, %v1255_v51  ;;  %v452_v23 = vsub.f32 %v1183_v5, %v404_v49  ;;  %v454_v39 = vsub.f32 %v1177_v2, %v1255_v51 }
  0xa8   : > { %v424_v52 = vpop.xlane.xlu1 %423  ;;  %v421_v53 = vpop.xlane.xlu0 %420 }
  0xa9   : > { %v444_v56 = vmul.f32 0.03125, %v424_v52  ;;  %v443_v57 = vmul.f32 0.03125, %v421_v53 }
  0xab   : > { %v468_v58 = vsub.f32 %v444_v56, %v460_v55  ;;  %v467_v59 = vsub.f32 %v443_v57, %v459_v54 }
  0xac   : > { %v430_v62 = vpop.xlane.xlu1 %429  ;;  %v427_v63 = vpop.xlane.xlu0 %426 }
  0xad   : > { %v476_v3 = vadd.f32 1e-05, %v468_v58  ;;  %v475_v4 = vadd.f32 1e-05, %v467_v59  ;;  %v446_v6 = vmul.f32 0.03125, %v430_v62  ;;  %v445_v7 = vmul.f32 0.03125, %v427_v63 }
  0xaf   : > { %1053 = vrsqrt.f32 %v476_v3  ;;  %v470_v8 = vsub.f32 %v446_v6, %v462_v61  ;;  %v469_v9 = vsub.f32 %v445_v7, %v461_v60 }
  0xb0   : > { %1055 = vrsqrt.f32 %v475_v4  ;;  %v395_v10 = vpop.xlane.xlu1 %394  ;;  %v392_v11 = vpop.xlane.xlu0 %391 }
  0xb1   : > { %v478_v12 = vadd.f32 1e-05, %v470_v8  ;;  %v477_v13 = vadd.f32 1e-05, %v469_v9  ;;  %v408_v18 = vmul.f32 0.03125, %v395_v10  ;;  %v407_v19 = vmul.f32 0.03125, %v392_v11 }
  0xb3   : > { %1057 = vrsqrt.f32 %v478_v12  ;;  %v464_v29 = vmul.f32 %v408_v18, %v408_v18  ;;  %v463_v30 = vmul.f32 %v407_v19, %v407_v19  ;;  %v456_v3 = vsub.f32 %v1201_v16, %v408_v18 }
  0xb4   : > { %1059 = vrsqrt.f32 %v477_v13  ;;  %v401_v14 = vpop.xlane.xlu1 %400  ;;  %v398_v15 = vpop.xlane.xlu0 %397  ;;  %v455_v6 = vsub.f32 %v1203_v17, %v407_v19 }
  0xb5   : > { %v1263_v24 = vmul.f32 0.03125, %v401_v14  ;;  %v409_v35 = vmul.f32 0.03125, %v398_v15 }
  0xb7   : > { %v466_v41 = vmul.f32 %v1263_v24, %v1263_v24  ;;  %v465_v50 = vmul.f32 %v409_v35, %v409_v35  ;;  %v458_v11 = vsub.f32 %v1209_v20, %v1263_v24  ;;  %v457_v14 = vsub.f32 %v1211_v21, %v409_v35 }
  0xb8   : > { %v436_v25 = vpop.xlane.xlu1 %435  ;;  %v433_v26 = vpop.xlane.xlu0 %432 }
  0xb9   : > { %v1054_v27 = vpop.eup %1053  ;;  %v448_v31 = vmul.f32 0.03125, %v436_v25  ;;  %v447_v32 = vmul.f32 0.03125, %v433_v26 }
  0xba   : > { %v1056_v33 = vpop.eup %1055  ;;  %v492_v34 = vmul.f32 %v1054_v27, %v452_v23 }
  0xbb   : > { %v491_v5 = vmul.f32 %v1056_v33, %v451_v22  ;;  %v472_v36 = vsub.f32 %v448_v31, %v464_v29  ;;  %v471_v37 = vsub.f32 %v447_v32, %v463_v30 }
  0xbc   : > { %v507_v40 = vmul.f32 %v1268_v28, %v492_v34  ;;  %v442_v42 = vpop.xlane.xlu1 %441  ;;  %v439_v43 = vpop.xlane.xlu0 %438 }
  0xbd   : > { %v1058_v44 = vpop.eup %1057  ;;  %v506_v45 = vmul.f32 %v1268_v28, %v491_v5  ;;  %v480_v46 = vadd.f32 1e-05, %v472_v36  ;;  %v479_v47 = vadd.f32 1e-05, %v471_v37  ;;  %v450_v48 = vmul.f32 0.03125, %v442_v42 }
  0xbe   : > { %v1060_v49 = vpop.eup %1059  ;;  %v522_v52 = vadd.f32 %v1273_v1, %v507_v40  ;;  %v494_v0 = vmul.f32 %v1058_v44, %v454_v39  ;;  %v449_v53 = vmul.f32 0.03125, %v439_v43 }
  0xbf   : > { %v521_v2 = vadd.f32 %v1273_v1, %v506_v45  ;;  %v493_v51 = vmul.f32 %v1060_v49, %v453_v38  ;;  %1061 = vrsqrt.f32 %v480_v46  ;;  %v474_v54 = vsub.f32 %v450_v48, %v466_v41  ;;  %v1326_v45 = vld [vmem:[%s1363_s4] ss:$0 sm:$0xff] }
  0xc0   : > { %v509_v55 = vmul.f32 %v1268_v28, %v494_v0  ;;  %1063 = vrsqrt.f32 %v479_v47  ;;  %v473_v56 = vsub.f32 %v449_v53, %v465_v50 }
  0xc1   : > { %v529_v57 = vpack.c.bf16 %v522_v52, %v521_v2  ;;  %v508_v58 = vmul.f32 %v1268_v28, %v493_v51  ;;  %v482_v59 = vadd.f32 1e-05, %v474_v54 }
  0xc2   : > { %v524_v60 = vadd.f32 %v1273_v1, %v509_v55  ;;  %v481_v61 = vadd.f32 1e-05, %v473_v56 }
  0xc3   : > { %533 = vst.msk [vmem:[#allocation2] sm:$0xff] %vm377_vm0, %v529_v57  ;;  %v523_v62 = vadd.f32 %v1273_v1, %v508_v58  ;;  %1065 = vrsqrt.f32 %v482_v59 }
  0xc4   : > { %1067 = vrsqrt.f32 %v481_v61 }
  0xc5   : > { %v530_v63 = vpack.c.bf16 %v524_v60, %v523_v62 }
  0xc7   : > { %534 = vst.msk [vmem:[#allocation2 + $0x8] sm:$0xff] %vm377_vm0, %v530_v63 }
  0xc9   : > { %v1062_v4 = vpop.eup %1061 }
  0xca   : > { %v1064_v7 = vpop.eup %1063  ;;  %v496_v8 = vmul.f32 %v1062_v4, %v456_v3  ;;  %v537_v9 = vld [vmem:[#allocation2] sm:$0xff] }
  0xcb   : > { %v495_v10 = vmul.f32 %v1064_v7, %v455_v6  ;;  %1009 = vmatprep.mubr.msk.bf16.mxu0 %vm377_vm0, %v537_v9  ;;  %1021 = vmatprep.mubr.msk.bf16.mxu1 %vm377_vm0, %v537_v9 }
  0xcc   : > { %v511_v12 = vmul.f32 %v1268_v28, %v496_v8 }
  0xcd   : > { %v1066_v13 = vpop.eup %1065  ;;  %v510_v16 = vmul.f32 %v1268_v28, %v495_v10 }
  0xce   : > { %v1068_v15 = vpop.eup %1067  ;;  %v526_v17 = vadd.f32 %v1273_v1, %v511_v12  ;;  %v498_v18 = vmul.f32 %v1066_v13, %v458_v11  ;;  %v538_v19 = vld [vmem:[#allocation2 + $0x8] sm:$0xff] }
  0xcf   : > { %v525_v22 = vadd.f32 %v1273_v1, %v510_v16  ;;  %v497_v23 = vmul.f32 %v1068_v15, %v457_v14  ;;  %1010 = vmatmul.mubr.msk.bf16.vlgmr.msra.gmra.mrb[0].mxu0 %vm377_vm0, %v538_v19  ;;  %1022 = vmatmul.mubr.msk.bf16.vlgmr.msra.gmra.mrb[0].mxu1 %vm377_vm0, %v538_v19 }
  0xd0   : > { %v513_v20 = vmul.f32 %v1268_v28, %v498_v18 }
  0xd1   : > { %v531_v24 = vpack.c.bf16 %v526_v17, %v525_v22  ;;  %v512_v25 = vmul.f32 %v1268_v28, %v497_v23  ;;  %v1317_v28 = vld [vmem:[%s1365_s6] ss:$0 sm:$0xff] }
  0xd2   : > { %v528_v21 = vadd.f32 %v1273_v1, %v513_v20 }
  0xd3   : > { %535 = vst.msk [vmem:[#allocation2 + $0x10] sm:$0xff] %vm377_vm0, %v531_v24  ;;  %v527_v26 = vadd.f32 %v1273_v1, %v512_v25 }
  0xd5   : > { %v532_v27 = vpack.c.bf16 %v528_v21, %v527_v26 }
  0xd7   : > { %536 = vst.msk [vmem:[#allocation2 + $0x18] sm:$0xff] %vm377_vm0, %v532_v27 }
  0xda   : > { %v539_v29 = vld [vmem:[#allocation2 + $0x10] sm:$0xff] }
  0xdb   : > { %1013 = vmatprep.mubr.msk.bf16.mxu0 %vm377_vm0, %v539_v29  ;;  %1025 = vmatprep.mubr.msk.bf16.mxu1 %vm377_vm0, %v539_v29 }
  0xde   : > { %v540_v30 = vld [vmem:[#allocation2 + $0x18] sm:$0xff] }
  0xdf   : > { %1014 = vmatmul.mubr.msk.bf16.gmra.mrb[4].mxu0 %vm377_vm0, %v540_v30  ;;  %1026 = vmatmul.mubr.msk.bf16.gmra.mrb[4].mxu1 %vm377_vm0, %v540_v30 }
 0x1a2   : > { %v1011_v31 = vpop.f32.mrb[0].mxu0  ;;  %v1023_v32 = vpop.f32.mrb[0].mxu1 }
 0x1a3   : > { %v688_v33 = vadd.f32 %v1023_v32, %v1317_v28  ;;  %v601_v34 = vpop.f32.mrb[1].mxu0  ;;  %v679_v35 = vpop.f32.mrb[1].mxu1  ;;  %v610_v48 = vadd.f32 %v1011_v31, %v1326_v45 }
 0x1a4   : > { %v680_v1 = vadd.f32 %v1317_v28, %v679_v35  ;;  %v1012_v5 = vpop.f32.mrb[2].mxu0  ;;  %v1024_v36 = vpop.f32.mrb[2].mxu1  ;;  %v602_v2 = vadd.f32 %v1326_v45, %v601_v34 }
 0x1a5   : > { %v720_v37 = vmul.f32 0.70710677, %v688_v33  ;;  %v691_v38 = vadd.f32 %v1024_v36, %v1317_v28  ;;  %v604_v39 = vpop.f32.mrb[3].mxu0  ;;  %v682_v40 = vpop.f32.mrb[3].mxu1  ;;  %v712_v49 = vmul.f32 0.5, %v688_v33  ;;  %v613_v12 = vadd.f32 %v1012_v5, %v1326_v45 }
 0x1a6   : > { %v718_v41 = vmul.f32 0.70710677, %v680_v1  ;;  %v683_v42 = vadd.f32 %v1317_v28, %v682_v40  ;;  %v710_v51 = vmul.f32 0.5, %v680_v1  ;;  %v605_v15 = vadd.f32 %v1326_v45, %v604_v39 }
 0x1a7   : > { %1069 = verf.f32 %v720_v37  ;;  %v721_v43 = vmul.f32 0.70710677, %v691_v38  ;;  %v713_v60 = vmul.f32 0.5, %v691_v38 }
 0x1a8   : > { %1071 = verf.f32 %v718_v41  ;;  %v719_v44 = vmul.f32 0.70710677, %v683_v42  ;;  %v711_v6 = vmul.f32 0.5, %v683_v42 }
 0x1a9   : > { %1073 = verf.f32 %v721_v43 }
 0x1aa   : > { %1075 = verf.f32 %v719_v44 }
 0x1b1   : > { %v1070_v46 = vpop.eup %1069 }
 0x1b2   : > { %v1072_v47 = vpop.eup %1071  ;;  %v736_v52 = vadd.f32 1.0, %v1070_v46  ;;  %v1015_v0 = vpop.f32.mrb[4].mxu0 }
 0x1b3   : > { %v1027_v50 = vpop.f32.mrb[4].mxu1  ;;  %v1074_v53 = vpop.eup %1073  ;;  %v734_v54 = vadd.f32 1.0, %v1072_v47  ;;  %v626_v33 = vadd.f32 %v1015_v0, %v1326_v45 }
 0x1b4   : > { %v704_v55 = vadd.f32 %v1027_v50, %v1317_v28  ;;  %v617_v56 = vpop.f32.mrb[5].mxu0  ;;  %v695_v57 = vpop.f32.mrb[5].mxu1  ;;  %v744_v59 = vmul.f32 %v736_v52, %v712_v49  ;;  %v737_v61 = vadd.f32 1.0, %v1074_v53 }
 0x1b5   : > { %v1076_v58 = vpop.eup %1075  ;;  %v696_v62 = vadd.f32 %v1317_v28, %v695_v57  ;;  %v1016_v63 = vpop.f32.mrb[6].mxu0  ;;  %v742_v4 = vmul.f32 %v734_v54, %v710_v51  ;;  %v618_v35 = vadd.f32 %v1326_v45, %v617_v56 }
 0x1b6   : > { %v1028_v3 = vpop.f32.mrb[6].mxu1  ;;  %v735_v7 = vadd.f32 1.0, %v1076_v58  ;;  %v724_v8 = vmul.f32 0.70710677, %v704_v55  ;;  %v620_v9 = vpop.f32.mrb[7].mxu0  ;;  %v752_v11 = vmul.f32 %v744_v59, %v610_v48  ;;  %v745_v13 = vmul.f32 %v737_v61, %v713_v60 }
 0x1b7   : > { %v698_v10 = vpop.f32.mrb[7].mxu1  ;;  %v722_v14 = vmul.f32 0.70710677, %v696_v62  ;;  %v750_v16 = vmul.f32 %v742_v4, %v602_v2  ;;  %v707_v19 = vadd.f32 %v1028_v3, %v1317_v28  ;;  %v716_v29 = vmul.f32 0.5, %v704_v55 }
 0x1b8   : > { %v743_v17 = vmul.f32 %v735_v7, %v711_v6  ;;  %1077 = verf.f32 %v724_v8  ;;  %v753_v18 = vmul.f32 %v745_v13, %v613_v12  ;;  %v699_v23 = vadd.f32 %v1317_v28, %v698_v10 }
 0x1b9   : > { %1079 = verf.f32 %v722_v14  ;;  %v725_v24 = vmul.f32 0.70710677, %v707_v19  ;;  %v714_v31 = vmul.f32 0.5, %v696_v62  ;;  %v717_v38 = vmul.f32 0.5, %v707_v19 }
 0x1ba   : > { %v751_v22 = vmul.f32 %v743_v17, %v605_v15  ;;  %v978_v20 = vpack.c.bf16 %v753_v18, %v752_v11  ;;  %v723_v21 = vmul.f32 0.70710677, %v699_v23  ;;  %v715_v40 = vmul.f32 0.5, %v699_v23 }
 0x1bb   : > { %1081 = verf.f32 %v725_v24  ;;  %v629_v42 = vadd.f32 %v1016_v63, %v1326_v45  ;;  %v621_v44 = vadd.f32 %v1326_v45, %v620_v9 }
 0x1bc   : > { %v973_v25 = vpack.c.bf16 %v751_v22, %v750_v16  ;;  %990 = vst [vmem:[%s1339_s18 + $0x8] sm:$0xff] %v978_v20   ;;  %1083 = verf.f32 %v723_v21 }
 0x1be   : > { %974 = vst [vmem:[%s1339_s18] sm:$0xff] %v973_v25  }
 0x1c2   : > { %v1078_v26 = vpop.eup %1077 }
 0x1c3   : > { %v1080_v27 = vpop.eup %1079  ;;  %v740_v30 = vadd.f32 1.0, %v1078_v26 }
 0x1c4   : > { %v738_v32 = vadd.f32 1.0, %v1080_v27 }
 0x1c5   : > { %v748_v34 = vmul.f32 %v740_v30, %v716_v29  ;;  %v1082_v1 = vpop.eup %1081 }
 0x1c6   : > { %v746_v28 = vmul.f32 %v738_v32, %v714_v31  ;;  %v1084_v36 = vpop.eup %1083  ;;  %v741_v39 = vadd.f32 1.0, %v1082_v1 }
 0x1c7   : > { %v756_v5 = vmul.f32 %v748_v34, %v626_v33  ;;  %v739_v41 = vadd.f32 1.0, %v1084_v36 }
 0x1c8   : > { %v754_v37 = vmul.f32 %v746_v28, %v618_v35  ;;  %v749_v43 = vmul.f32 %v741_v39, %v717_v38 }
 0x1c9   : > { %v747_v46 = vmul.f32 %v739_v41, %v715_v40 }
 0x1ca   : > { %v757_v47 = vmul.f32 %v749_v43, %v629_v42 }
 0x1cb   : > { %v755_v48 = vmul.f32 %v747_v46, %v621_v44 }
 0x1cc   : > { %v988_v49 = vpack.c.bf16 %v757_v47, %v756_v5 }
 0x1cd   : > { %v983_v52 = vpack.c.bf16 %v755_v48, %v754_v37 }
 0x1ce   : > { %992 = vst [vmem:[%s1339_s18 + $0x18] sm:$0xff] %v988_v49  }
 0x1cf   : > { %991 = vst [vmem:[%s1339_s18 + $0x10] sm:$0xff] %v983_v52  }
 0x1d0 PF: > { %s17_s26 = sadd.s32 1, %s1107_s26   ;;  %s1367_s24 = smov %s1103_s25 }
 0x1d1   : > { %p14_p5 = scmp.ge.s32.totalorder %s17_s26, 4   ;;  %s1368_s25 = smov %s1370_s27 }
 0x1d3   :  { %16 = sbr.rel (!%p14_p5) target bundleno = 2 (0x2), region = 94 }

// kernel: spatial_transformer.14
= control target key start
LH: loop header
LB: loop body
LE: loop exit
PB: predicated region body
PF: predicated region fallthrough
CT: control target
= control target key end

     0   :  { %s1956_s9 = smov 0   ;;  %s1958_s10 = smov 0   ;;  %s2575_s0 = inlined_call_operand.vmem [shape: bf16[128,96], index: 0, kind: input, shape index: {}, may-alias: {0,1}]   ;;  %s2576_s1 = inlined_call_operand.vmem [shape: bf16[128,96], index: 1, kind: input, shape index: {}, may-alias: {0,1}]   ;;  %s2577_s2 = inlined_call_operand.vmem [shape: bf16[128,32], index: 2, kind: output, shape index: {}]  }
   0x1   :  { %s1960_s11 = smov 0  }
   0x2 LB: > { %s31_s12 = sadd.s32 1, %s1926_s10  ;;  %p1616_p0 = scmp.ge.s32.totalorder %s1930_s11, 1  ;;  %s1930_s11 = sphi %s1960_s11, %s12_s11   ;;  %s1926_s10 = sphi %s1958_s10, %s2605_s10   ;;  %s1922_s9 = sphi %s1956_s9, %s2604_s9  }
   0x3   : > { %p33_p1 = scmp.ge.s32.totalorder %s31_s12, 2  ;;  %p153_p2 = scmp.lt.s32.totalorder %s1930_s11, 3 }
   0x5   : > { %s2607_s12 = smov (%p33_p1, %s31_s12), 0  ;;  %p154_p3 = pnand %p1616_p0, %p153_p2 }
   0x7   : > { %157 = sbr.rel (%p154_p3) target bundleno = 1659 (0x67b), region = 28 }
   0xe   : > { %s1617_s13 = sshll.u32 %s1922_s9, 3  ;;  %s1932_s18 = smov 96   ;;  %vm246_vm0 = vcmask 130048   ;;  %vm213_vm1 = vcmask 7168   ;;  %v1933_v32 = vmov -inf   ;;  %vm433_vm2 = vcmask 523264  }
   0xf   : > { %p185_p4 = scmp.lt.s32.totalorder %s1617_s13, 15  ;;  %214 = vst.msk [vmem:[#allocation2] sm:$0xff] %vm213_vm1, %v1933_v32  ;;  %215 = vst.msk [vmem:[#allocation2 + $0x8] sm:$0xff] %vm213_vm1, %v1933_v32  ;;  %v1934_v49 = vmov 0   ;;  %v1935_v50 = vmov 0.0   ;;  %s1936_s22 = smov 64  }
  0x10   : > { %216 = vst.msk [vmem:[#allocation2 + $0x10] sm:$0xff] %vm213_vm1, %v1933_v32  ;;  %217 = vst.msk [vmem:[#allocation2 + $0x18] sm:$0xff] %vm213_vm1, %v1933_v32  ;;  %1802 = vset.pattern.permute.xlu1 %v1934_v49  ;;  %1803 = vset.pattern.permute.xlu0 %v1934_v49  ;;  %s1937_s23 = smov 80   ;;  %s1938_s24 = smov 112   ;;  %vm1520_vm3 = vcmask 257024  }
  0x11   : > { %s2609_s13 = smov (!%p185_p4, %s1617_s13), 15  ;;  %218 = vst.msk [vmem:[#allocation2 + $0x20] sm:$0xff] %vm213_vm1, %v1933_v32  ;;  %219 = vst.msk [vmem:[#allocation2 + $0x28] sm:$0xff] %vm213_vm1, %v1933_v32  ;;  %s1939_s25 = smov 48  }
  0x12   : > { %s1974_s14 = sshll.u32 %s2609_s13, 2  ;;  %220 = vst.msk [vmem:[#allocation2 + $0x30] sm:$0xff] %vm213_vm1, %v1933_v32  ;;  %221 = vst.msk [vmem:[#allocation2 + $0x38] sm:$0xff] %vm213_vm1, %v1933_v32  ;;  %s1940_s26 = smov 16  }
  0x13   : > { %s1980_s17 = scalar_lea.vmem %s2576_s1, %s1974_s14  ;;  %s2002_s21 = scalar_lea.vmem %s2575_s0, %s1974_s14  ;;  %222 = vst.msk [vmem:[#allocation2 + $0x40] sm:$0xff] %vm213_vm1, %v1933_v32  ;;  %223 = vst.msk [vmem:[#allocation2 + $0x48] sm:$0xff] %vm213_vm1, %v1933_v32 }
  0x14   : > { %v1983_v0 = vld [vmem:[%s1980_s17] sm:$0xff]   ;;  %v1986_v1 = vld [vmem:[%s1980_s17 + $0x8] sm:$0xff]   ;;  %v1990_v2 = vld [vmem:[%s1980_s17 + $0x10] sm:$0xff]   ;;  %224 = vst.msk [vmem:[#allocation2 + $0x50] sm:$0xff] %vm213_vm1, %v1933_v32  ;;  %s2544_s29 = scalar_lea.vmem %s2577_s2, %s1974_s14 }
  0x15   : > { %327 = vrot.lane.b32.xlu0 %v1983_v0, %s1932_s18  ;;  %v1993_v3 = vld [vmem:[%s1980_s17 + $0x18] sm:$0xff]   ;;  %331 = vrot.lane.b32.xlu1 %v1990_v2, %s1932_s18  ;;  %v263_v4 = vld [vmem:[%s2002_s21] sm:$0xf]  ;;  %225 = vst.msk [vmem:[#allocation2 + $0x58] sm:$0xff] %vm213_vm1, %v1933_v32  ;;  %226 = vst.msk [vmem:[#allocation2 + $0x60] sm:$0xff] %vm213_vm1, %v1933_v32 }
  0x16   : > { %v264_v5 = vld [vmem:[%s2002_s21 + $0x4] sm:$0xf]  ;;  %v271_v6 = vmul.bf16 1048592000, %v263_v4  ;;  %v265_v16 = vld [vmem:[%s2002_s21 + $0x8] sm:$0xf] }
  0x17   : > { %v272_v7 = vmul.bf16 1048592000, %v264_v5  ;;  %v266_v17 = vld [vmem:[%s2002_s21 + $0xc] sm:$0xf]  ;;  %v267_v19 = vld [vmem:[%s2002_s21 + $0x10] sm:$0xf] }
  0x18   : > { %v268_v20 = vld [vmem:[%s2002_s21 + $0x14] sm:$0xf]  ;;  %v273_v21 = vmul.bf16 1048592000, %v265_v16  ;;  %v274_v22 = vmul.bf16 1048592000, %v266_v17 }
  0x19   : > { %329 = vrot.lane.b32.xlu0 %v1986_v1, %s1932_s18  ;;  %333 = vrot.lane.b32.xlu1 %v1993_v3, %s1932_s18  ;;  %v1623_v8 = vcombine.low %v271_v6, %v272_v7  ;;  %v275_v23 = vmul.bf16 1048592000, %v267_v19  ;;  %v276_v24 = vmul.bf16 1048592000, %v268_v20  ;;  %v269_v27 = vld [vmem:[%s2002_s21 + $0x18] sm:$0xf] }
  0x1a   : > { %v1624_v25 = vcombine.low %v273_v21, %v274_v22  ;;  %v270_v28 = vld [vmem:[%s2002_s21 + $0x1c] sm:$0xf]  ;;  %v277_v29 = vmul.bf16 1048592000, %v269_v27  ;;  %227 = vst.msk [vmem:[#allocation2 + $0x68] sm:$0xff] %vm213_vm1, %v1933_v32  ;;  %228 = vst.msk [vmem:[#allocation2 + $0x70] sm:$0xff] %vm213_vm1, %v1933_v32 }
  0x1b   : > { %1705 = vmatprep.mubr.msk.bf16.mxu0 %vm246_vm0, %v1623_v8  ;;  %v1625_v26 = vcombine.low %v275_v23, %v276_v24  ;;  %v278_v30 = vmul.bf16 1048592000, %v270_v28  ;;  %229 = vst.msk [vmem:[#allocation2 + $0x78] sm:$0xff] %vm213_vm1, %v1933_v32  ;;  %230 = vst.msk [vmem:[#allocation3] sm:$0xff] %vm213_vm1, %v1935_v50  ;;  %v2104_v51 = vld [vmem:[#allocation2] sm:$0xff]  ;;  %v2106_v53 = vld [vmem:[#allocation2 + $0x8] sm:$0xff] }
  0x1c   : > { %231 = vst.msk [vmem:[#allocation3 + $0x8] sm:$0xff] %vm213_vm1, %v1935_v50  ;;  %232 = vst.msk [vmem:[#allocation3 + $0x10] sm:$0xff] %vm213_vm1, %v1935_v50  ;;  %v2111_v56 = vld [vmem:[#allocation2 + $0x10] sm:$0xff]  ;;  %v2129_v62 = vld [vmem:[#allocation2 + $0x18] sm:$0xff] }
  0x1d   : > { %v1626_v31 = vcombine.low %v277_v29, %v278_v30  ;;  %233 = vst.msk [vmem:[#allocation3 + $0x18] sm:$0xff] %vm213_vm1, %v1935_v50  ;;  %234 = vst.msk [vmem:[#allocation3 + $0x20] sm:$0xff] %vm213_vm1, %v1935_v50  ;;  %v2131_v63 = vld [vmem:[#allocation2 + $0x20] sm:$0xff]  ;;  %v2163_v17 = vld [vmem:[#allocation2 + $0x38] sm:$0xff] }
  0x1e   : > { %235 = vst.msk [vmem:[#allocation3 + $0x28] sm:$0xff] %vm213_vm1, %v1935_v50  ;;  %236 = vst.msk [vmem:[#allocation3 + $0x30] sm:$0xff] %vm213_vm1, %v1935_v50  ;;  %v2176_v20 = vld [vmem:[%s1980_s17] sm:$0xff]   ;;  %v788_v28 = vld [vmem:[%s2002_s21 + $0x10] sm:$0xf] }
  0x1f   : > { %237 = vst.msk [vmem:[#allocation3 + $0x38] sm:$0xff] %vm213_vm1, %v1935_v50  ;;  %238 = vst.msk [vmem:[#allocation3 + $0x40] sm:$0xff] %vm213_vm1, %v1935_v50  ;;  %v784_v22 = vld [vmem:[%s2002_s21] sm:$0xf]  ;;  %v785_v23 = vld [vmem:[%s2002_s21 + $0x4] sm:$0xf] }
  0x20   : > { %239 = vst.msk [vmem:[#allocation3 + $0x48] sm:$0xff] %vm213_vm1, %v1935_v50  ;;  %240 = vst.msk [vmem:[#allocation3 + $0x50] sm:$0xff] %vm213_vm1, %v1935_v50  ;;  %v793_v27 = vmul.bf16 1048592000, %v785_v23  ;;  %v789_v29 = vld [vmem:[%s2002_s21 + $0x14] sm:$0xf] }
  0x21   : > { %241 = vst.msk [vmem:[#allocation3 + $0x58] sm:$0xff] %vm213_vm1, %v1935_v50  ;;  %242 = vst.msk [vmem:[#allocation3 + $0x60] sm:$0xff] %vm213_vm1, %v1935_v50  ;;  %v796_v30 = vmul.bf16 1048592000, %v788_v28 }
  0x22   : > { %243 = vst.msk [vmem:[#allocation3 + $0x68] sm:$0xff] %vm213_vm1, %v1935_v50  ;;  %244 = vst.msk [vmem:[#allocation3 + $0x70] sm:$0xff] %vm213_vm1, %v1935_v50 }
  0x23   : > { %245 = vst.msk [vmem:[#allocation3 + $0x78] sm:$0xff] %vm213_vm1, %v1935_v50 }
  0x24   : > { %247 = vst.msk [vmem:[#allocation4] sm:$0xff] %vm246_vm0, %v1935_v50  ;;  %248 = vst.msk [vmem:[#allocation4 + $0x8] sm:$0xff] %vm246_vm0, %v1935_v50 }
  0x25   : > { %249 = vst.msk [vmem:[#allocation4 + $0x10] sm:$0xff] %vm246_vm0, %v1935_v50  ;;  %250 = vst.msk [vmem:[#allocation4 + $0x18] sm:$0xff] %vm246_vm0, %v1935_v50 }
  0x26   : > { %251 = vst.msk [vmem:[#allocation4 + $0x20] sm:$0xff] %vm246_vm0, %v1935_v50  ;;  %252 = vst.msk [vmem:[#allocation4 + $0x28] sm:$0xff] %vm246_vm0, %v1935_v50 }
  0x27   : > { %253 = vst.msk [vmem:[#allocation4 + $0x30] sm:$0xff] %vm246_vm0, %v1935_v50  ;;  %254 = vst.msk [vmem:[#allocation4 + $0x38] sm:$0xff] %vm246_vm0, %v1935_v50 }
  0x28   : > { %255 = vst.msk [vmem:[#allocation4 + $0x40] sm:$0xff] %vm246_vm0, %v1935_v50  ;;  %256 = vst.msk [vmem:[#allocation4 + $0x48] sm:$0xff] %vm246_vm0, %v1935_v50 }
  0x29   : > { %257 = vst.msk [vmem:[#allocation4 + $0x50] sm:$0xff] %vm246_vm0, %v1935_v50  ;;  %258 = vst.msk [vmem:[#allocation4 + $0x58] sm:$0xff] %vm246_vm0, %v1935_v50 }
  0x2a   : > { %259 = vst.msk [vmem:[#allocation4 + $0x60] sm:$0xff] %vm246_vm0, %v1935_v50  ;;  %260 = vst.msk [vmem:[#allocation4 + $0x68] sm:$0xff] %vm246_vm0, %v1935_v50 }
  0x2b   : > { %261 = vst.msk [vmem:[#allocation4 + $0x70] sm:$0xff] %vm246_vm0, %v1935_v50  ;;  %262 = vst.msk [vmem:[#allocation4 + $0x78] sm:$0xff] %vm246_vm0, %v1935_v50 }
  0x87   : > { %v328_v9 = vpop.permute.xlu0 %327  ;;  %v332_v13 = vpop.permute.xlu1 %331 }
  0x88   : > { %1761 = vmatprep.subr.msk.bf16.mxu0 %vm246_vm0, %v328_v9  ;;  %v349_v10 = vsel %vm246_vm0, %v328_v9, 0  ;;  %v355_v14 = vsel %vm246_vm0, %v332_v13, 0  ;;  %v2144_v9 = vld [vmem:[#allocation2 + $0x30] sm:$0xff] }
  0x89   : > { %1698 = vmatpush3.bf16.xpose.msra.mxu0 %v349_v10  ;;  %v2146_v10 = vld [vmem:[#allocation2 + $0x28] sm:$0xff] }
  0x8b   : > { %v330_v11 = vpop.permute.xlu0 %329  ;;  %v334_v15 = vpop.permute.xlu1 %333 }
  0x8c   : > { %1762 = vmatprep.subr.msk.bf16.mxu0 %vm246_vm0, %v330_v11  ;;  %v352_v12 = vsel %vm246_vm0, %v330_v11, 0  ;;  %v358_v18 = vsel %vm246_vm0, %v334_v15, 0 }
  0x91   : > { %1700 = vmatpush3.bf16.xpose.msra.mxu0 %v352_v12  ;;  %v2349_v12 = vld [vmem:[#allocation2 + $0x68] sm:$0xff] }
  0x92   : > { %1763 = vmatprep.subr.msk.bf16.mxu0 %vm246_vm0, %v332_v13 }
  0x99   : > { %1702 = vmatpush3.bf16.xpose.msra.mxu0 %v355_v14 }
  0x9a   : > { %1764 = vmatprep.subr.msk.bf16.mxu0 %vm246_vm0, %v334_v15 }
  0xa1   : > { %1704 = vmatpush3.bf16.xpose.msra.mxu0 %v358_v18 }
  0xa8   : > { %1706 = vmatmul.mubr.msk.bf16.vlgmr.msra.gmra.mrb[0].mxu0 %vm246_vm0, %v1624_v25  ;;  %v2190_v25 = vld [vmem:[%s1980_s17 + $0x10] sm:$0xff]  }
  0xa9   : > { %1709 = vmatprep.mubr.msk.bf16.mxu0 %vm246_vm0, %v1625_v26  ;;  %v792_v26 = vmul.bf16 1048592000, %v784_v22 }
  0xb0   : > { %1710 = vmatmul.mubr.msk.bf16.gmra.mrb[4].mxu0 %vm246_vm0, %v1626_v31  ;;  %v797_v31 = vmul.bf16 1048592000, %v789_v29 }
  0xb2   : > { %v1641_v32 = vcombine.low %v796_v30, %v797_v31 }
 0x17b   : > { %v2040_v33 = vpop.f32.mrb[0].mxu0 }
 0x17c   : > { %v2042_v34 = vpop.f32.mrb[1].mxu0  ;;  %v440_v39 = vsel %vm433_vm2, %v2040_v33, -inf }
 0x17d   : > { %v2044_v35 = vpop.f32.mrb[2].mxu0  ;;  %v434_v36 = vsel %vm433_vm2, %v2042_v34, -inf }
 0x17e   : > { %435 = vmax.xlane.f32.xlu0 %v434_v36  ;;  %v2048_v37 = vpop.f32.mrb[3].mxu0  ;;  %v443_v42 = vsel %vm433_vm2, %v2044_v35, -inf  ;;  %v786_v36 = vld [vmem:[%s2002_s21 + $0x8] sm:$0xf] }
 0x17f   : > { %v437_v38 = vsel %vm433_vm2, %v2048_v37, -inf }
 0x180   : > { %438 = vmax.xlane.f32.xlu1 %v437_v38  ;;  %v787_v38 = vld [vmem:[%s2002_s21 + $0xc] sm:$0xf] }
 0x182   : > { %441 = vmax.xlane.f32.xlu0 %v440_v39  ;;  %v2207_v39 = vld [vmem:[%s1980_s17 + $0x18] sm:$0xff]  }
 0x183   : > { %v2054_v40 = vpop.f32.mrb[4].mxu0 }
 0x184   : > { %v2056_v41 = vpop.f32.mrb[5].mxu0  ;;  %v452_v46 = vsel %vm433_vm2, %v2054_v40, -inf }
 0x185   : > { %v446_v43 = vsel %vm433_vm2, %v2056_v41, -inf  ;;  %v2062_v44 = vpop.f32.mrb[6].mxu0 }
 0x186   : > { %444 = vmax.xlane.f32.xlu0 %v443_v42  ;;  %447 = vmax.xlane.f32.xlu1 %v446_v43  ;;  %v2064_v45 = vpop.f32.mrb[7].mxu0  ;;  %v455_v48 = vsel %vm433_vm2, %v2062_v44, -inf  ;;  %v795_v42 = vmul.bf16 1048592000, %v787_v38  ;;  %v790_v43 = vld [vmem:[%s2002_s21 + $0x18] sm:$0xf] }
 0x187   : > { %v449_v47 = vsel %vm433_vm2, %v2064_v45, -inf }
 0x18a   : > { %453 = vmax.xlane.f32.xlu1 %v452_v46  ;;  %450 = vmax.xlane.f32.xlu0 %v449_v47  ;;  %v791_v46 = vld [vmem:[%s2002_s21 + $0x1c] sm:$0xf] }
 0x18b   : > { %v799_v49 = vmul.bf16 1048592000, %v791_v46 }
 0x18e   : > { %456 = vmax.xlane.f32.xlu0 %v455_v48  ;;  %v798_v48 = vmul.bf16 1048592000, %v790_v43 }
 0x190   : > { %v1642_v50 = vcombine.low %v798_v48, %v799_v49 }
 0x20b   : > { %v436_v52 = vpop.xlane.xlu0 %435 }
 0x20c   : > { %v2109_v54 = vmax.f32 %v2104_v51, %v436_v52 }
 0x20d   : > { %v439_v55 = vpop.xlane.xlu1 %438 }
 0x20e   : > { %776 = vst.msk [vmem:[#allocation2] sm:$0xff] %vm213_vm1, %v2109_v54  ;;  %v2118_v58 = vmax.f32 %v2106_v53, %v439_v55  ;;  %492 = vperm.xlu1 %1802, %v2109_v54  }
 0x20f   : > { %v442_v59 = vpop.xlane.xlu0 %441 }
 0x210   : > { %777 = vst.msk [vmem:[#allocation2 + $0x8] sm:$0xff] %vm213_vm1, %v2118_v58  ;;  %v2126_v61 = vmax.f32 %v2111_v56, %v442_v59  ;;  %497 = vperm.xlu0 %1803, %v2118_v58  }
 0x212   : > { %778 = vst.msk [vmem:[#allocation2 + $0x10] sm:$0xff] %vm213_vm1, %v2126_v61  ;;  %502 = vperm.xlu1 %1802, %v2126_v61  }
 0x213   : > { %v445_v5 = vpop.xlane.xlu0 %444  ;;  %v448_v6 = vpop.xlane.xlu1 %447 }
 0x214   : > { %v2139_v7 = vmax.f32 %v2129_v62, %v445_v5  ;;  %v2142_v8 = vmax.f32 %v2131_v63, %v448_v6 }
 0x216   : > { %779 = vst.msk [vmem:[#allocation2 + $0x18] sm:$0xff] %vm213_vm1, %v2139_v7  ;;  %780 = vst.msk [vmem:[#allocation2 + $0x20] sm:$0xff] %vm213_vm1, %v2142_v8  ;;  %507 = vperm.xlu1 %1802, %v2139_v7  }
 0x217   : > { %v454_v13 = vpop.xlane.xlu1 %453  ;;  %v451_v14 = vpop.xlane.xlu0 %450 }
 0x218   : > { %v2158_v15 = vmax.f32 %v2144_v9, %v454_v13  ;;  %v2161_v16 = vmax.f32 %v2146_v10, %v451_v14 }
 0x21a   : > { %782 = vst.msk [vmem:[#allocation2 + $0x30] sm:$0xff] %vm213_vm1, %v2158_v15  ;;  %671 = vrot.lane.b32.xlu1 %v1983_v0, %s1936_s22  ;;  %522 = vperm.xlu0 %1803, %v2158_v15   ;;  %781 = vst.msk [vmem:[#allocation2 + $0x28] sm:$0xff] %vm213_vm1, %v2161_v16 }
 0x21b   : > { %v457_v21 = vpop.xlane.xlu0 %456 }
 0x21c   : > { %v2181_v24 = vmax.f32 %v2163_v17, %v457_v21 }
 0x21e   : > { %673 = vrot.lane.b32.xlu1 %v1986_v1, %s1936_s22  ;;  %783 = vst.msk [vmem:[#allocation2 + $0x38] sm:$0xff] %vm213_vm1, %v2181_v24  ;;  %856 = vrot.lane.b32.xlu0 %v2176_v20, %s1937_s23  ;;  %v1639_v1 = vcombine.low %v792_v26, %v793_v27 }
 0x222   : > { %675 = vrot.lane.b32.xlu1 %v1990_v2, %s1936_s22  ;;  %860 = vrot.lane.b32.xlu0 %v2190_v25, %s1937_s23  ;;  %v2201_v2 = vld [vmem:[%s1980_s17 + $0x8] sm:$0xff]  }
 0x226   : > { %677 = vrot.lane.b32.xlu1 %v1993_v3, %s1936_s22  ;;  %828 = vrot.lane.b32.xlu0 %v1639_v1, %s1938_s24  ;;  %v794_v3 = vmul.bf16 1048592000, %v786_v36 }
 0x228   : > { %v1640_v47 = vcombine.low %v794_v3, %v795_v42 }
 0x22a   : > { %512 = vperm.xlu1 %1802, %v2142_v8   ;;  %832 = vrot.lane.b32.xlu0 %v1641_v32, %s1938_s24 }
 0x22e   : > { %517 = vperm.xlu1 %1802, %v2161_v16  }
 0x232   : > { %527 = vperm.xlu1 %1802, %v2181_v24  }
 0x236   : > { %858 = vrot.lane.b32.xlu1 %v2201_v2, %s1937_s23 }
 0x23a   : > { %862 = vrot.lane.b32.xlu1 %v2207_v39, %s1937_s23 }
 0x23e   : > { %830 = vrot.lane.b32.xlu1 %v1640_v47, %s1938_s24 }
 0x242   : > { %834 = vrot.lane.b32.xlu1 %v1642_v50, %s1938_s24 }
 0x28d   : > { %v493_v52 = vpop.permute.xlu1 %492 }
 0x28e   : > { %v530_v55 = vsub.f32 %v2042_v34, %v493_v52 }
 0x28f   : > { %v498_v59 = vpop.permute.xlu0 %497 }
 0x290   : > { %v538_v5 = vmul.f32 1.442695, %v530_v55  ;;  %v531_v6 = vsub.f32 %v2048_v37, %v498_v59 }
 0x291   : > { %v503_v13 = vpop.permute.xlu1 %502 }
 0x292   : > { %v540_v14 = vmul.f32 1.442695, %v531_v6  ;;  %v532_v21 = vsub.f32 %v2040_v33, %v503_v13  ;;  %1812 = vpow2.f32 %v538_v5 }
 0x294   : > { %1814 = vpow2.f32 %v540_v14  ;;  %v542_v22 = vmul.f32 1.442695, %v532_v21 }
 0x295   : > { %v508_v23 = vpop.permute.xlu1 %507 }
 0x296   : > { %v533_v26 = vsub.f32 %v2044_v35, %v508_v23  ;;  %1816 = vpow2.f32 %v542_v22 }
 0x298   : > { %v544_v27 = vmul.f32 1.442695, %v533_v26 }
 0x299   : > { %v672_v28 = vpop.permute.xlu1 %671  ;;  %v523_v1 = vpop.permute.xlu0 %522 }
 0x29a   : > { %1818 = vpow2.f32 %v544_v27  ;;  %1713 = vmatprep.subr.bf16.mxu1 %v672_v28  ;;  %v536_v43 = vsub.f32 %v2054_v40, %v523_v1 }
 0x29b   : > { %1714 = vmatpush3.bf16.msra.mxu1 %v672_v28 }
 0x29c   : > { %v2216_v34 = vpop.eup %1812  ;;  %v550_v52 = vmul.f32 1.442695, %v536_v43 }
 0x29d   : > { %v674_v29 = vpop.permute.xlu1 %673  ;;  %v857_v38 = vpop.permute.xlu0 %856 }
 0x29e   : > { %v2218_v37 = vpop.eup %1814  ;;  %1715 = vmatprep.subr.bf16.mxu1 %v674_v29  ;;  %v877_v48 = vsel %vm246_vm0, %v857_v38, 0 }
 0x29f   : > { %1716 = vmatpush3.bf16.msra.mxu1 %v674_v29  ;;  %v667_v33 = vpack.c.bf16 %v2218_v37, %v2216_v34 }
 0x2a0   : > { %v2223_v35 = vpop.eup %1816 }
 0x2a1   : > { %v676_v30 = vpop.permute.xlu1 %675  ;;  %1721 = vmatprep.mubr.msk.bf16.mxu1 %vm433_vm2, %v667_v33  ;;  %v861_v6 = vpop.permute.xlu0 %860 }
 0x2a2   : > { %1717 = vmatprep.subr.bf16.mxu1 %v676_v30  ;;  %v883_v14 = vsel %vm246_vm0, %v861_v6, 0 }
 0x2a3   : > { %1718 = vmatpush3.bf16.msra.mxu1 %v676_v30 }
 0x2a4   : > { %v2225_v31 = vpop.eup %1818 }
 0x2a5   : > { %v678_v32 = vpop.permute.xlu1 %677  ;;  %v668_v36 = vpack.c.bf16 %v2225_v31, %v2223_v35  ;;  %v829_v27 = vpop.permute.xlu0 %828 }
 0x2a6   : > { %1719 = vmatprep.subr.bf16.mxu1 %v678_v32 }
 0x2a7   : > { %1720 = vmatpush3.bf16.msra.mxu1 %v678_v32 }
 0x2a8   : > { %1765 = vmatprep.subr.msk.bf16.mxu1 %vm246_vm0, %v857_v38 }
 0x2a9   : > { %v513_v3 = vpop.permute.xlu1 %512  ;;  %v833_v33 = vpop.permute.xlu0 %832 }
 0x2aa   : > { %v534_v42 = vsub.f32 %v2056_v41, %v513_v3  ;;  %1722 = vmatmul.mubr.msk.bf16.vlgmr.msra.gmra.mrb[0].mxu1 %vm433_vm2, %v668_v36 }
 0x2ac   : > { %v546_v46 = vmul.f32 1.442695, %v534_v42 }
 0x2ad   : > { %v518_v47 = vpop.permute.xlu1 %517 }
 0x2ae   : > { %v535_v49 = vsub.f32 %v2064_v45, %v518_v47  ;;  %1820 = vpow2.f32 %v546_v46 }
 0x2b0   : > { %v548_v50 = vmul.f32 1.442695, %v535_v49  ;;  %1730 = vmatpush3.bf16.xpose.msra.mxu1 %v877_v48 }
 0x2b1   : > { %v528_v55 = vpop.permute.xlu1 %527 }
 0x2b2   : > { %1822 = vpow2.f32 %v548_v50  ;;  %v537_v59 = vsub.f32 %v2062_v44, %v528_v55 }
 0x2b3   : > { %1824 = vpow2.f32 %v550_v52 }
 0x2b4   : > { %v552_v5 = vmul.f32 1.442695, %v537_v59 }
 0x2b5   : > { %v859_v41 = vpop.permute.xlu1 %858 }
 0x2b6   : > { %1826 = vpow2.f32 %v552_v5  ;;  %v880_v40 = vsel %vm246_vm0, %v859_v41, 0  ;;  %1766 = vmatprep.subr.msk.bf16.mxu1 %vm246_vm0, %v859_v41 }
 0x2b8   : > { %1732 = vmatpush3.bf16.xpose.msra.mxu1 %v880_v40  ;;  %v2239_v45 = vpop.eup %1820 }
 0x2b9   : > { %1767 = vmatprep.subr.msk.bf16.mxu1 %vm246_vm0, %v861_v6  ;;  %v863_v21 = vpop.permute.xlu1 %862 }
 0x2ba   : > { %v886_v28 = vsel %vm246_vm0, %v863_v21, 0 }
 0x2bc   : > { %v2241_v13 = vpop.eup %1822 }
 0x2bd   : > { %v669_v44 = vpack.c.bf16 %v2241_v13, %v2239_v45  ;;  %v2246_v22 = vpop.eup %1824  ;;  %v831_v29 = vpop.permute.xlu1 %830 }
 0x2bf   : > { %1725 = vmatprep.mubr.msk.bf16.mxu1 %vm433_vm2, %v669_v44 }
 0x2c0   : > { %v2249_v23 = vpop.eup %1826  ;;  %1734 = vmatpush3.bf16.xpose.msra.mxu1 %v883_v14 }
 0x2c1   : > { %v670_v26 = vpack.c.bf16 %v2249_v23, %v2246_v22  ;;  %1768 = vmatprep.subr.msk.bf16.mxu1 %vm246_vm0, %v863_v21  ;;  %v835_v1 = vpop.permute.xlu1 %834 }
 0x2c3   : > { %1726 = vmatmul.mubr.msk.bf16.gmra.mrb[4].mxu1 %vm433_vm2, %v670_v26 }
 0x2c4   : > { %1737 = vmatprep.mubr.msk.bf16.mxu1 %vm246_vm0, %v829_v27 }
 0x2c8   : > { %1736 = vmatpush3.bf16.xpose.msra.mxu1 %v886_v28  ;;  %v2308_v28 = vld [vmem:[#allocation2 + $0x40] sm:$0xff] }
 0x2cf   : > { %1738 = vmatmul.mubr.msk.bf16.vlgmr.msra.gmra.mrb[8].mxu1 %vm246_vm0, %v831_v29 }
 0x2d0   : > { %1741 = vmatprep.mubr.msk.bf16.mxu1 %vm246_vm0, %v833_v33  ;;  %v2310_v33 = vld [vmem:[#allocation2 + $0x48] sm:$0xff] }
 0x2d7   : > { %1742 = vmatmul.mubr.msk.bf16.gmra.mrb[12].mxu1 %vm246_vm0, %v835_v1 }
 0x37d   : > { %v2260_v30 = vpop.f32.mrb[0].mxu1 }
 0x37e   : > { %v2262_v32 = vpop.f32.mrb[1].mxu1 }
 0x37f   : > { %v2264_v36 = vpop.f32.mrb[2].mxu1 }
 0x380   : > { %v2266_v38 = vpop.f32.mrb[3].mxu1 }
 0x381   : > { %2578 = vst [vmem:[#allocation5_spill] sm:$0xff] %v2266_v38 }
 0x396   : > { %v2268_v3 = vpop.f32.mrb[4].mxu1 }
 0x397   : > { %2579 = vst [vmem:[#allocation6_spill] sm:$0xff] %v2268_v3  ;;  %v2270_v42 = vpop.f32.mrb[5].mxu1 }
 0x398   : > { %2580 = vst [vmem:[#allocation7_spill] sm:$0xff] %v2270_v42  ;;  %v2272_v43 = vpop.f32.mrb[6].mxu1 }
 0x399   : > { %2581 = vst [vmem:[#allocation8_spill] sm:$0xff] %v2272_v43  ;;  %v2274_v46 = vpop.f32.mrb[7].mxu1 }
 0x39a   : > { %2582 = vst [vmem:[#allocation9_spill] sm:$0xff] %v2274_v46 }
 0x3a2   : > { %v2276_v47 = vpop.f32.mrb[8].mxu1 }
 0x3a3   : > { %v2278_v48 = vpop.f32.mrb[9].mxu1  ;;  %v968_v59 = vsel %vm433_vm2, %v2276_v47, -inf }
 0x3a4   : > { %v2280_v49 = vpop.f32.mrb[10].mxu1  ;;  %v962_v50 = vsel %vm433_vm2, %v2278_v48, -inf }
 0x3a5   : > { %963 = vmax.xlane.f32.xlu0 %v962_v50  ;;  %v2284_v52 = vpop.f32.mrb[11].mxu1  ;;  %v971_v40 = vsel %vm433_vm2, %v2280_v49, -inf }
 0x3a6   : > { %v965_v55 = vsel %vm433_vm2, %v2284_v52, -inf }
 0x3a7   : > { %966 = vmax.xlane.f32.xlu1 %v965_v55  ;;  %v2315_v55 = vld [vmem:[#allocation2 + $0x50] sm:$0xff] }
 0x3a9   : > { %969 = vmax.xlane.f32.xlu0 %v968_v59  ;;  %v2347_v59 = vld [vmem:[#allocation2 + $0x70] sm:$0xff] }
 0x3aa   : > { %v2290_v5 = vpop.f32.mrb[12].mxu1 }
 0x3ab   : > { %v2292_v41 = vpop.f32.mrb[13].mxu1  ;;  %v980_v21 = vsel %vm433_vm2, %v2290_v5, -inf }
 0x3ac   : > { %v974_v6 = vsel %vm433_vm2, %v2292_v41, -inf  ;;  %v2298_v14 = vpop.f32.mrb[14].mxu1 }
 0x3ad   : > { %972 = vmax.xlane.f32.xlu0 %v971_v40  ;;  %975 = vmax.xlane.f32.xlu1 %v974_v6  ;;  %v2300_v44 = vpop.f32.mrb[15].mxu1  ;;  %v983_v27 = vsel %vm433_vm2, %v2298_v14, -inf }
 0x3ae   : > { %v977_v26 = vsel %vm433_vm2, %v2300_v44, -inf }
 0x3b1   : > { %981 = vmax.xlane.f32.xlu1 %v980_v21  ;;  %978 = vmax.xlane.f32.xlu0 %v977_v26 }
 0x3b5   : > { %984 = vmax.xlane.f32.xlu0 %v983_v27  ;;  %v2332_v27 = vld [vmem:[#allocation2 + $0x60] sm:$0xff] }
 0x432   : > { %v964_v29 = vpop.xlane.xlu0 %963 }
 0x433   : > { %v2313_v1 = vmax.f32 %v2308_v28, %v964_v29  ;;  %v2334_v29 = vld [vmem:[#allocation2 + $0x58] sm:$0xff] }
 0x434   : > { %v967_v50 = vpop.xlane.xlu1 %966 }
 0x435   : > { %1305 = vst.msk [vmem:[#allocation2 + $0x40] sm:$0xff] %vm213_vm1, %v2313_v1  ;;  %v2322_v40 = vmax.f32 %v2310_v33, %v967_v50  ;;  %v2366_v50 = vld [vmem:[#allocation2 + $0x78] sm:$0xff] }
 0x436   : > { %v970_v6 = vpop.xlane.xlu0 %969 }
 0x437   : > { %1306 = vst.msk [vmem:[#allocation2 + $0x48] sm:$0xff] %vm213_vm1, %v2322_v40  ;;  %v2329_v26 = vmax.f32 %v2315_v55, %v970_v6  ;;  %1025 = vperm.xlu0 %1803, %v2322_v40  }
 0x439   : > { %1307 = vst.msk [vmem:[#allocation2 + $0x50] sm:$0xff] %vm213_vm1, %v2329_v26  ;;  %1030 = vperm.xlu1 %1802, %v2329_v26  }
 0x43a   : > { %v976_v0 = vpop.xlane.xlu1 %975  ;;  %v973_v21 = vpop.xlane.xlu0 %972 }
 0x43b   : > { %v2342_v18 = vmax.f32 %v2332_v27, %v976_v0  ;;  %v2345_v6 = vmax.f32 %v2334_v29, %v973_v21 }
 0x43d   : > { %1309 = vst.msk [vmem:[#allocation2 + $0x60] sm:$0xff] %vm213_vm1, %v2342_v18  ;;  %1308 = vst.msk [vmem:[#allocation2 + $0x58] sm:$0xff] %vm213_vm1, %v2345_v6  ;;  %1020 = vperm.xlu1 %1802, %v2313_v1  }
 0x43e   : > { %v982_v0 = vpop.xlane.xlu1 %981  ;;  %v979_v21 = vpop.xlane.xlu0 %978 }
 0x43f   : > { %v2361_v60 = vmax.f32 %v2347_v59, %v982_v0  ;;  %v2364_v11 = vmax.f32 %v2349_v12, %v979_v21 }
 0x441   : > { %1311 = vst.msk [vmem:[#allocation2 + $0x70] sm:$0xff] %vm213_vm1, %v2361_v60  ;;  %1310 = vst.msk [vmem:[#allocation2 + $0x68] sm:$0xff] %vm213_vm1, %v2364_v11  ;;  %1050 = vperm.xlu0 %1803, %v2361_v60   ;;  %1035 = vperm.xlu1 %1802, %v2345_v6  }
 0x442   : > { %v985_v0 = vpop.xlane.xlu0 %984 }
 0x443   : > { %v2379_v21 = vmax.f32 %v2366_v50, %v985_v0  ;;  %v570_v0 = vsel %vm433_vm2, %v2216_v34, 0.0 }
 0x445   : > { %1312 = vst.msk [vmem:[#allocation2 + $0x78] sm:$0xff] %vm213_vm1, %v2379_v21  ;;  %1040 = vperm.xlu0 %1803, %v2342_v18   ;;  %1045 = vperm.xlu1 %1802, %v2364_v11  }
 0x449   : > { %1200 = vrot.lane.b32.xlu0 %v2176_v20, %s1939_s25  ;;  %1055 = vperm.xlu1 %1802, %v2379_v21  }
 0x44d   : > { %1204 = vrot.lane.b32.xlu0 %v2190_v25, %s1939_s25  ;;  %1202 = vrot.lane.b32.xlu1 %v2201_v2, %s1939_s25 }
 0x451   : > { %1206 = vrot.lane.b32.xlu1 %v2207_v39, %s1939_s25 }
 0x46c   : > { %571 = vadd.xlane.f32.xlu0 %v570_v0 }
 0x4b6   : > { %v1026_v4 = vpop.permute.xlu0 %1025 }
 0x4b7   : > { %v1059_v19 = vsub.f32 %v2284_v52, %v1026_v4 }
 0x4b8   : > { %v1031_v57 = vpop.permute.xlu1 %1030 }
 0x4b9   : > { %v1060_v43 = vsub.f32 %v2276_v47, %v1031_v57  ;;  %v1068_v3 = vmul.f32 1.442695, %v1059_v19 }
 0x4bb   : > { %v1070_v20 = vmul.f32 1.442695, %v1060_v43 }
 0x4bc   : > { %v1021_v42 = vpop.permute.xlu1 %1020 }
 0x4bd   : > { %1828 = vpow2.f32 %v1070_v20  ;;  %v1058_v25 = vsub.f32 %v2278_v48, %v1021_v42 }
 0x4be   : > { %1830 = vpow2.f32 %v1068_v3 }
 0x4bf   : > { %v1066_v2 = vmul.f32 1.442695, %v1058_v25 }
 0x4c0   : > { %v1036_v46 = vpop.permute.xlu1 %1035  ;;  %v1051_v39 = vpop.permute.xlu0 %1050 }
 0x4c1   : > { %1832 = vpow2.f32 %v1066_v2  ;;  %v1061_v34 = vsub.f32 %v2280_v49, %v1036_v46  ;;  %v1064_v38 = vsub.f32 %v2290_v5, %v1051_v39 }
 0x4c3   : > { %v1072_v0 = vmul.f32 1.442695, %v1061_v34  ;;  %v1078_v3 = vmul.f32 1.442695, %v1064_v38 }
 0x4c4   : > { %v1046_v4 = vpop.permute.xlu1 %1045  ;;  %v1041_v52 = vpop.permute.xlu0 %1040 }
 0x4c5   : > { %1834 = vpow2.f32 %v1072_v0  ;;  %v1063_v57 = vsub.f32 %v2300_v44, %v1046_v4  ;;  %v1062_v19 = vsub.f32 %v2292_v41, %v1041_v52 }
 0x4c7   : > { %v1829_v43 = vpop.eup %1828  ;;  %v1076_v47 = vmul.f32 1.442695, %v1063_v57  ;;  %v1074_v42 = vmul.f32 1.442695, %v1062_v19 }
 0x4c8   : > { %v1056_v48 = vpop.permute.xlu1 %1055  ;;  %v1201_v20 = vpop.permute.xlu0 %1200  ;;  %v1105_v25 = vsel %vm433_vm2, %v1829_v43, 0.0 }
 0x4c9   : > { %v1831_v2 = vpop.eup %1830  ;;  %1836 = vpow2.f32 %v1076_v47  ;;  %v1065_v46 = vsub.f32 %v2298_v14, %v1056_v48  ;;  %1106 = vadd.xlane.f32.xlu0 %v1105_v25  ;;  %1745 = vmatprep.subr.bf16.mxu0 %v1201_v20 }
 0x4ca   : > { %1838 = vpow2.f32 %v1074_v42  ;;  %1746 = vmatpush3.bf16.msra.mxu0 %v1201_v20  ;;  %v1102_v38 = vsel %vm433_vm2, %v1831_v2, 0.0 }
 0x4cb   : > { %v1833_v49 = vpop.eup %1832  ;;  %v1080_v5 = vmul.f32 1.442695, %v1065_v46  ;;  %1840 = vpow2.f32 %v1078_v3  ;;  %v576_v46 = vsel %vm433_vm2, %v2223_v35, 0.0  ;;  %v585_v35 = vsel %vm433_vm2, %v2241_v13, 0.0 }
 0x4cc   : > { %v1203_v41 = vpop.permute.xlu1 %1202  ;;  %v1099_v44 = vsel %vm433_vm2, %v1833_v49, 0.0  ;;  %v1196_v39 = vpack.c.bf16 %v1831_v2, %v1833_v49  ;;  %v1205_v34 = vpop.permute.xlu0 %1204  ;;  %v573_v49 = vsel %vm433_vm2, %v2218_v37, 0.0  ;;  %v2583_v37 = vsub.f32 %v2104_v51, %v2109_v54 }
 0x4cd   : > { %1842 = vpow2.f32 %v1080_v5  ;;  %1100 = vadd.xlane.f32.xlu1 %v1099_v44  ;;  %1103 = vadd.xlane.f32.xlu0 %v1102_v38  ;;  %v582_v5 = vsel %vm433_vm2, %v2239_v45, 0.0  ;;  %v588_v44 = vsel %vm433_vm2, %v2246_v22, 0.0  ;;  %v591_v45 = vsel %vm433_vm2, %v2249_v23, 0.0 }
 0x4ce   : > { %1747 = vmatprep.subr.bf16.mxu0 %v1203_v41  ;;  %1753 = vmatprep.mubr.msk.bf16.mxu0 %vm433_vm2, %v1196_v39  ;;  %v474_v38 = vmul.f32 1.442695, %v2583_v37  ;;  %v2585_v22 = vsub.f32 %v2129_v62, %v2139_v7  ;;  %v2586_v13 = vsub.f32 %v2106_v53, %v2118_v58  ;;  %v2587_v51 = vsub.f32 %v2146_v10, %v2161_v16 }
 0x4cf   : > { %v1835_v14 = vpop.eup %1834  ;;  %1748 = vmatpush3.bf16.msra.mxu0 %v1203_v41  ;;  %v579_v41 = vsel %vm433_vm2, %v2225_v31, 0.0  ;;  %v2584_v31 = vsub.f32 %v2111_v56, %v2126_v61  ;;  %v2588_v56 = vsub.f32 %v2131_v63, %v2142_v8  ;;  %v2589_v62 = vsub.f32 %v2308_v28, %v2313_v1 }
 0x4d0   : > { %v1197_v0 = vpack.c.bf16 %v1835_v14, %v1829_v43  ;;  %v1108_v4 = vsel %vm433_vm2, %v1835_v14, 0.0  ;;  %1749 = vmatprep.subr.bf16.mxu0 %v1205_v34  ;;  %v1207_v52 = vpop.permute.xlu1 %1206  ;;  %1844 = vpow2.f32 %v474_v38  ;;  %v476_v14 = vmul.f32 1.442695, %v2586_v13  ;;  %v1086_v38 = vld [vmem:[#allocation3 + $0x58] sm:$0xff] }
 0x4d1   : > { %1109 = vadd.xlane.f32.xlu1 %v1108_v4  ;;  %v478_v39 = vmul.f32 1.442695, %v2584_v31  ;;  %v484_v54 = vmul.f32 1.442695, %v2587_v51  ;;  %v482_v61 = vmul.f32 1.442695, %v2588_v56  ;;  %v2590_v10 = vsub.f32 %v2144_v9, %v2158_v15 }
 0x4d2   : > { %v1002_v7 = vmul.f32 1.442695, %v2589_v62  ;;  %v2591_v63 = vsub.f32 %v2315_v55, %v2329_v26  ;;  %v2592_v1 = vsub.f32 %v2310_v33, %v2322_v40  ;;  %v2593_v15 = vsub.f32 %v2332_v27, %v2342_v18 }
 0x4d3   : > { %v1837_v57 = vpop.eup %1836  ;;  %1750 = vmatpush3.bf16.msra.mxu0 %v1205_v34  ;;  %1846 = vpow2.f32 %v478_v39  ;;  %v480_v34 = vmul.f32 1.442695, %v2585_v22  ;;  %v486_v16 = vmul.f32 1.442695, %v2590_v10  ;;  %v2594_v26 = vsub.f32 %v2334_v29, %v2345_v6 }
 0x4d4   : > { %v1839_v19 = vpop.eup %1838  ;;  %v1114_v47 = vsel %vm433_vm2, %v1837_v57, 0.0  ;;  %1751 = vmatprep.subr.bf16.mxu0 %v1207_v52  ;;  %v1006_v8 = vmul.f32 1.442695, %v2591_v63  ;;  %v2595_v40 = vsub.f32 %v2347_v59, %v2361_v60  ;;  %v2596_v27 = vsub.f32 %v2349_v12, %v2364_v11 }
 0x4d5   : > { %1115 = vadd.xlane.f32.xlu1 %v1114_v47  ;;  %v1111_v42 = vsel %vm433_vm2, %v1839_v19, 0.0  ;;  %v1198_v3 = vpack.c.bf16 %v1837_v57, %v1839_v19  ;;  %v1841_v48 = vpop.eup %1840  ;;  %1848 = vpow2.f32 %v480_v34  ;;  %v1004_v57 = vmul.f32 1.442695, %v2592_v1  ;;  %v1088_v34 = vld [vmem:[#allocation3 + $0x68] sm:$0xff]  ;;  %v556_v1 = vld [vmem:[#allocation3 + $0x10] sm:$0xff] }
 0x4d6   : > { %1112 = vadd.xlane.f32.xlu0 %v1111_v42  ;;  %v1117_v2 = vsel %vm433_vm2, %v1841_v48, 0.0  ;;  %1850 = vpow2.f32 %v476_v14  ;;  %v1010_v19 = vmul.f32 1.442695, %v2593_v15  ;;  %v1008_v47 = vmul.f32 1.442695, %v2594_v26  ;;  %v1087_v14 = vld [vmem:[#allocation3 + $0x60] sm:$0xff] }
 0x4d7   : > { %v1843_v20 = vpop.eup %1842  ;;  %1752 = vmatpush3.bf16.msra.mxu0 %v1207_v52  ;;  %1852 = vpow2.f32 %v484_v54  ;;  %v1014_v42 = vmul.f32 1.442695, %v2595_v40  ;;  %v2597_v60 = vsub.f32 %v2366_v50, %v2379_v21  ;;  %v1084_v50 = vld [vmem:[#allocation3 + $0x48] sm:$0xff] }
 0x4d8   : > { %v1120_v43 = vsel %vm433_vm2, %v1843_v20, 0.0  ;;  %v1199_v25 = vpack.c.bf16 %v1843_v20, %v1841_v48  ;;  %1854 = vpow2.f32 %v482_v61  ;;  %v1090_v61 = vld [vmem:[#allocation3 + $0x78] sm:$0xff] }
 0x4d9   : > { %1121 = vadd.xlane.f32.xlu1 %v1120_v43  ;;  %1856 = vpow2.f32 %v1002_v7  ;;  %v1016_v59 = vmul.f32 1.442695, %v2597_v60  ;;  %v1089_v7 = vld [vmem:[#allocation3 + $0x70] sm:$0xff]  ;;  %v557_v60 = vld [vmem:[#allocation3 + $0x18] sm:$0xff] }
 0x4da   : > { %1118 = vadd.xlane.f32.xlu0 %v1117_v2  ;;  %1754 = vmatmul.mubr.msk.bf16.vlgmr.msra.gmra.mrb[8].mxu0 %vm433_vm2, %v1197_v0  ;;  %v1845_v23 = vpop.eup %1844  ;;  %v554_v0 = vld [vmem:[#allocation3] sm:$0xff]  ;;  %1858 = vpow2.f32 %v486_v16  ;;  %v1085_v2 = vld [vmem:[#allocation3 + $0x50] sm:$0xff] }
 0x4db   : > { %1757 = vmatprep.mubr.msk.bf16.mxu0 %vm433_vm2, %v1198_v3  ;;  %v562_v53 = vmul.f32 %v1845_v23, %v554_v0  ;;  %1860 = vpow2.f32 %v1006_v8  ;;  %v1012_v3 = vmul.f32 1.442695, %v2596_v27 }
 0x4dc   : > { %1862 = vpow2.f32 %v1004_v57 }
 0x4dd   : > { %577 = vadd.xlane.f32.xlu1 %v576_v46  ;;  %v2449_v58 = vpop.eup %1846  ;;  %1864 = vpow2.f32 %v1010_v19  ;;  %v555_v19 = vld [vmem:[#allocation3 + $0x8] sm:$0xff] }
 0x4de   : > { %574 = vadd.xlane.f32.xlu0 %v573_v49  ;;  %1866 = vpow2.f32 %v1008_v47 }
 0x4df   : > { %v2459_v28 = vpop.eup %1848  ;;  %1868 = vpow2.f32 %v1014_v42  ;;  %v558_v42 = vld [vmem:[#allocation3 + $0x20] sm:$0xff] }
 0x4e0   : > { %v2465_v9 = vpop.eup %1850  ;;  %1870 = vpow2.f32 %v1012_v3 }
 0x4e1   : > { %583 = vadd.xlane.f32.xlu1 %v582_v5  ;;  %v2471_v55 = vpop.eup %1852  ;;  %1872 = vpow2.f32 %v1016_v59  ;;  %v1083_v5 = vld [vmem:[#allocation3 + $0x40] sm:$0xff]  ;;  %v563_v40 = vmul.f32 %v2465_v9, %v555_v19 }
 0x4e2   : > { %580 = vadd.xlane.f32.xlu0 %v579_v41  ;;  %1758 = vmatmul.mubr.msk.bf16.gmra.mrb[12].mxu0 %vm433_vm2, %v1199_v25  ;;  %v2477_v33 = vpop.eup %1854 }
 0x4e3   : > { %v1857_v18 = vpop.eup %1856 }
 0x4e4   : > { %v2486_v29 = vpop.eup %1858  ;;  %v1091_v41 = vmul.f32 %v1857_v18, %v1083_v5 }
 0x4e5   : > { %589 = vadd.xlane.f32.xlu1 %v588_v44  ;;  %v1861_v6 = vpop.eup %1860 }
 0x4e6   : > { %586 = vadd.xlane.f32.xlu0 %v585_v35  ;;  %v1863_v48 = vpop.eup %1862  ;;  %v1093_v46 = vmul.f32 %v1861_v6, %v1085_v2 }
 0x4e7   : > { %v1865_v20 = vpop.eup %1864  ;;  %v1092_v44 = vmul.f32 %v1863_v48, %v1084_v50 }
 0x4e8   : > { %v1867_v11 = vpop.eup %1866  ;;  %v1095_v56 = vmul.f32 %v1865_v20, %v1087_v14 }
 0x4e9   : > { %v1869_v12 = vpop.eup %1868  ;;  %v1094_v39 = vmul.f32 %v1867_v11, %v1086_v38  ;;  %v561_v38 = vld [vmem:[#allocation3 + $0x38] sm:$0xff] }
 0x4ea   : > { %592 = vadd.xlane.f32.xlu0 %v591_v45  ;;  %v1871_v43 = vpop.eup %1870  ;;  %v1097_v8 = vmul.f32 %v1869_v12, %v1089_v7 }
 0x4eb   : > { %v1873_v25 = vpop.eup %1872  ;;  %v1096_v54 = vmul.f32 %v1871_v43, %v1088_v34 }
 0x4f6   : > { %621 = vperm.xlu1 %1802, %v1845_v23  }
 0x4f9   : > { %v572_v4 = vpop.xlane.xlu0 %571 }
 0x4fa   : > { %v594_v52 = vadd.f32 %v572_v4, %v562_v53  ;;  %631 = vperm.xlu1 %1802, %v2449_v58   ;;  %v2598_v53 = vsub.f32 %v2163_v17, %v2181_v24  ;;  %v564_v17 = vmul.f32 %v2449_v58, %v556_v1 }
 0x4fc   : > { %603 = vst.msk [vmem:[#allocation3] sm:$0xff] %vm213_vm1, %v594_v52  ;;  %v488_v10 = vmul.f32 1.442695, %v2598_v53  ;;  %v1098_v52 = vmul.f32 %v1873_v25, %v1090_v61 }
 0x4fe   : > { %636 = vperm.xlu1 %1802, %v2459_v28  }
 0x500   : > { %626 = vperm.xlu0 %1803, %v2465_v9   ;;  %v560_v9 = vld [vmem:[#allocation3 + $0x30] sm:$0xff] }
 0x502   : > { %646 = vperm.xlu1 %1802, %v2471_v55  }
 0x504   : > { %641 = vperm.xlu0 %1803, %v2477_v33  }
 0x506   : > { %1150 = vperm.xlu1 %1802, %v1857_v18  }
 0x508   : > { %651 = vperm.xlu0 %1803, %v2486_v29  }
 0x50a   : > { %1160 = vperm.xlu1 %1802, %v1861_v6  }
 0x50c   : > { %1155 = vperm.xlu0 %1803, %v1863_v48   ;;  %v566_v48 = vmul.f32 %v2477_v33, %v558_v42  ;;  %v568_v33 = vmul.f32 %v2486_v29, %v560_v9 }
 0x50e   : > { %1170 = vperm.xlu1 %1802, %v1865_v20  }
 0x510   : > { %1165 = vperm.xlu0 %1803, %v1867_v11   ;;  %v565_v11 = vmul.f32 %v2459_v28, %v557_v60 }
 0x512   : > { %1180 = vperm.xlu1 %1802, %v1869_v12  }
 0x514   : > { %1175 = vperm.xlu0 %1803, %v1871_v43  }
 0x518   : > { %1185 = vperm.xlu0 %1803, %v1873_v25  }
 0x556   : > { %v1107_v49 = vpop.xlane.xlu0 %1106 }
 0x557   : > { %v1125_v21 = vadd.f32 %v1107_v49, %v1093_v46  ;;  %v559_v46 = vld [vmem:[#allocation3 + $0x28] sm:$0xff] }
 0x558   : > { %v567_v28 = vmul.f32 %v2471_v55, %v559_v46 }
 0x559   : > { %1133 = vst.msk [vmem:[#allocation3 + $0x50] sm:$0xff] %vm213_vm1, %v1125_v21 }
 0x55a   : > { %v1101_v35 = vpop.xlane.xlu1 %1100  ;;  %v1104_v37 = vpop.xlane.xlu0 %1103 }
 0x55b   : > { %v1123_v45 = vadd.f32 %v1101_v35, %v1091_v41  ;;  %v1124_v31 = vadd.f32 %v1104_v37, %v1092_v44 }
 0x55d   : > { %1131 = vst.msk [vmem:[#allocation3 + $0x40] sm:$0xff] %vm213_vm1, %v1123_v45  ;;  %1132 = vst.msk [vmem:[#allocation3 + $0x48] sm:$0xff] %vm213_vm1, %v1124_v31  ;;  %v611_v31 = vld [vmem:[#allocation4] sm:$0xff] }
 0x55e   : > { %v1110_v22 = vpop.xlane.xlu1 %1109 }
 0x55f   : > { %v1126_v13 = vadd.f32 %v1110_v22, %v1094_v39  ;;  %v1316_v22 = vld [vmem:[#allocation3] sm:$0xff] }
 0x560   : > { %v1394_v51 = vld [vmem:[#allocation3 + $0x50] sm:$0xff] }
 0x561   : > { %1134 = vst.msk [vmem:[#allocation3 + $0x58] sm:$0xff] %vm213_vm1, %v1126_v13  ;;  %1874 = vrcp.f32 %v1394_v51 }
 0x562   : > { %v1116_v23 = vpop.xlane.xlu1 %1115 }
 0x563   : > { %v1128_v0 = vadd.f32 %v1116_v23, %v1096_v54  ;;  %v1113_v62 = vpop.xlane.xlu0 %1112  ;;  %v613_v23 = vld [vmem:[#allocation4 + $0x10] sm:$0xff] }
 0x564   : > { %v1127_v16 = vadd.f32 %v1113_v62, %v1095_v56  ;;  %v1392_v4 = vld [vmem:[#allocation3 + $0x40] sm:$0xff]  ;;  %v1393_v18 = vld [vmem:[#allocation3 + $0x48] sm:$0xff] }
 0x565   : > { %1136 = vst.msk [vmem:[#allocation3 + $0x68] sm:$0xff] %vm213_vm1, %v1128_v0  ;;  %1876 = vrcp.f32 %v1392_v4 }
 0x566   : > { %1135 = vst.msk [vmem:[#allocation3 + $0x60] sm:$0xff] %vm213_vm1, %v1127_v16  ;;  %v1122_v63 = vpop.xlane.xlu1 %1121  ;;  %1878 = vpow2.f32 %v488_v10  ;;  %v614_v16 = vld [vmem:[#allocation4 + $0x18] sm:$0xff] }
 0x567   : > { %v1130_v57 = vadd.f32 %v1122_v63, %v1098_v52  ;;  %v1119_v15 = vpop.xlane.xlu0 %1118  ;;  %v612_v52 = vld [vmem:[#allocation4 + $0x8] sm:$0xff] }
 0x568   : > { %v1129_v26 = vadd.f32 %v1119_v15, %v1097_v8  ;;  %v1395_v47 = vld [vmem:[#allocation3 + $0x58] sm:$0xff] }
 0x569   : > { %1138 = vst.msk [vmem:[#allocation3 + $0x78] sm:$0xff] %vm213_vm1, %v1130_v57  ;;  %1880 = vrcp.f32 %v1395_v47 }
 0x56a   : > { %1137 = vst.msk [vmem:[#allocation3 + $0x70] sm:$0xff] %vm213_vm1, %v1129_v26  ;;  %v578_v24 = vpop.xlane.xlu1 %577  ;;  %1882 = vrcp.f32 %v1393_v18  ;;  %v616_v26 = vld [vmem:[#allocation4 + $0x28] sm:$0xff] }
 0x56b   : > { %v1875_v27 = vpop.eup %1874  ;;  %v596_v3 = vadd.f32 %v578_v24, %v564_v17  ;;  %v575_v6 = vpop.xlane.xlu0 %574  ;;  %v615_v17 = vld [vmem:[#allocation4 + $0x20] sm:$0xff] }
 0x56c   : > { %v595_v59 = vadd.f32 %v575_v6, %v563_v40  ;;  %1428 = vperm.xlu1 %1802, %v1875_v27   ;;  %v1397_v12 = vld [vmem:[#allocation3 + $0x68] sm:$0xff] }
 0x56d   : > { %605 = vst.msk [vmem:[#allocation3 + $0x10] sm:$0xff] %vm213_vm1, %v596_v3  ;;  %v1396_v58 = vld [vmem:[#allocation3 + $0x60] sm:$0xff] }
 0x56e   : > { %604 = vst.msk [vmem:[#allocation3 + $0x8] sm:$0xff] %vm213_vm1, %v595_v59  ;;  %v584_v20 = vpop.xlane.xlu1 %583  ;;  %1884 = vrcp.f32 %v1396_v58  ;;  %v617_v58 = vld [vmem:[#allocation4 + $0x30] sm:$0xff] }
 0x56f   : > { %v1877_v43 = vpop.eup %1876  ;;  %v598_v25 = vadd.f32 %v584_v20, %v566_v48  ;;  %v581_v2 = vpop.xlane.xlu0 %580  ;;  %1886 = vrcp.f32 %v1397_v12  ;;  %v2601_v20 = vld [vmem:[#allocation7_spill] sm:$0xff] }
 0x570   : > { %v597_v49 = vadd.f32 %v581_v2, %v565_v11  ;;  %1418 = vperm.xlu1 %1802, %v1877_v43   ;;  %v1879_v50 = vpop.eup %1878  ;;  %v1399_v41 = vld [vmem:[#allocation3 + $0x78] sm:$0xff]  ;;  %v2602_v2 = vld [vmem:[#allocation6_spill] sm:$0xff] }
 0x571   : > { %607 = vst.msk [vmem:[#allocation3 + $0x20] sm:$0xff] %vm213_vm1, %v598_v25  ;;  %v1398_v5 = vld [vmem:[#allocation3 + $0x70] sm:$0xff]  ;;  %v569_v39 = vmul.f32 %v1879_v50, %v561_v38 }
 0x572   : > { %606 = vst.msk [vmem:[#allocation3 + $0x18] sm:$0xff] %vm213_vm1, %v597_v49  ;;  %v590_v21 = vpop.xlane.xlu1 %589  ;;  %1888 = vrcp.f32 %v1398_v5 }
 0x573   : > { %v1881_v44 = vpop.eup %1880  ;;  %v600_v35 = vadd.f32 %v590_v21, %v568_v33  ;;  %v587_v37 = vpop.xlane.xlu0 %586  ;;  %1890 = vrcp.f32 %v1399_v41 }
 0x574   : > { %v599_v45 = vadd.f32 %v587_v37, %v567_v28  ;;  %1433 = vperm.xlu0 %1803, %v1881_v44   ;;  %v1883_v34 = vpop.eup %1882  ;;  %1892 = vrcp.f32 %v1316_v22  ;;  %v1318_v0 = vld [vmem:[#allocation3 + $0x10] sm:$0xff]  ;;  %v1140_v37 = vld [vmem:[#allocation4 + $0x40] sm:$0xff] }
 0x575   : > { %609 = vst.msk [vmem:[#allocation3 + $0x30] sm:$0xff] %vm213_vm1, %v600_v35  ;;  %v1317_v13 = vld [vmem:[#allocation3 + $0x8] sm:$0xff]  ;;  %v1142_v35 = vld [vmem:[#allocation4 + $0x50] sm:$0xff] }
 0x576   : > { %608 = vst.msk [vmem:[#allocation3 + $0x28] sm:$0xff] %vm213_vm1, %v599_v45  ;;  %v622_v29 = vpop.permute.xlu1 %621  ;;  %1894 = vrcp.f32 %v1317_v13  ;;  %v1143_v45 = vld [vmem:[#allocation4 + $0x58] sm:$0xff] }
 0x577   : > { %v659_v55 = vmul.f32 %v622_v29, %v611_v31  ;;  %v593_v14 = vpop.xlane.xlu0 %592  ;;  %1896 = vrcp.f32 %v1318_v0  ;;  %v1141_v29 = vld [vmem:[#allocation4 + $0x48] sm:$0xff]  ;;  %v1146_v0 = vld [vmem:[#allocation4 + $0x70] sm:$0xff] }
 0x578   : > { %v1885_v51 = vpop.eup %1884  ;;  %v601_v54 = vadd.f32 %v593_v14, %v569_v39  ;;  %1423 = vperm.xlu0 %1803, %v1883_v34   ;;  %v1320_v63 = vld [vmem:[#allocation3 + $0x20] sm:$0xff] }
 0x579   : > { %v760_v56 = vadd.f32 %v2262_v32, %v659_v55  ;;  %1438 = vperm.xlu1 %1802, %v1885_v51   ;;  %v1887_v62 = vpop.eup %1886  ;;  %v1319_v7 = vld [vmem:[#allocation3 + $0x18] sm:$0xff] }
 0x57a   : > { %610 = vst.msk [vmem:[#allocation3 + $0x38] sm:$0xff] %vm213_vm1, %v601_v54  ;;  %v632_v61 = vpop.permute.xlu1 %631  ;;  %1898 = vrcp.f32 %v1319_v7 }
 0x57b   : > { %768 = vst.msk [vmem:[#allocation4] sm:$0xff] %vm246_vm0, %v760_v56  ;;  %v661_v53 = vmul.f32 %v632_v61, %v613_v23  ;;  %1900 = vrcp.f32 %v1320_v63 }
 0x57c   : > { %v1889_v10 = vpop.eup %1888  ;;  %1443 = vperm.xlu0 %1803, %v1887_v62   ;;  %v1322_v42 = vld [vmem:[#allocation3 + $0x30] sm:$0xff] }
 0x57d   : > { %v762_v4 = vadd.f32 %v2260_v30, %v661_v53  ;;  %1448 = vperm.xlu1 %1802, %v1889_v10   ;;  %v1891_v8 = vpop.eup %1890  ;;  %v1321_v1 = vld [vmem:[#allocation3 + $0x28] sm:$0xff]  ;;  %v2599_v30 = vld [vmem:[#allocation5_spill] sm:$0xff]  ;;  %v1147_v10 = vld [vmem:[#allocation4 + $0x78] sm:$0xff] }
 0x57e   : > { %v637_v32 = vpop.permute.xlu1 %636  ;;  %1902 = vrcp.f32 %v1321_v1  ;;  %v1893_v18 = vpop.eup %1892  ;;  %v1144_v53 = vld [vmem:[#allocation4 + $0x60] sm:$0xff] }
 0x57f   : > { %770 = vst.msk [vmem:[#allocation4 + $0x10] sm:$0xff] %vm246_vm0, %v762_v4  ;;  %v662_v57 = vmul.f32 %v637_v32, %v614_v16  ;;  %v627_v15 = vpop.permute.xlu0 %626  ;;  %1904 = vrcp.f32 %v1322_v42 }
 0x580   : > { %v660_v19 = vmul.f32 %v627_v15, %v612_v52  ;;  %1453 = vperm.xlu0 %1803, %v1891_v8   ;;  %v1895_v60 = vpop.eup %1894  ;;  %v1145_v52 = vld [vmem:[#allocation4 + $0x68] sm:$0xff] }
 0x581   : > { %v763_v47 = vadd.f32 %v2264_v36, %v662_v57  ;;  %656 = vperm.xlu1 %1802, %v1879_v50   ;;  %v1323_v27 = vld [vmem:[#allocation3 + $0x38] sm:$0xff]  ;;  %v2600_v36 = vld [vmem:[#allocation9_spill] sm:$0xff]  ;;  %v1897_v9 = vpop.eup %1896 }
 0x582   : > { %v761_v24 = vadd.f32 %v2599_v30, %v660_v19  ;;  %v647_v40 = vpop.permute.xlu1 %646  ;;  %1906 = vrcp.f32 %v1323_v27 }
 0x583   : > { %771 = vst.msk [vmem:[#allocation4 + $0x18] sm:$0xff] %vm246_vm0, %v763_v47  ;;  %v664_v3 = vmul.f32 %v647_v40, %v616_v26  ;;  %v642_v6 = vpop.permute.xlu0 %641 }
 0x584   : > { %769 = vst.msk [vmem:[#allocation4 + $0x8] sm:$0xff] %vm246_vm0, %v761_v24  ;;  %v663_v59 = vmul.f32 %v642_v6, %v615_v17  ;;  %1342 = vperm.xlu0 %1803, %v1893_v18   ;;  %v1899_v43 = vpop.eup %1898 }
 0x585   : > { %v765_v48 = vadd.f32 %v2600_v36, %v664_v3  ;;  %1347 = vperm.xlu1 %1802, %v1895_v60   ;;  %v1901_v49 = vpop.eup %1900 }
 0x586   : > { %v764_v11 = vadd.f32 %v2601_v20, %v663_v59  ;;  %v1151_v21 = vpop.permute.xlu1 %1150 }
 0x587   : > { %773 = vst.msk [vmem:[#allocation4 + $0x28] sm:$0xff] %vm246_vm0, %v765_v48  ;;  %v652_v12 = vpop.permute.xlu0 %651  ;;  %v1188_v39 = vmul.f32 %v1151_v21, %v1140_v37 }
 0x588   : > { %772 = vst.msk [vmem:[#allocation4 + $0x20] sm:$0xff] %vm246_vm0, %v764_v11  ;;  %v665_v25 = vmul.f32 %v652_v12, %v617_v58  ;;  %1352 = vperm.xlu0 %1803, %v1897_v9   ;;  %v1903_v33 = vpop.eup %1902 }
 0x589   : > { %1357 = vperm.xlu1 %1802, %v1899_v43   ;;  %v1905_v5 = vpop.eup %1904 }
 0x58a   : > { %v766_v46 = vadd.f32 %v2602_v2, %v665_v25  ;;  %v1161_v41 = vpop.permute.xlu1 %1160 }
 0x58b   : > { %v1156_v28 = vpop.permute.xlu0 %1155  ;;  %v1190_v31 = vmul.f32 %v1161_v41, %v1142_v35 }
 0x58c   : > { %774 = vst.msk [vmem:[#allocation4 + $0x30] sm:$0xff] %vm246_vm0, %v766_v46  ;;  %1362 = vperm.xlu0 %1803, %v1901_v49   ;;  %v1907_v50 = vpop.eup %1906  ;;  %v1189_v51 = vmul.f32 %v1156_v28, %v1141_v29 }
 0x58d   : > { %1367 = vperm.xlu1 %1802, %v1903_v33  }
 0x58e   : > { %v1171_v38 = vpop.permute.xlu1 %1170 }
 0x58f   : > { %v1166_v44 = vpop.permute.xlu0 %1165  ;;  %v1192_v32 = vmul.f32 %v1171_v38, %v1144_v53 }
 0x590   : > { %1372 = vperm.xlu0 %1803, %v1905_v5   ;;  %v1191_v13 = vmul.f32 %v1166_v44, %v1143_v45  ;;  %v618_v5 = vld [vmem:[#allocation4 + $0x38] sm:$0xff] }
 0x591   : > { %1377 = vperm.xlu1 %1802, %v1907_v50   ;;  %v2603_v45 = vld [vmem:[#allocation8_spill] sm:$0xff] }
 0x592   : > { %v1181_v62 = vpop.permute.xlu1 %1180 }
 0x593   : > { %v1176_v22 = vpop.permute.xlu0 %1175  ;;  %v1194_v4 = vmul.f32 %v1181_v62, %v1146_v0  ;;  %v1332_v0 = vld [vmem:[#allocation4] sm:$0xff] }
 0x594   : > { %v1193_v15 = vmul.f32 %v1176_v22, %v1145_v52  ;;  %v1337_v52 = vld [vmem:[#allocation4 + $0x28] sm:$0xff] }
 0x597   : > { %v1186_v16 = vpop.permute.xlu0 %1185 }
 0x598   : > { %v1195_v8 = vmul.f32 %v1186_v16, %v1147_v10 }
 0x5ad   : > { %v1755_v34 = vpop.f32.mrb[8].mxu0 }
 0x5ae   : > { %v1291_v55 = vadd.f32 %v1755_v34, %v1190_v31  ;;  %v1258_v14 = vpop.f32.mrb[9].mxu0 }
 0x5af   : > { %v1289_v54 = vadd.f32 %v1258_v14, %v1188_v39  ;;  %v1756_v23 = vpop.f32.mrb[10].mxu0  ;;  %v1334_v14 = vld [vmem:[#allocation4 + $0x10] sm:$0xff] }
 0x5b0   : > { %1299 = vst.msk [vmem:[#allocation4 + $0x50] sm:$0xff] %vm246_vm0, %v1291_v55  ;;  %v1292_v56 = vadd.f32 %v1756_v23, %v1191_v13  ;;  %v1261_v61 = vpop.f32.mrb[11].mxu0  ;;  %v1335_v55 = vld [vmem:[#allocation4 + $0x18] sm:$0xff] }
 0x5b1   : > { %1297 = vst.msk [vmem:[#allocation4 + $0x40] sm:$0xff] %vm246_vm0, %v1289_v54  ;;  %v1290_v7 = vadd.f32 %v1261_v61, %v1189_v51  ;;  %v1333_v61 = vld [vmem:[#allocation4 + $0x8] sm:$0xff] }
 0x5b2   : > { %1300 = vst.msk [vmem:[#allocation4 + $0x58] sm:$0xff] %vm246_vm0, %v1292_v56 }
 0x5b3   : > { %1298 = vst.msk [vmem:[#allocation4 + $0x48] sm:$0xff] %vm246_vm0, %v1290_v7 }
 0x5b5   : > { %v1759_v63 = vpop.f32.mrb[12].mxu0 }
 0x5b6   : > { %v1295_v1 = vadd.f32 %v1759_v63, %v1194_v4  ;;  %v1274_v57 = vpop.f32.mrb[13].mxu0 }
 0x5b7   : > { %v1293_v19 = vadd.f32 %v1274_v57, %v1192_v32  ;;  %v1760_v26 = vpop.f32.mrb[14].mxu0  ;;  %v1410_v40 = vld [vmem:[#allocation4 + $0x50] sm:$0xff]  ;;  %v1336_v32 = vld [vmem:[#allocation4 + $0x20] sm:$0xff] }
 0x5b8   : > { %1303 = vst.msk [vmem:[#allocation4 + $0x70] sm:$0xff] %vm246_vm0, %v1295_v1  ;;  %v1296_v47 = vadd.f32 %v1760_v26, %v1195_v8  ;;  %v1277_v17 = vpop.f32.mrb[15].mxu0  ;;  %v1408_v59 = vld [vmem:[#allocation4 + $0x40] sm:$0xff] }
 0x5b9   : > { %1301 = vst.msk [vmem:[#allocation4 + $0x60] sm:$0xff] %vm246_vm0, %v1293_v19  ;;  %v1294_v30 = vadd.f32 %v1277_v17, %v1193_v15  ;;  %v1411_v42 = vld [vmem:[#allocation4 + $0x58] sm:$0xff]  ;;  %v1338_v17 = vld [vmem:[#allocation4 + $0x30] sm:$0xff] }
 0x5ba   : > { %1304 = vst.msk [vmem:[#allocation4 + $0x78] sm:$0xff] %vm246_vm0, %v1296_v47  ;;  %v1409_v36 = vld [vmem:[#allocation4 + $0x48] sm:$0xff] }
 0x5bb   : > { %1302 = vst.msk [vmem:[#allocation4 + $0x68] sm:$0xff] %vm246_vm0, %v1294_v30 }
 0x5bf   : > { %v1414_v50 = vld [vmem:[#allocation4 + $0x70] sm:$0xff] }
 0x5c0   : > { %v1412_v12 = vld [vmem:[#allocation4 + $0x60] sm:$0xff] }
 0x5c1   : > { %v1415_v21 = vld [vmem:[#allocation4 + $0x78] sm:$0xff] }
 0x5c2   : > { %v1413_v43 = vld [vmem:[#allocation4 + $0x68] sm:$0xff] }
 0x5eb   : > { %v1429_v24 = vpop.permute.xlu1 %1428 }
 0x5ec   : > { %v1458_v27 = vmul.f32 %v1429_v24, %v1410_v40 }
 0x5ef   : > { %v1419_v3 = vpop.permute.xlu1 %1418 }
 0x5f0   : > { %v1456_v58 = vmul.f32 %v1419_v3, %v1408_v59 }
 0x5f3   : > { %v1434_v18 = vpop.permute.xlu0 %1433 }
 0x5f4   : > { %v1459_v6 = vmul.f32 %v1434_v18, %v1411_v42 }
 0x5f6   : > { %v1465_v60 = vpack.c.bf16 %v1459_v6, %v1458_v27 }
 0x5f7   : > { %v1424_v48 = vpop.permute.xlu0 %1423 }
 0x5f8   : > { %v1439_v20 = vpop.permute.xlu1 %1438  ;;  %v1457_v11 = vmul.f32 %v1424_v48, %v1409_v36  ;;  %1474 = vrot.lane.b32.xlu1 %v1465_v60, %s1940_s26 }
 0x5f9   : > { %v1460_v2 = vmul.f32 %v1439_v20, %v1412_v12 }
 0x5fa   : > { %v1464_v9 = vpack.c.bf16 %v1457_v11, %v1456_v58 }
 0x5fb   : > { %v1444_v25 = vpop.permute.xlu0 %1443 }
 0x5fc   : > { %v1449_v46 = vpop.permute.xlu1 %1448  ;;  %v1461_v49 = vmul.f32 %v1444_v25, %v1413_v43  ;;  %1472 = vrot.lane.b32.xlu0 %v1464_v9, %s1940_s26 }
 0x5fd   : > { %v1462_v41 = vmul.f32 %v1449_v46, %v1414_v50 }
 0x5fe   : > { %v1466_v33 = vpack.c.bf16 %v1461_v49, %v1460_v2 }
 0x5ff   : > { %v1454_v28 = vpop.permute.xlu0 %1453 }
 0x600   : > { %v657_v44 = vpop.permute.xlu1 %656  ;;  %v1463_v35 = vmul.f32 %v1454_v28, %v1415_v21  ;;  %1476 = vrot.lane.b32.xlu0 %v1466_v33, %s1940_s26 }
 0x601   : > { %v666_v37 = vmul.f32 %v657_v44, %v618_v5 }
 0x602   : > { %v1467_v38 = vpack.c.bf16 %v1463_v35, %v1462_v41 }
 0x603   : > { %v767_v31 = vadd.f32 %v2603_v45, %v666_v37  ;;  %v1343_v39 = vpop.permute.xlu0 %1342 }
 0x604   : > { %1478 = vrot.lane.b32.xlu1 %v1467_v38, %s1940_s26  ;;  %v1348_v29 = vpop.permute.xlu1 %1347  ;;  %v1380_v7 = vmul.f32 %v1343_v39, %v1332_v0 }
 0x605   : > { %775 = vst.msk [vmem:[#allocation4 + $0x38] sm:$0xff] %vm246_vm0, %v767_v31  ;;  %v1381_v62 = vmul.f32 %v1348_v29, %v1333_v61 }
 0x607   : > { %v1353_v34 = vpop.permute.xlu0 %1352  ;;  %v1388_v1 = vpack.c.bf16 %v1381_v62, %v1380_v7 }
 0x608   : > { %v1358_v22 = vpop.permute.xlu1 %1357  ;;  %v1382_v23 = vmul.f32 %v1353_v34, %v1334_v14 }
 0x609   : > { %v1383_v54 = vmul.f32 %v1358_v22, %v1335_v55 }
 0x60b   : > { %v1363_v51 = vpop.permute.xlu0 %1362  ;;  %v1389_v53 = vpack.c.bf16 %v1383_v54, %v1382_v23 }
 0x60c   : > { %v1368_v13 = vpop.permute.xlu1 %1367  ;;  %v1384_v15 = vmul.f32 %v1363_v51, %v1336_v32  ;;  %v1339_v47 = vld [vmem:[#allocation4 + $0x38] sm:$0xff] }
 0x60d   : > { %v1385_v57 = vmul.f32 %v1368_v13, %v1337_v52 }
 0x60f   : > { %v1373_v10 = vpop.permute.xlu0 %1372  ;;  %v1390_v40 = vpack.c.bf16 %v1385_v57, %v1384_v15 }
 0x610   : > { %v1378_v56 = vpop.permute.xlu1 %1377  ;;  %v1386_v18 = vmul.f32 %v1373_v10, %v1338_v17 }
 0x611   : > { %v1387_v42 = vmul.f32 %v1378_v56, %v1339_v47 }
 0x613   : > { %v1391_v59 = vpack.c.bf16 %v1387_v42, %v1386_v18 }
 0x66a   : > { %v1475_v16 = vpop.permute.xlu1 %1474 }
 0x66b   : > { %v1485_v4 = vsel %vm246_vm0, %v1389_v53, %v1475_v16 }
 0x66c   : > { %v1657_v63 = vcombine.low %v1485_v4, %v1485_v4  ;;  %v1658_v8 = vcombine.high %v1485_v4, %v1485_v4 }
 0x66e   : > { %1523 = vst.msk [vmem:[%s2544_s29 + $0x8] sm:$0xf] %vm1520_vm3, %v1657_v63  ;;  %1524 = vst.msk [vmem:[%s2544_s29 + $0xc] sm:$0xf] %vm1520_vm3, %v1658_v8  ;;  %v1473_v19 = vpop.permute.xlu0 %1472 }
 0x66f   : > { %v1482_v26 = vsel %vm246_vm0, %v1388_v1, %v1473_v19 }
 0x670   : > { %v1655_v30 = vcombine.low %v1482_v26, %v1482_v26  ;;  %v1656_v24 = vcombine.high %v1482_v26, %v1482_v26 }
 0x672   : > { %1521 = vst.msk [vmem:[%s2544_s29] sm:$0xf] %vm1520_vm3, %v1655_v30  ;;  %1522 = vst.msk [vmem:[%s2544_s29 + $0x4] sm:$0xf] %vm1520_vm3, %v1656_v24  ;;  %v1477_v27 = vpop.permute.xlu0 %1476 }
 0x673   : > { %v1488_v3 = vsel %vm246_vm0, %v1390_v40, %v1477_v27 }
 0x674   : > { %v1659_v6 = vcombine.low %v1488_v3, %v1488_v3  ;;  %v1660_v60 = vcombine.high %v1488_v3, %v1488_v3 }
 0x676   : > { %1525 = vst.msk [vmem:[%s2544_s29 + $0x10] sm:$0xf] %vm1520_vm3, %v1659_v6  ;;  %1526 = vst.msk [vmem:[%s2544_s29 + $0x14] sm:$0xf] %vm1520_vm3, %v1660_v60  ;;  %v1479_v36 = vpop.permute.xlu1 %1478 }
 0x677   : > { %v1491_v48 = vsel %vm246_vm0, %v1391_v59, %v1479_v36 }
 0x678   : > { %v1661_v58 = vcombine.low %v1491_v48, %v1491_v48  ;;  %v1662_v20 = vcombine.high %v1491_v48, %v1491_v48 }
 0x67a   : > { %1527 = vst.msk [vmem:[%s2544_s29 + $0x18] sm:$0xf] %vm1520_vm3, %v1661_v58  ;;  %1528 = vst.msk [vmem:[%s2544_s29 + $0x1c] sm:$0xf] %vm1520_vm3, %v1662_v20 }
 0x67b PF: > { %s12_s11 = sadd.s32 1, %s1930_s11   ;;  %s2604_s9 = smov %s1926_s10 }
 0x67c   : > { %p9_p5 = scmp.ge.s32.totalorder %s12_s11, 4   ;;  %s2605_s10 = smov %s2607_s12 }
 0x67e   :  { %11 = sbr.rel (!%p9_p5) target bundleno = 2 (0x2), region = 72 }

// kernel: spatial_transformer.20
= control target key start
LH: loop header
LB: loop body
LE: loop exit
PB: predicated region body
PF: predicated region fallthrough
CT: control target
= control target key end

     0   :  { %s806_s15 = smov 0   ;;  %s808_s16 = smov 0   ;;  %s940_s0 = inlined_call_operand.vmem [shape: bf16[128,128], index: 0, kind: input, shape index: {}]   ;;  %s941_s1 = inlined_call_operand.vmem [shape: f32[128,32], index: 1, kind: input, shape index: {}]   ;;  %s942_s2 = inlined_call_operand.vmem [shape: f32[1,32], index: 2, kind: input, shape index: {}]   ;;  %s943_s3 = inlined_call_operand.vmem [shape: f32[128,32], index: 3, kind: input, shape index: {}]   ;;  %s944_s4 = inlined_call_operand.vmem [shape: f32[128,32], index: 4, kind: output, shape index: {}]  }
   0x1   :  { %s810_s17 = smov 0  }
   0x2 LB: > { %s33_s18 = sadd.s32 1, %s774_s16  ;;  %p661_p0 = scmp.ge.s32.totalorder %s778_s17, 1  ;;  %s778_s17 = sphi %s810_s17, %s14_s17   ;;  %s774_s16 = sphi %s808_s16, %s947_s16   ;;  %s770_s15 = sphi %s806_s15, %s946_s15  }
   0x3   : > { %p35_p1 = scmp.ge.s32.totalorder %s33_s18, 2  ;;  %p229_p2 = scmp.lt.s32.totalorder %s778_s17, 3 }
   0x5   : > { %s949_s18 = smov (%p35_p1, %s33_s18), 0  ;;  %p230_p3 = pnand %p661_p0, %p229_p2 }
   0x6   : > { %v349_v0 = vld [vmem:[%s941_s1] sm:$0xff] (!%p230_p3)  ;;  %v350_v1 = vld [vmem:[%s941_s1 + $0x8] sm:$0xff] (!%p230_p3)  ;;  %v351_v2 = vld [vmem:[%s941_s1 + $0x10] sm:$0xff] (!%p230_p3)  ;;  %s662_s25 = sshll.u32 (!%p230_p3), %s770_s15, 3  ;;  %vm324_vm0 = vcmask (!%p230_p3), 261120   ;;  %v780_v5 = vmov (!%p230_p3), 0.0  }
   0x7   : > { %233 = sbr.rel (%p230_p3) target bundleno = 272 (0x110), region = 36  ;;  %v365_v3 = vpack.c.bf16 (!%p230_p3), %v350_v1, %v349_v0  ;;  %v352_v4 = vld [vmem:[%s941_s1 + $0x18] sm:$0xff] (!%p230_p3)  ;;  %p839_p4 = scmp.lt.s32.totalorder (!%p230_p3), %s662_s25, 15  ;;  %327 = vst.msk [vmem:[#allocation2 + $0x10] sm:$0xff] (!%p230_p3), %vm324_vm0, %v780_v5  ;;  %325 = vst.msk [vmem:[#allocation2] sm:$0xff] (!%p230_p3), %vm324_vm0, %v780_v5  ;;  %v353_v7 = vld [vmem:[%s941_s1 + $0x20] sm:$0xff] (!%p230_p3) }
   0x8   : > { %326 = vst.msk [vmem:[#allocation2 + $0x8] sm:$0xff] (!%p230_p3), %vm324_vm0, %v780_v5  ;;  %328 = vst.msk [vmem:[#allocation2 + $0x18] sm:$0xff] (!%p230_p3), %vm324_vm0, %v780_v5  ;;  %v366_v6 = vpack.c.bf16 (!%p230_p3), %v352_v4, %v351_v2  ;;  %v354_v8 = vld [vmem:[%s941_s1 + $0x28] sm:$0xff] (!%p230_p3)  ;;  %v355_v10 = vld [vmem:[%s941_s1 + $0x30] sm:$0xff] (!%p230_p3) }
   0x9   : > { %329 = vst.msk [vmem:[#allocation2 + $0x20] sm:$0xff] (!%p230_p3), %vm324_vm0, %v780_v5  ;;  %330 = vst.msk [vmem:[#allocation2 + $0x28] sm:$0xff] (!%p230_p3), %vm324_vm0, %v780_v5  ;;  %687 = vmatprep.subr.bf16.mxu0 (!%p230_p3), %v365_v3  ;;  %711 = vmatprep.subr.bf16.mxu1 (!%p230_p3), %v365_v3  ;;  %v367_v9 = vpack.c.bf16 (!%p230_p3), %v354_v8, %v353_v7  ;;  %v356_v11 = vld [vmem:[%s941_s1 + $0x38] sm:$0xff] (!%p230_p3)  ;;  %v357_v14 = vld [vmem:[%s941_s1 + $0x40] sm:$0xff] (!%p230_p3) }
   0xa   : > { %331 = vst.msk [vmem:[#allocation2 + $0x30] sm:$0xff] (!%p230_p3), %vm324_vm0, %v780_v5  ;;  %332 = vst.msk [vmem:[#allocation2 + $0x38] sm:$0xff] (!%p230_p3), %vm324_vm0, %v780_v5  ;;  %688 = vmatpush3.bf16.msra.mxu0 (!%p230_p3), %v365_v3  ;;  %719 = vmatpush3.bf16.msra.mxu1 (!%p230_p3), %v365_v3  ;;  %v368_v13 = vpack.c.bf16 (!%p230_p3), %v356_v11, %v355_v10  ;;  %v358_v15 = vld [vmem:[%s941_s1 + $0x48] sm:$0xff] (!%p230_p3)  ;;  %v359_v18 = vld [vmem:[%s941_s1 + $0x50] sm:$0xff] (!%p230_p3) }
   0xb   : > { %689 = vmatprep.subr.bf16.mxu0 (!%p230_p3), %v366_v6  ;;  %712 = vmatprep.subr.bf16.mxu1 (!%p230_p3), %v366_v6  ;;  %v369_v17 = vpack.c.bf16 (!%p230_p3), %v358_v15, %v357_v14  ;;  %v360_v19 = vld [vmem:[%s941_s1 + $0x58] sm:$0xff] (!%p230_p3)  ;;  %v361_v21 = vld [vmem:[%s941_s1 + $0x60] sm:$0xff] (!%p230_p3)  ;;  %v362_v22 = vld [vmem:[%s941_s1 + $0x68] sm:$0xff] (!%p230_p3) }
   0xc   : > { %v370_v20 = vpack.c.bf16 (!%p230_p3), %v360_v19, %v359_v18  ;;  %v371_v23 = vpack.c.bf16 (!%p230_p3), %v362_v22, %v361_v21  ;;  %v363_v24 = vld [vmem:[%s941_s1 + $0x70] sm:$0xff] (!%p230_p3)  ;;  %v364_v25 = vld [vmem:[%s941_s1 + $0x78] sm:$0xff] (!%p230_p3)  ;;  %v672_v53 = vld [vmem:[%s942_s2] ss:$0 sm:$0xff] (!%p230_p3) }
   0xd   : > { %v372_v26 = vpack.c.bf16 (!%p230_p3), %v364_v25, %v363_v24 }
   0xe   : > { %s951_s25 = smov (!%p839_p4, %s662_s25), 15  ;;  %690 = vmatpush3.bf16.msra.mxu0 %v366_v6  ;;  %720 = vmatpush3.bf16.msra.mxu1 %v366_v6  ;;  %v335_v29 = vld [vmem:[#allocation2 + $0x10] sm:$0xff]  ;;  %v333_v31 = vld [vmem:[#allocation2] sm:$0xff] }
   0xf   : > { %s663_s7 = sshll.u32 %s951_s25, 2  ;;  %691 = vmatprep.subr.bf16.mxu0 %v367_v9  ;;  %713 = vmatprep.subr.bf16.mxu1 %v367_v9  ;;  %v336_v35 = vld [vmem:[#allocation2 + $0x18] sm:$0xff]  ;;  %v334_v41 = vld [vmem:[#allocation2 + $0x8] sm:$0xff]  ;;  %s665_s9 = sshll.u32 %s951_s25, 3 }
  0x10   : > { %s871_s14 = scalar_lea.vmem %s940_s0, %s663_s7  ;;  %v337_v32 = vld [vmem:[#allocation2 + $0x20] sm:$0xff]  ;;  %v338_v42 = vld [vmem:[#allocation2 + $0x28] sm:$0xff]  ;;  %s308_s12 = scalar_lea.vmem %s943_s3, %s665_s9 }
  0x11   : > { %v752_v12 = vld [vmem:[%s871_s14] sm:$0xff]   ;;  %v753_v16 = vld [vmem:[%s871_s14 + $0x10] sm:$0xff]   ;;  %v754_v27 = vld [vmem:[%s871_s14 + $0x8] sm:$0xff]   ;;  %s317_s20 = scalar_lea.vmem %s944_s4, %s665_s9 }
  0x12   : > { %703 = vmatprep.mubr.bf16.mxu0 %v752_v12  ;;  %692 = vmatpush3.bf16.msra.mxu0 %v367_v9  ;;  %v755_v28 = vld [vmem:[%s871_s14 + $0x18] sm:$0xff]   ;;  %v339_v30 = vld [vmem:[#allocation2 + $0x30] sm:$0xff]  ;;  %v505_v54 = vld [vmem:[%s308_s12] sm:$0xff] }
  0x13   : > { %721 = vmatpush3.bf16.msra.mxu1 %v367_v9  ;;  %693 = vmatprep.subr.bf16.mxu0 %v368_v13  ;;  %v340_v36 = vld [vmem:[#allocation2 + $0x38] sm:$0xff]  ;;  %v507_v55 = vld [vmem:[%s308_s12 + $0x10] sm:$0xff]  ;;  %v506_v60 = vld [vmem:[%s308_s12 + $0x8] sm:$0xff] }
  0x14   : > { %714 = vmatprep.subr.bf16.mxu1 %v368_v13  ;;  %707 = vmatprep.mubr.bf16.mxu1 %v753_v16  ;;  %v508_v56 = vld [vmem:[%s308_s12 + $0x18] sm:$0xff]  ;;  %v511_v57 = vld [vmem:[%s308_s12 + $0x30] sm:$0xff]  ;;  %v509_v61 = vld [vmem:[%s308_s12 + $0x20] sm:$0xff] }
  0x15   : > { %v512_v2 = vld [vmem:[%s308_s12 + $0x38] sm:$0xff]  ;;  %v510_v7 = vld [vmem:[%s308_s12 + $0x28] sm:$0xff] }
  0x16   : > { %694 = vmatpush3.bf16.msra.mxu0 %v368_v13 }
  0x17   : > { %722 = vmatpush3.bf16.msra.mxu1 %v368_v13  ;;  %695 = vmatprep.subr.bf16.mxu0 %v369_v17 }
  0x18   : > { %715 = vmatprep.subr.bf16.mxu1 %v369_v17 }
  0x1a   : > { %696 = vmatpush3.bf16.msra.mxu0 %v369_v17 }
  0x1b   : > { %723 = vmatpush3.bf16.msra.mxu1 %v369_v17  ;;  %697 = vmatprep.subr.bf16.mxu0 %v370_v20 }
  0x1c   : > { %716 = vmatprep.subr.bf16.mxu1 %v370_v20 }
  0x1e   : > { %698 = vmatpush3.bf16.msra.mxu0 %v370_v20 }
  0x1f   : > { %724 = vmatpush3.bf16.msra.mxu1 %v370_v20  ;;  %699 = vmatprep.subr.bf16.mxu0 %v371_v23 }
  0x20   : > { %717 = vmatprep.subr.bf16.mxu1 %v371_v23 }
  0x22   : > { %700 = vmatpush3.bf16.msra.mxu0 %v371_v23 }
  0x23   : > { %725 = vmatpush3.bf16.msra.mxu1 %v371_v23  ;;  %701 = vmatprep.subr.bf16.mxu0 %v372_v26 }
  0x24   : > { %718 = vmatprep.subr.bf16.mxu1 %v372_v26 }
  0x26   : > { %702 = vmatpush3.bf16.msra.mxu0 %v372_v26 }
  0x27   : > { %726 = vmatpush3.bf16.msra.mxu1 %v372_v26 }
  0x29   : > { %704 = vmatmul.mubr.bf16.vlgmr.msra.gmra.mrb[0].mxu0 %v754_v27 }
  0x2a   : > { %708 = vmatmul.mubr.bf16.vlgmr.msra.gmra.mrb[0].mxu1 %v755_v28 }
  0xfc   : > { %v705_v33 = vpop.f32.mrb[0].mxu0 }
  0xfd   : > { %v709_v34 = vpop.f32.mrb[0].mxu1  ;;  %v464_v37 = vadd.f32 %v705_v33, %v335_v29  ;;  %v431_v39 = vpop.f32.mrb[1].mxu0 }
  0xfe   : > { %v468_v38 = vadd.f32 %v709_v34, %v339_v30  ;;  %v447_v40 = vpop.f32.mrb[1].mxu1  ;;  %v462_v43 = vadd.f32 %v431_v39, %v333_v31  ;;  %v706_v45 = vpop.f32.mrb[2].mxu0 }
  0xff   : > { %v466_v44 = vadd.f32 %v447_v40, %v337_v32  ;;  %v710_v46 = vpop.f32.mrb[2].mxu1  ;;  %473 = vst.msk [vmem:[#allocation2 + $0x10] sm:$0xff] %vm324_vm0, %v464_v37  ;;  %v465_v47 = vadd.f32 %v706_v45, %v336_v35  ;;  %v434_v49 = vpop.f32.mrb[3].mxu0 }
 0x100   : > { %477 = vst.msk [vmem:[#allocation2 + $0x30] sm:$0xff] %vm324_vm0, %v468_v38  ;;  %v469_v48 = vadd.f32 %v710_v46, %v340_v36  ;;  %v450_v50 = vpop.f32.mrb[3].mxu1  ;;  %471 = vst.msk [vmem:[#allocation2] sm:$0xff] %vm324_vm0, %v462_v43  ;;  %v463_v51 = vadd.f32 %v434_v49, %v334_v41 }
 0x101   : > { %475 = vst.msk [vmem:[#allocation2 + $0x20] sm:$0xff] %vm324_vm0, %v466_v44  ;;  %v467_v52 = vadd.f32 %v450_v50, %v338_v42  ;;  %474 = vst.msk [vmem:[#allocation2 + $0x18] sm:$0xff] %vm324_vm0, %v465_v47 }
 0x102   : > { %478 = vst.msk [vmem:[#allocation2 + $0x38] sm:$0xff] %vm324_vm0, %v469_v48  ;;  %472 = vst.msk [vmem:[#allocation2 + $0x8] sm:$0xff] %vm324_vm0, %v463_v51 }
 0x103   : > { %476 = vst.msk [vmem:[#allocation2 + $0x28] sm:$0xff] %vm324_vm0, %v467_v52 }
 0x106   : > { %v484_v58 = vld [vmem:[#allocation2 + $0x10] sm:$0xff] }
 0x107   : > { %v488_v59 = vld [vmem:[#allocation2 + $0x30] sm:$0xff]  ;;  %v499_v62 = vadd.f32 %v672_v53, %v484_v58  ;;  %v482_v0 = vld [vmem:[#allocation2] sm:$0xff] }
 0x108   : > { %v503_v63 = vadd.f32 %v672_v53, %v488_v59  ;;  %v486_v1 = vld [vmem:[#allocation2 + $0x20] sm:$0xff]  ;;  %v497_v3 = vadd.f32 %v672_v53, %v482_v0  ;;  %v485_v5 = vld [vmem:[#allocation2 + $0x18] sm:$0xff] }
 0x109   : > { %v501_v4 = vadd.f32 %v672_v53, %v486_v1  ;;  %v489_v6 = vld [vmem:[#allocation2 + $0x38] sm:$0xff]  ;;  %v515_v8 = vadd.f32 %v507_v55, %v499_v62  ;;  %v500_v10 = vadd.f32 %v672_v53, %v485_v5  ;;  %v483_v12 = vld [vmem:[#allocation2 + $0x8] sm:$0xff] }
 0x10a   : > { %v519_v9 = vadd.f32 %v511_v57, %v503_v63  ;;  %v504_v11 = vadd.f32 %v672_v53, %v489_v6  ;;  %v487_v13 = vld [vmem:[#allocation2 + $0x28] sm:$0xff]  ;;  %v513_v14 = vadd.f32 %v505_v54, %v497_v3  ;;  %v498_v16 = vadd.f32 %v672_v53, %v483_v12 }
 0x10b   : > { %v517_v15 = vadd.f32 %v509_v61, %v501_v4  ;;  %v502_v17 = vadd.f32 %v672_v53, %v487_v13  ;;  %523 = vst.msk [vmem:[%s317_s20 + $0x10] sm:$0xff] %vm324_vm0, %v515_v8  ;;  %v516_v18 = vadd.f32 %v508_v56, %v500_v10 }
 0x10c   : > { %527 = vst.msk [vmem:[%s317_s20 + $0x30] sm:$0xff] %vm324_vm0, %v519_v9  ;;  %v520_v19 = vadd.f32 %v512_v2, %v504_v11  ;;  %521 = vst.msk [vmem:[%s317_s20] sm:$0xff] %vm324_vm0, %v513_v14  ;;  %v514_v20 = vadd.f32 %v506_v60, %v498_v16 }
 0x10d   : > { %525 = vst.msk [vmem:[%s317_s20 + $0x20] sm:$0xff] %vm324_vm0, %v517_v15  ;;  %v518_v21 = vadd.f32 %v510_v7, %v502_v17  ;;  %524 = vst.msk [vmem:[%s317_s20 + $0x18] sm:$0xff] %vm324_vm0, %v516_v18 }
 0x10e   : > { %528 = vst.msk [vmem:[%s317_s20 + $0x38] sm:$0xff] %vm324_vm0, %v520_v19  ;;  %522 = vst.msk [vmem:[%s317_s20 + $0x8] sm:$0xff] %vm324_vm0, %v514_v20 }
 0x10f   : > { %526 = vst.msk [vmem:[%s317_s20 + $0x28] sm:$0xff] %vm324_vm0, %v518_v21 }
 0x110 PF: > { %s14_s17 = sadd.s32 1, %s778_s17   ;;  %s946_s15 = smov %s774_s16 }
 0x111   : > { %p11_p5 = scmp.ge.s32.totalorder %s14_s17, 4   ;;  %s947_s16 = smov %s949_s18 }
 0x113   :  { %13 = sbr.rel (!%p11_p5) target bundleno = 2 (0x2), region = 83 }

// kernel: spatial_transformer.21
= control target key start
LH: loop header
LB: loop body
LE: loop exit
PB: predicated region body
PF: predicated region fallthrough
CT: control target
= control target key end

     0   :  { %s649_s12 = smov 0   ;;  %s651_s13 = smov 0   ;;  %s735_s0 = inlined_call_operand.vmem [shape: f32[128,32], index: 0, kind: input, shape index: {}]   ;;  %s736_s1 = inlined_call_operand.vmem [shape: f32[32,4], index: 1, kind: input, shape index: {}]   ;;  %s737_s2 = inlined_call_operand.vmem [shape: f32[1,4], index: 2, kind: input, shape index: {}]   ;;  %s738_s3 = inlined_call_operand.vmem [shape: f32[128,4], index: 3, kind: output, shape index: {}]  }
   0x1   :  { %s653_s14 = smov 0  }
   0x2 LB: > { %s32_s15 = sadd.s32 1, %s622_s13  ;;  %p545_p0 = scmp.ge.s32.totalorder %s626_s14, 1  ;;  %s626_s14 = sphi %s653_s14, %s13_s14   ;;  %s622_s13 = sphi %s651_s13, %s740_s13   ;;  %s618_s12 = sphi %s649_s12, %s739_s12  }
   0x3   : > { %p34_p1 = scmp.ge.s32.totalorder %s32_s15, 2  ;;  %p188_p2 = scmp.lt.s32.totalorder %s626_s14, 3 }
   0x5   : > { %s742_s15 = smov (%p34_p1, %s32_s15), 0  ;;  %p189_p3 = pnand %p545_p0, %p188_p2 }
   0x6   : > { %v293_v0 = vld [vmem:[%s736_s1] sm:$0xff] (!%p189_p3)  ;;  %v294_v1 = vld [vmem:[%s736_s1 + $0x8] sm:$0xff] (!%p189_p3)  ;;  %v295_v2 = vld [vmem:[%s736_s1 + $0x10] sm:$0xff] (!%p189_p3)  ;;  %s546_s22 = sshll.u32 (!%p189_p3), %s618_s12, 3  ;;  %vm264_vm0 = vcmask (!%p189_p3), 31744   ;;  %v628_v6 = vmov (!%p189_p3), 0.0  }
   0x7   : > { %192 = sbr.rel (%p189_p3) target bundleno = 250 (0xfa), region = 32  ;;  %v297_v3 = vpack.c.bf16 (!%p189_p3), %v294_v1, %v293_v0  ;;  %v296_v4 = vld [vmem:[%s736_s1 + $0x18] sm:$0xff] (!%p189_p3)  ;;  %p230_p4 = scmp.lt.s32.totalorder (!%p189_p3), %s546_s22, 15  ;;  %267 = vst.msk [vmem:[#allocation2 + $0x10] sm:$0xff] (!%p189_p3), %vm264_vm0, %v628_v6  ;;  %265 = vst.msk [vmem:[#allocation2] sm:$0xff] (!%p189_p3), %vm264_vm0, %v628_v6  ;;  %vm299_vm1 = vcmask (!%p189_p3), 261120  }
   0x8   : > { %v298_v5 = vpack.c.bf16 (!%p189_p3), %v296_v4, %v295_v2  ;;  %266 = vst.msk [vmem:[#allocation2 + $0x8] sm:$0xff] (!%p189_p3), %vm264_vm0, %v628_v6  ;;  %268 = vst.msk [vmem:[#allocation2 + $0x18] sm:$0xff] (!%p189_p3), %vm264_vm0, %v628_v6  ;;  %v554_v43 = vld [vmem:[%s737_s2] ss:$0 sm:$0xff] (!%p189_p3) }
   0x9   : > { %269 = vst.msk [vmem:[#allocation2 + $0x20] sm:$0xff] (!%p189_p3), %vm264_vm0, %v628_v6  ;;  %270 = vst.msk [vmem:[#allocation2 + $0x28] sm:$0xff] (!%p189_p3), %vm264_vm0, %v628_v6  ;;  %563 = vmatprep.subr.bf16.mxu0 (!%p189_p3), %v297_v3  ;;  %575 = vmatprep.subr.bf16.mxu1 (!%p189_p3), %v297_v3 }
   0xa   : > { %271 = vst.msk [vmem:[#allocation2 + $0x30] sm:$0xff] (!%p189_p3), %vm264_vm0, %v628_v6  ;;  %272 = vst.msk [vmem:[#allocation2 + $0x38] sm:$0xff] (!%p189_p3), %vm264_vm0, %v628_v6  ;;  %564 = vmatpush3.bf16.msra.mxu0 (!%p189_p3), %v297_v3  ;;  %577 = vmatpush3.bf16.msra.mxu1 (!%p189_p3), %v297_v3 }
   0xb   : > { %565 = vmatprep.subr.bf16.mxu0 (!%p189_p3), %v298_v5  ;;  %576 = vmatprep.subr.bf16.mxu1 (!%p189_p3), %v298_v5 }
   0xe   : > { %s744_s22 = smov (!%p230_p4, %s546_s22), 15  ;;  %566 = vmatpush3.bf16.msra.mxu0 %v298_v5  ;;  %578 = vmatpush3.bf16.msra.mxu1 %v298_v5  ;;  %v275_v19 = vld [vmem:[#allocation2 + $0x10] sm:$0xff]  ;;  %v273_v21 = vld [vmem:[#allocation2] sm:$0xff] }
   0xf   : > { %s547_s25 = sshll.u32 %s744_s22, 3  ;;  %v276_v24 = vld [vmem:[#allocation2 + $0x18] sm:$0xff]  ;;  %v274_v29 = vld [vmem:[#allocation2 + $0x8] sm:$0xff] }
  0x10   : > { %s236_s28 = scalar_lea.vmem %s735_s0, %s547_s25  ;;  %v277_v23 = vld [vmem:[#allocation2 + $0x20] sm:$0xff]  ;;  %v278_v34 = vld [vmem:[#allocation2 + $0x28] sm:$0xff]  ;;  %s257_s6 = scalar_lea.vmem %s738_s3, %s547_s25 }
  0x11   : > { %v281_v7 = vld [vmem:[%s236_s28] sm:$0xff]  ;;  %v282_v8 = vld [vmem:[%s236_s28 + $0x8] sm:$0xff]  ;;  %v283_v12 = vld [vmem:[%s236_s28 + $0x10] sm:$0xff] }
  0x12   : > { %v285_v9 = vld [vmem:[%s236_s28 + $0x20] sm:$0xff]  ;;  %v289_v10 = vpack.c.bf16 %v282_v8, %v281_v7  ;;  %v286_v11 = vld [vmem:[%s236_s28 + $0x28] sm:$0xff]  ;;  %v284_v13 = vld [vmem:[%s236_s28 + $0x18] sm:$0xff] }
  0x13   : > { %v291_v14 = vpack.c.bf16 %v286_v11, %v285_v9  ;;  %v290_v15 = vpack.c.bf16 %v284_v13, %v283_v12  ;;  %v287_v16 = vld [vmem:[%s236_s28 + $0x30] sm:$0xff]  ;;  %v288_v17 = vld [vmem:[%s236_s28 + $0x38] sm:$0xff] }
  0x14   : > { %567 = vmatprep.mubr.msk.bf16.mxu0 %vm299_vm1, %v289_v10  ;;  %v292_v18 = vpack.c.bf16 %v288_v17, %v287_v16  ;;  %v279_v20 = vld [vmem:[#allocation2 + $0x30] sm:$0xff]  ;;  %v280_v28 = vld [vmem:[#allocation2 + $0x38] sm:$0xff] }
  0x15   : > { %571 = vmatprep.mubr.msk.bf16.mxu1 %vm299_vm1, %v291_v14  ;;  %568 = vmatmul.mubr.msk.bf16.vlgmr.msra.gmra.mrb[0].mxu0 %vm299_vm1, %v290_v15 }
  0x16   : > { %572 = vmatmul.mubr.msk.bf16.vlgmr.msra.gmra.mrb[0].mxu1 %vm299_vm1, %v292_v18 }
  0xe8   : > { %v569_v22 = vpop.f32.mrb[0].mxu0 }
  0xe9   : > { %v379_v25 = vadd.f32 %v569_v22, %v275_v19  ;;  %v573_v26 = vpop.f32.mrb[0].mxu1  ;;  %v346_v27 = vpop.f32.mrb[1].mxu0 }
  0xea   : > { %v383_v30 = vadd.f32 %v573_v26, %v279_v20  ;;  %v377_v31 = vadd.f32 %v346_v27, %v273_v21  ;;  %v362_v32 = vpop.f32.mrb[1].mxu1  ;;  %v570_v33 = vpop.f32.mrb[2].mxu0 }
  0xeb   : > { %388 = vst.msk [vmem:[#allocation2 + $0x10] sm:$0xff] %vm264_vm0, %v379_v25  ;;  %v381_v35 = vadd.f32 %v362_v32, %v277_v23  ;;  %v380_v36 = vadd.f32 %v570_v33, %v276_v24  ;;  %v574_v37 = vpop.f32.mrb[2].mxu1  ;;  %v349_v38 = vpop.f32.mrb[3].mxu0 }
  0xec   : > { %392 = vst.msk [vmem:[#allocation2 + $0x30] sm:$0xff] %vm264_vm0, %v383_v30  ;;  %386 = vst.msk [vmem:[#allocation2] sm:$0xff] %vm264_vm0, %v377_v31  ;;  %v384_v39 = vadd.f32 %v574_v37, %v280_v28  ;;  %v378_v40 = vadd.f32 %v349_v38, %v274_v29  ;;  %v365_v41 = vpop.f32.mrb[3].mxu1 }
  0xed   : > { %390 = vst.msk [vmem:[#allocation2 + $0x20] sm:$0xff] %vm264_vm0, %v381_v35  ;;  %389 = vst.msk [vmem:[#allocation2 + $0x18] sm:$0xff] %vm264_vm0, %v380_v36  ;;  %v382_v42 = vadd.f32 %v365_v41, %v278_v34 }
  0xee   : > { %393 = vst.msk [vmem:[#allocation2 + $0x38] sm:$0xff] %vm264_vm0, %v384_v39  ;;  %387 = vst.msk [vmem:[#allocation2 + $0x8] sm:$0xff] %vm264_vm0, %v378_v40 }
  0xef   : > { %391 = vst.msk [vmem:[#allocation2 + $0x28] sm:$0xff] %vm264_vm0, %v382_v42 }
  0xf2   : > { %v399_v44 = vld [vmem:[#allocation2 + $0x10] sm:$0xff] }
  0xf3   : > { %v414_v45 = vadd.f32 %v554_v43, %v399_v44  ;;  %v403_v46 = vld [vmem:[#allocation2 + $0x30] sm:$0xff]  ;;  %v397_v47 = vld [vmem:[#allocation2] sm:$0xff] }
  0xf4   : > { %v418_v48 = vadd.f32 %v554_v43, %v403_v46  ;;  %v412_v49 = vadd.f32 %v554_v43, %v397_v47  ;;  %v401_v50 = vld [vmem:[#allocation2 + $0x20] sm:$0xff]  ;;  %v400_v51 = vld [vmem:[#allocation2 + $0x18] sm:$0xff] }
  0xf5   : > { %422 = vst.msk [vmem:[%s257_s6 + $0x10] sm:$0xff] %vm264_vm0, %v414_v45  ;;  %v416_v52 = vadd.f32 %v554_v43, %v401_v50  ;;  %v415_v53 = vadd.f32 %v554_v43, %v400_v51  ;;  %v404_v54 = vld [vmem:[#allocation2 + $0x38] sm:$0xff]  ;;  %v398_v55 = vld [vmem:[#allocation2 + $0x8] sm:$0xff] }
  0xf6   : > { %426 = vst.msk [vmem:[%s257_s6 + $0x30] sm:$0xff] %vm264_vm0, %v418_v48  ;;  %420 = vst.msk [vmem:[%s257_s6] sm:$0xff] %vm264_vm0, %v412_v49  ;;  %v419_v56 = vadd.f32 %v554_v43, %v404_v54  ;;  %v413_v57 = vadd.f32 %v554_v43, %v398_v55  ;;  %v402_v58 = vld [vmem:[#allocation2 + $0x28] sm:$0xff] }
  0xf7   : > { %424 = vst.msk [vmem:[%s257_s6 + $0x20] sm:$0xff] %vm264_vm0, %v416_v52  ;;  %423 = vst.msk [vmem:[%s257_s6 + $0x18] sm:$0xff] %vm264_vm0, %v415_v53  ;;  %v417_v59 = vadd.f32 %v554_v43, %v402_v58 }
  0xf8   : > { %427 = vst.msk [vmem:[%s257_s6 + $0x38] sm:$0xff] %vm264_vm0, %v419_v56  ;;  %421 = vst.msk [vmem:[%s257_s6 + $0x8] sm:$0xff] %vm264_vm0, %v413_v57 }
  0xf9   : > { %425 = vst.msk [vmem:[%s257_s6 + $0x28] sm:$0xff] %vm264_vm0, %v417_v59 }
  0xfa PF: > { %s13_s14 = sadd.s32 1, %s626_s14   ;;  %s739_s12 = smov %s622_s13 }
  0xfb   : > { %p10_p5 = scmp.ge.s32.totalorder %s13_s14, 4   ;;  %s740_s13 = smov %s742_s15 }
  0xfd   :  { %12 = sbr.rel (!%p10_p5) target bundleno = 2 (0x2), region = 76 }

</bundles_post_ra>
